<compile_context>
chip_gen: v5e
topology: v5e:2x2
jax: 0.10.0
libtpu: 0.0.40
codegen_flags: <defaults>
</compile_context>

<pallas_src>
import functools

import jax
import jax.numpy as jnp
from jax.experimental import pallas as pl
from jax.experimental.pallas import tpu as pltpu


def _cge_kernel(x_ref, w_ref, b_ref, o_ref, *, inv_cl, inv_c, inv_cm1):
    # x_ref/o_ref: (KB, KG, C, L) VMEM blocks.  w_ref/b_ref: (1, KG, 1, 1) f32 VMEM.
    x = x_ref[...].astype(jnp.float32)                      # (KB, KG, C, L)

    # Per-channel sums over L (lane reduce); pooled mean is derived from these
    # row sums rather than a second full reduction over x.
    s = jnp.sum(x, axis=-1, keepdims=True)                  # (KB, KG, C, 1)
    pool = jnp.sum(s, axis=2, keepdims=True) * inv_cl       # (KB, KG, 1, 1)

    # t = pooled_mean * per-channel sums, standardized over the channel axis
    # (torch.std default is unbiased -> divide by C-1).
    t = pool * s                                            # (KB, KG, C, 1)
    mean_t = jnp.sum(t, axis=2, keepdims=True) * inv_c      # (KB, KG, 1, 1)
    centered = t - mean_t
    var = jnp.sum(centered * centered, axis=2, keepdims=True) * inv_cm1
    inv_std = 1.0 / (jnp.sqrt(var) + 1e-05)                 # matches torch: 1/(std+eps)

    # Per-group affine folded into the scale: (t/std)*w + b == centered*(w/std) + b.
    gate = centered * (inv_std * w_ref[...]) + b_ref[...]   # (KB, KG, C, 1)

    # Sigmoid gate broadcast over L; single elementwise pass over the block.
    o_ref[...] = (x * jax.nn.sigmoid(gate)).astype(o_ref.dtype)


def _choose_block(batch, g2, slice_bytes, target_block_bytes=2 * 1024 * 1024):
    """Largest (kb, kg) divisors of (batch, g2) whose block fits the byte budget.

    Grows kg first (contiguous within a batch element), then kb.
    """
    kg = 1
    for d in range(1, g2 + 1):
        if g2 % d == 0 and d * slice_bytes <= target_block_bytes:
            kg = d
    kb = 1
    for d in range(1, batch + 1):
        if batch % d == 0 and d * kg * slice_bytes <= target_block_bytes:
            kb = d
    return kb, kg


def channel_group_enhance(x, weight, bias, groups=4):
    """x: (b, c, h, w).  weight, bias: (1, groups*groups, 1)."""
    b, c, h, w = x.shape
    g2 = groups * groups
    assert (h * w) % g2 == 0, "h*w must be divisible by groups^2"
    assert c >= 2, "unbiased std over channels needs at least 2 channels"
    L = (h * w) // g2

    # Flat reinterpretation, identical to torch .view on a contiguous NCHW tensor.
    xr = x.reshape(b, g2, c, L)
    w4 = weight.reshape(1, g2, 1, 1).astype(jnp.float32)
    b4 = bias.reshape(1, g2, 1, 1).astype(jnp.float32)

    slice_bytes = c * L * x.dtype.itemsize
    kb, kg = _choose_block(b, g2, slice_bytes)
    grid = (b // kb, g2 // kg)
    block_bytes = kb * kg * slice_bytes

    # Raise the scoped-VMEM cap only when one double-buffered in+out block would
    # exceed the smallest default (16 MiB on v5e); cap below v7x physical VMEM.
    vmem_limit = None
    needed = 4 * block_bytes + (1 << 20)
    if needed > (16 << 20):
        vmem_limit = min(needed, 48 << 20)

    kernel = functools.partial(
        _cge_kernel,
        inv_cl=1.0 / float(c * L),
        inv_c=1.0 / float(c),
        inv_cm1=1.0 / float(c - 1),
    )

    out = pl.pallas_call(
        kernel,
        out_shape=jax.ShapeDtypeStruct((b, g2, c, L), x.dtype),
        grid_spec=pltpu.PrefetchScalarGridSpec(
            num_scalar_prefetch=0,
            grid=grid,
            in_specs=[
                pl.BlockSpec((kb, kg, c, L), lambda i, j: (i, j, 0, 0)),   # x block
                pl.BlockSpec((1, kg, 1, 1), lambda i, j: (0, j, 0, 0)),    # weight
                pl.BlockSpec((1, kg, 1, 1), lambda i, j: (0, j, 0, 0)),    # bias
            ],
            out_specs=pl.BlockSpec((kb, kg, c, L), lambda i, j: (i, j, 0, 0)),
        ),
        compiler_params=pltpu.CompilerParams(
            dimension_semantics=("parallel", "parallel"),
            vmem_limit_bytes=vmem_limit,
        ),
    )(xr, w4, b4)

    return out.reshape(b, c, h, w)


def channel_group_enhance_ref(x, weight, bias, groups=4):
    """Pure-JAX reference mirroring the PyTorch forward exactly."""
    b, c, h, w = x.shape
    g2 = groups * groups
    N = b * g2
    L = (h * w) // g2
    xr = x.reshape(N, c, L)
    pool = xr.mean(axis=(1, 2), keepdims=True)            # AdaptiveAvgPool2d(1)
    t = (pool * xr.sum(axis=2, keepdims=True))[..., 0]    # (N, c)
    t = t - t.mean(axis=1, keepdims=True)
    std = t.std(axis=1, keepdims=True, ddof=1) + 1e-05    # torch unbiased std
    t = t / std
    t = t.reshape(b, g2, c) * weight + bias               # weight/bias (1, g2, 1)
    t = t.reshape(N, c, 1)
    y = xr * jax.nn.sigmoid(t)
    return y.reshape(b, c, h, w)


if __name__ == "__main__":
    groups = 4
    key = jax.random.PRNGKey(0)
    kx, kw, kbias, kx2 = jax.random.split(key, 4)

    # Small shape consistent with the module (h*w divisible by groups^2 = 16).
    b, c, h, w = 2, 4, 16, 16
    x = jax.random.normal(kx, (b, c, h, w), dtype=jnp.float32)
    # Module init is weight=0, bias=1; use small random values to exercise the path.
    weight = 0.1 * jax.random.normal(kw, (1, groups * groups, 1), dtype=jnp.float32)
    bias = 1.0 + 0.1 * jax.random.normal(kbias, (1, groups * groups, 1), dtype=jnp.float32)

    y = jax.block_until_ready(channel_group_enhance(x, weight, bias, groups=groups))
    y_ref = channel_group_enhance_ref(x, weight, bias, groups=groups)
    assert y.shape == (b, c, h, w)
    assert jnp.allclose(y, y_ref, atol=1e-5, rtol=1e-5), "mismatch vs reference (small)"

    # Second, lane-dense shape (L = h*w/g^2 = 256) exercising the multi-step path.
    b2, c2, h2, w2 = 2, 8, 64, 64
    x2 = jax.random.normal(kx2, (b2, c2, h2, w2), dtype=jnp.float32)
    y2 = jax.block_until_ready(channel_group_enhance(x2, weight, bias, groups=groups))
    y2_ref = channel_group_enhance_ref(x2, weight, bias, groups=groups)
    assert jnp.allclose(y2, y2_ref, atol=1e-5, rtol=1e-5), "mismatch vs reference (lane-dense)"

    print("KERNEL_OK")
</pallas_src>

<mosaic_0001>
module attributes {stable_mosaic.version = 11 : i64} {
  func.func @_cge_kernel(%arg0: i32, %arg1: i32, %arg2: memref<2x16x4x16xf32, #tpu.memory_space<vmem>>, %arg3: memref<1x16x1x1xf32, #tpu.memory_space<vmem>>, %arg4: memref<1x16x1x1xf32, #tpu.memory_space<vmem>>, %arg5: memref<2x16x4x16xf32, #tpu.memory_space<vmem>>) attributes {dimension_semantics = [#tpu.dimension_semantics<parallel>, #tpu.dimension_semantics<parallel>], iteration_bounds = array<i64: 1, 1>, scalar_prefetch = 0 : i64, scratch_operands = 0 : i64, tpu.core_type = #tpu.core_type<tc>, window_params = [{transform_indices = @transform_0, window_bounds = array<i64: 2, 16, 4, 16>}, {transform_indices = @transform_1, window_bounds = array<i64: 1, 16, 1, 1>}, {transform_indices = @transform_2, window_bounds = array<i64: 1, 16, 1, 1>}, {transform_indices = @transform_3, window_bounds = array<i64: 2, 16, 4, 16>}]} {
    %c0 = arith.constant 0 : index
    %c0_0 = arith.constant 0 : index
    %c0_1 = arith.constant 0 : index
    %c0_2 = arith.constant 0 : index
    %0 = vector.load %arg2[%c0, %c0_0, %c0_1, %c0_2] : memref<2x16x4x16xf32, #tpu.memory_space<vmem>>, vector<2x16x4x16xf32>
    %cst = arith.constant dense<0.000000e+00> : vector<2x16x4xf32>
    %1 = vector.multi_reduction <add>, %0, %cst [3] : vector<2x16x4x16xf32> to vector<2x16x4xf32>
    %2 = vector.shape_cast %1 : vector<2x16x4xf32> to vector<2x16x4x1xf32>
    %cst_3 = arith.constant dense<0.000000e+00> : vector<2x16x1xf32>
    %3 = vector.multi_reduction <add>, %2, %cst_3 [2] : vector<2x16x4x1xf32> to vector<2x16x1xf32>
    %4 = vector.shape_cast %3 : vector<2x16x1xf32> to vector<2x16x1x1xf32>
    %cst_4 = arith.constant 1.562500e-02 : f32
    %5 = vector.broadcast %cst_4 : f32 to vector<2x16x1x1xf32>
    %6 = arith.mulf %4, %5 : vector<2x16x1x1xf32>
    %7 = vector.broadcast %6 : vector<2x16x1x1xf32> to vector<2x16x4x1xf32>
    %8 = arith.mulf %7, %2 : vector<2x16x4x1xf32>
    %cst_5 = arith.constant dense<0.000000e+00> : vector<2x16x1xf32>
    %9 = vector.multi_reduction <add>, %8, %cst_5 [2] : vector<2x16x4x1xf32> to vector<2x16x1xf32>
    %10 = vector.shape_cast %9 : vector<2x16x1xf32> to vector<2x16x1x1xf32>
    %cst_6 = arith.constant 2.500000e-01 : f32
    %11 = vector.broadcast %cst_6 : f32 to vector<2x16x1x1xf32>
    %12 = arith.mulf %10, %11 : vector<2x16x1x1xf32>
    %13 = vector.broadcast %12 : vector<2x16x1x1xf32> to vector<2x16x4x1xf32>
    %14 = arith.subf %8, %13 : vector<2x16x4x1xf32>
    %15 = arith.mulf %14, %14 : vector<2x16x4x1xf32>
    %cst_7 = arith.constant dense<0.000000e+00> : vector<2x16x1xf32>
    %16 = vector.multi_reduction <add>, %15, %cst_7 [2] : vector<2x16x4x1xf32> to vector<2x16x1xf32>
    %17 = vector.shape_cast %16 : vector<2x16x1xf32> to vector<2x16x1x1xf32>
    %cst_8 = arith.constant 0.333333343 : f32
    %18 = vector.broadcast %cst_8 : f32 to vector<2x16x1x1xf32>
    %19 = arith.mulf %17, %18 : vector<2x16x1x1xf32>
    %20 = math.sqrt %19 : vector<2x16x1x1xf32>
    %cst_9 = arith.constant 9.99999974E-6 : f32
    %21 = vector.broadcast %cst_9 : f32 to vector<2x16x1x1xf32>
    %22 = arith.addf %20, %21 : vector<2x16x1x1xf32>
    %cst_10 = arith.constant 1.000000e+00 : f32
    %23 = vector.broadcast %cst_10 : f32 to vector<2x16x1x1xf32>
    %24 = arith.divf %23, %22 : vector<2x16x1x1xf32>
    %c0_11 = arith.constant 0 : index
    %c0_12 = arith.constant 0 : index
    %c0_13 = arith.constant 0 : index
    %c0_14 = arith.constant 0 : index
    %25 = vector.load %arg3[%c0_11, %c0_12, %c0_13, %c0_14] : memref<1x16x1x1xf32, #tpu.memory_space<vmem>>, vector<1x16x1x1xf32>
    %26 = vector.broadcast %25 : vector<1x16x1x1xf32> to vector<2x16x1x1xf32>
    %27 = arith.mulf %24, %26 : vector<2x16x1x1xf32>
    %28 = vector.broadcast %27 : vector<2x16x1x1xf32> to vector<2x16x4x1xf32>
    %29 = arith.mulf %14, %28 : vector<2x16x4x1xf32>
    %c0_15 = arith.constant 0 : index
    %c0_16 = arith.constant 0 : index
    %c0_17 = arith.constant 0 : index
    %c0_18 = arith.constant 0 : index
    %30 = vector.load %arg4[%c0_15, %c0_16, %c0_17, %c0_18] : memref<1x16x1x1xf32, #tpu.memory_space<vmem>>, vector<1x16x1x1xf32>
    %31 = vector.broadcast %30 : vector<1x16x1x1xf32> to vector<2x16x4x1xf32>
    %32 = arith.addf %29, %31 : vector<2x16x4x1xf32>
    %33 = arith.negf %32 : vector<2x16x4x1xf32>
    %34 = math.exp %33 : vector<2x16x4x1xf32>
    %cst_19 = arith.constant 1.000000e+00 : f32
    %35 = vector.broadcast %cst_19 : f32 to vector<2x16x4x1xf32>
    %36 = arith.addf %35, %34 : vector<2x16x4x1xf32>
    %37 = arith.divf %35, %36 : vector<2x16x4x1xf32>
    %38 = vector.broadcast %37 : vector<2x16x4x1xf32> to vector<2x16x4x16xf32>
    %39 = arith.mulf %0, %38 : vector<2x16x4x16xf32>
    %c0_20 = arith.constant 0 : index
    %c0_21 = arith.constant 0 : index
    %c0_22 = arith.constant 0 : index
    %c0_23 = arith.constant 0 : index
    %40 = vector.load %arg5[%c0_20, %c0_21, %c0_22, %c0_23] : memref<2x16x4x16xf32, #tpu.memory_space<vmem>>, vector<2x16x4x16xf32>
    tpu.vector_store %arg5[%c0_20, %c0_21, %c0_22, %c0_23], %39 {strides = array<i32>} : memref<2x16x4x16xf32, #tpu.memory_space<vmem>>, vector<2x16x4x16xf32>,
    return
  }
  func.func @transform_0(%arg0: i32, %arg1: i32) -> (i32, i32, i32, i32) {
    %c0_i32 = arith.constant 0 : i32
    %c0_i32_0 = arith.constant 0 : i32
    %c0_i32_1 = arith.constant 0 : i32
    return %arg0, %arg1, %c0_i32, %c0_i32_0 : i32, i32, i32, i32
  }
  func.func @transform_1(%arg0: i32, %arg1: i32) -> (i32, i32, i32, i32) {
    %c0_i32 = arith.constant 0 : i32
    %c0_i32_0 = arith.constant 0 : i32
    %c0_i32_1 = arith.constant 0 : i32
    %c0_i32_2 = arith.constant 0 : i32
    return %c0_i32, %arg1, %c0_i32_0, %c0_i32_1 : i32, i32, i32, i32
  }
  func.func @transform_2(%arg0: i32, %arg1: i32) -> (i32, i32, i32, i32) {
    %c0_i32 = arith.constant 0 : i32
    %c0_i32_0 = arith.constant 0 : i32
    %c0_i32_1 = arith.constant 0 : i32
    %c0_i32_2 = arith.constant 0 : i32
    return %c0_i32, %arg1, %c0_i32_0, %c0_i32_1 : i32, i32, i32, i32
  }
  func.func @transform_3(%arg0: i32, %arg1: i32) -> (i32, i32, i32, i32) {
    %c0_i32 = arith.constant 0 : i32
    %c0_i32_0 = arith.constant 0 : i32
    %c0_i32_1 = arith.constant 0 : i32
    return %arg0, %arg1, %c0_i32, %c0_i32_0 : i32, i32, i32, i32
  }
}

</mosaic_0001>

<bundles_post_ra>
// kernel: tpu_custom_call.1
= control target key start
LH: loop header
LB: loop body
LE: loop exit
PB: predicated region body
PF: predicated region fallthrough
CT: control target
= control target key end

     0   :  { %8 = vsyncpa [#allocation3], 0  ;;  %s5647_s0 = inlined_call_operand.hbm [shape: f32[2,16,4,16], index: 0, kind: input, shape index: {}]   ;;  %s5648_s1 = inlined_call_operand.vmem [shape: f32[1,16,1,1], index: 1, kind: input, shape index: {}]   ;;  %s5649_s2 = inlined_call_operand.vmem [shape: f32[1,16,1,1], index: 2, kind: input, shape index: {}]   ;;  %s5650_s3 = inlined_call_operand.hbm [shape: f32[2,16,4,16], index: 3, kind: output, shape index: {}]  }
   0x1   :  { %9 = vsyncpa [#allocation4], 0  ;;  %s14_s14 = sshll.u32 %s5647_s0, 4  ;;  %s3472_s15 = smov [#allocation2]   ;;  %s15_s14 = int_to_ptr.hbm [resolvable:$true] %s14_s14 }
   0x2   :  { %s16_s16 = sshll.u32 %s3472_s15, 4  ;;  %s3473_s17 = smov 64   ;;  %s17_s16 = int_to_ptr.vmem [resolvable:$true] %s16_s16 }
   0x3   :  { %s3474_s18 = smov 4  }
   0x4   :  { %22 = dma.hbm_to_vmem [thread:$0]  %s15_s14, 2048, %s17_s16, [#allocation3], %s3473_s17, %s3473_s17, %s3474_s18  }
   0x5   :  { %3468 = dma.done.wait [#allocation3], 2048  }
   0x6   :  { %3469 = vsyncadd [#allocation3], 4294965248  ;;  %vm63_vm0 = vcmask 125952   ;;  %v35_v0 = vld [vmem:[#allocation2 + $0x10] sm:$0xf]  ;;  %vm160_vm1 = vcmask 1043456  }
   0x7   :  { %v33_v1 = vld [vmem:[#allocation2 + $0x8] sm:$0xf]  ;;  %v31_v2 = vld [vmem:[#allocation2] sm:$0xf]  ;;  %v76_v3 = vsel %vm63_vm0, %v35_v0, 0.0  ;;  %s3031_s0 = sshll.u32 %s5650_s3, 4  ;;  %s3032_s0 = int_to_ptr.hbm [resolvable:$true] %s3031_s0 }
   0x8   :  { %v70_v4 = vsel %vm63_vm0, %v33_v1, 0.0  ;;  %v64_v5 = vsel %vm63_vm0, %v31_v2, 0.0  ;;  %77 = vadd.xlane.f32.xlu2 %v76_v3  ;;  %v36_v6 = vld [vmem:[#allocation2 + $0x14] sm:$0xf]  ;;  %v34_v7 = vld [vmem:[#allocation2 + $0xc] sm:$0xf] }
   0x9   :  { %71 = vadd.xlane.f32.xlu1 %v70_v4  ;;  %65 = vadd.xlane.f32.xlu0 %v64_v5  ;;  %v32_v8 = vld [vmem:[#allocation2 + $0x4] sm:$0xf]  ;;  %v79_v9 = vsel %vm63_vm0, %v36_v6, 0.0  ;;  %v73_v10 = vsel %vm63_vm0, %v34_v7, 0.0  ;;  %v39_v12 = vld [vmem:[#allocation2 + $0x20] sm:$0xf] }
   0xa   :  { %v67_v11 = vsel %vm63_vm0, %v32_v8, 0.0  ;;  %v38_v13 = vld [vmem:[#allocation2 + $0x1c] sm:$0xf]  ;;  %v37_v14 = vld [vmem:[#allocation2 + $0x18] sm:$0xf]  ;;  %v88_v15 = vsel %vm63_vm0, %v39_v12, 0.0 }
   0xb   :  { %v85_v16 = vsel %vm63_vm0, %v38_v13, 0.0  ;;  %v82_v17 = vsel %vm63_vm0, %v37_v14, 0.0  ;;  %v42_v18 = vld [vmem:[#allocation2 + $0x2c] sm:$0xf]  ;;  %v41_v19 = vld [vmem:[#allocation2 + $0x28] sm:$0xf] }
   0xc   :  { %v40_v20 = vld [vmem:[#allocation2 + $0x24] sm:$0xf]  ;;  %v97_v21 = vsel %vm63_vm0, %v42_v18, 0.0  ;;  %v94_v22 = vsel %vm63_vm0, %v41_v19, 0.0  ;;  %v45_v24 = vld [vmem:[#allocation2 + $0x38] sm:$0xf] }
   0xd   :  { %v91_v23 = vsel %vm63_vm0, %v40_v20, 0.0  ;;  %v44_v25 = vld [vmem:[#allocation2 + $0x34] sm:$0xf]  ;;  %v43_v26 = vld [vmem:[#allocation2 + $0x30] sm:$0xf]  ;;  %v106_v27 = vsel %vm63_vm0, %v45_v24, 0.0 }
   0xe   :  { %v103_v28 = vsel %vm63_vm0, %v44_v25, 0.0  ;;  %v100_v29 = vsel %vm63_vm0, %v43_v26, 0.0  ;;  %v48_v30 = vld [vmem:[#allocation2 + $0x44] sm:$0xf]  ;;  %v47_v31 = vld [vmem:[#allocation2 + $0x40] sm:$0xf] }
   0xf   :  { %v46_v32 = vld [vmem:[#allocation2 + $0x3c] sm:$0xf]  ;;  %v115_v33 = vsel %vm63_vm0, %v48_v30, 0.0  ;;  %v112_v34 = vsel %vm63_vm0, %v47_v31, 0.0  ;;  %v51_v36 = vld [vmem:[#allocation2 + $0x50] sm:$0xf] }
  0x10   :  { %80 = vadd.xlane.f32.xlu2 %v79_v9  ;;  %v109_v35 = vsel %vm63_vm0, %v46_v32, 0.0  ;;  %v50_v37 = vld [vmem:[#allocation2 + $0x4c] sm:$0xf]  ;;  %v49_v38 = vld [vmem:[#allocation2 + $0x48] sm:$0xf]  ;;  %v124_v39 = vsel %vm63_vm0, %v51_v36, 0.0 }
  0x11   :  { %74 = vadd.xlane.f32.xlu1 %v73_v10  ;;  %68 = vadd.xlane.f32.xlu0 %v67_v11  ;;  %v121_v40 = vsel %vm63_vm0, %v50_v37, 0.0  ;;  %v118_v41 = vsel %vm63_vm0, %v49_v38, 0.0  ;;  %v54_v42 = vld [vmem:[#allocation2 + $0x5c] sm:$0xf]  ;;  %v53_v43 = vld [vmem:[#allocation2 + $0x58] sm:$0xf] }
  0x12   :  { %v52_v44 = vld [vmem:[#allocation2 + $0x54] sm:$0xf]  ;;  %v133_v45 = vsel %vm63_vm0, %v54_v42, 0.0  ;;  %v130_v46 = vsel %vm63_vm0, %v53_v43, 0.0  ;;  %v57_v48 = vld [vmem:[#allocation2 + $0x68] sm:$0xf] }
  0x13   :  { %v127_v47 = vsel %vm63_vm0, %v52_v44, 0.0  ;;  %v56_v49 = vld [vmem:[#allocation2 + $0x64] sm:$0xf]  ;;  %v55_v50 = vld [vmem:[#allocation2 + $0x60] sm:$0xf]  ;;  %v142_v51 = vsel %vm63_vm0, %v57_v48, 0.0 }
  0x14   :  { %v139_v52 = vsel %vm63_vm0, %v56_v49, 0.0  ;;  %v136_v53 = vsel %vm63_vm0, %v55_v50, 0.0  ;;  %v60_v54 = vld [vmem:[#allocation2 + $0x74] sm:$0xf]  ;;  %v59_v55 = vld [vmem:[#allocation2 + $0x70] sm:$0xf] }
  0x15   :  { %v58_v56 = vld [vmem:[#allocation2 + $0x6c] sm:$0xf]  ;;  %v151_v57 = vsel %vm63_vm0, %v60_v54, 0.0  ;;  %v148_v58 = vsel %vm63_vm0, %v59_v55, 0.0  ;;  %v62_v60 = vld [vmem:[#allocation2 + $0x7c] sm:$0xf] }
  0x16   :  { %v145_v59 = vsel %vm63_vm0, %v58_v56, 0.0  ;;  %v61_v61 = vld [vmem:[#allocation2 + $0x78] sm:$0xf]  ;;  %v157_v62 = vsel %vm63_vm0, %v62_v60, 0.0 }
  0x17   :  { %v154_v63 = vsel %vm63_vm0, %v61_v61, 0.0 }
  0x18   :  { %89 = vadd.xlane.f32.xlu2 %v88_v15 }
  0x19   :  { %86 = vadd.xlane.f32.xlu1 %v85_v16  ;;  %83 = vadd.xlane.f32.xlu0 %v82_v17 }
  0x20   :  { %98 = vadd.xlane.f32.xlu2 %v97_v21 }
  0x21   :  { %95 = vadd.xlane.f32.xlu1 %v94_v22  ;;  %92 = vadd.xlane.f32.xlu0 %v91_v23 }
  0x28   :  { %107 = vadd.xlane.f32.xlu2 %v106_v27 }
  0x29   :  { %104 = vadd.xlane.f32.xlu1 %v103_v28  ;;  %101 = vadd.xlane.f32.xlu0 %v100_v29 }
  0x30   :  { %116 = vadd.xlane.f32.xlu2 %v115_v33 }
  0x31   :  { %113 = vadd.xlane.f32.xlu1 %v112_v34  ;;  %110 = vadd.xlane.f32.xlu0 %v109_v35 }
  0x38   :  { %125 = vadd.xlane.f32.xlu2 %v124_v39 }
  0x39   :  { %122 = vadd.xlane.f32.xlu1 %v121_v40  ;;  %119 = vadd.xlane.f32.xlu0 %v118_v41 }
  0x40   :  { %134 = vadd.xlane.f32.xlu2 %v133_v45 }
  0x41   :  { %131 = vadd.xlane.f32.xlu1 %v130_v46  ;;  %128 = vadd.xlane.f32.xlu0 %v127_v47 }
  0x48   :  { %143 = vadd.xlane.f32.xlu2 %v142_v51 }
  0x49   :  { %140 = vadd.xlane.f32.xlu1 %v139_v52  ;;  %137 = vadd.xlane.f32.xlu0 %v136_v53 }
  0x50   :  { %152 = vadd.xlane.f32.xlu2 %v151_v57 }
  0x51   :  { %149 = vadd.xlane.f32.xlu1 %v148_v58  ;;  %146 = vadd.xlane.f32.xlu0 %v145_v59 }
  0x59   :  { %158 = vadd.xlane.f32.xlu1 %v157_v62  ;;  %155 = vadd.xlane.f32.xlu0 %v154_v63 }
  0x7b   :  { %v78_v0 = vpop.xlane.xlu2 %77 }
  0x7c   :  { %v72_v1 = vpop.xlane.xlu1 %71  ;;  %v189_v2 = vsel %vm160_vm1, %v78_v0, 0.0  ;;  %v66_v4 = vpop.xlane.xlu0 %65 }
  0x7d   :  { %v175_v3 = vsel %vm160_vm1, %v72_v1, 0.0  ;;  %v190_v5 = vrot.slane %v189_v2, 4  ;;  %v161_v7 = vsel %vm160_vm1, %v66_v4, 0.0 }
  0x7e   :  { %v176_v6 = vrot.slane %v175_v3, 4  ;;  %v162_v8 = vrot.slane %v161_v7, 4 }
  0x7f   :  { %v191_v9 = vadd.f32 %v190_v5, %v189_v2 }
  0x80   :  { %v177_v10 = vadd.f32 %v176_v6, %v175_v3  ;;  %v163_v11 = vadd.f32 %v162_v8, %v161_v7 }
  0x81   :  { %v192_v12 = vrot.slane %v191_v9, 2 }
  0x82   :  { %v178_v13 = vrot.slane %v177_v10, 2  ;;  %v164_v14 = vrot.slane %v163_v11, 2 }
  0x83   :  { %v193_v15 = vadd.f32 %v192_v12, %v191_v9  ;;  %v81_v17 = vpop.xlane.xlu2 %80 }
  0x84   :  { %v179_v16 = vadd.f32 %v178_v13, %v177_v10  ;;  %v75_v18 = vpop.xlane.xlu1 %74  ;;  %v165_v19 = vadd.f32 %v164_v14, %v163_v11  ;;  %v196_v20 = vsel %vm160_vm1, %v81_v17, 0.0  ;;  %v3540_v22 = vpop.xlane.xlu0 %68 }
  0x85   :  { %v182_v21 = vsel %vm160_vm1, %v75_v18, 0.0  ;;  %v194_v23 = vrot.slane %v193_v15, 1  ;;  %v197_v25 = vrot.slane %v196_v20, 4  ;;  %v168_v28 = vsel %vm160_vm1, %v3540_v22, 0.0 }
  0x86   :  { %v180_v24 = vrot.slane %v179_v16, 1  ;;  %v183_v26 = vrot.slane %v182_v21, 4  ;;  %v166_v27 = vrot.slane %v165_v19, 1  ;;  %v169_v34 = vrot.slane %v168_v28, 4 }
  0x87   :  { %v195_v29 = vadd.f32 %v194_v23, %v193_v15  ;;  %v198_v31 = vadd.f32 %v197_v25, %v196_v20 }
  0x88   :  { %v181_v30 = vadd.f32 %v180_v24, %v179_v16  ;;  %v184_v32 = vadd.f32 %v183_v26, %v182_v21  ;;  %v167_v33 = vadd.f32 %v166_v27, %v165_v19  ;;  %v170_v40 = vadd.f32 %v169_v34, %v168_v28 }
  0x89   :  { %v389_v35 = vmul.f32 0.015625, %v195_v29  ;;  %v199_v37 = vrot.slane %v198_v31, 2 }
  0x8a   :  { %v387_v36 = vmul.f32 0.015625, %v181_v30  ;;  %v185_v38 = vrot.slane %v184_v32, 2  ;;  %v385_v39 = vmul.f32 0.015625, %v167_v33  ;;  %v171_v47 = vrot.slane %v170_v40, 2 }
  0x8b   :  { %v3544_v41 = vmul.f32 %v389_v35, %v78_v0  ;;  %v200_v43 = vadd.f32 %v199_v37, %v198_v31  ;;  %v3548_v45 = vpop.xlane.xlu2 %89 }
  0x8c   :  { %v3546_v42 = vmul.f32 %v387_v36, %v72_v1  ;;  %v186_v44 = vadd.f32 %v185_v38, %v184_v32  ;;  %v3550_v46 = vmul.f32 %v385_v39, %v66_v4  ;;  %v217_v48 = vsel %vm160_vm1, %v3548_v45, 0.0  ;;  %v3558_v53 = vpop.xlane.xlu1 %86 }
  0x8d   :  { %v477_v49 = vsel %vm160_vm1, %v3544_v41, 0.0  ;;  %v201_v51 = vrot.slane %v200_v43, 1  ;;  %v172_v57 = vadd.f32 %v171_v47, %v170_v40  ;;  %v218_v61 = vrot.slane %v217_v48, 4 }
  0x8e   :  { %v463_v50 = vsel %vm160_vm1, %v3546_v42, 0.0  ;;  %v187_v52 = vrot.slane %v186_v44, 1  ;;  %v478_v54 = vrot.slane %v477_v49, 4  ;;  %v449_v56 = vsel %vm160_vm1, %v3550_v46, 0.0 }
  0x8f   :  { %v464_v55 = vrot.slane %v463_v50, 4  ;;  %v450_v58 = vrot.slane %v449_v56, 4  ;;  %v202_v59 = vadd.f32 %v201_v51, %v200_v43  ;;  %v173_v0 = vrot.slane %v172_v57, 1 }
  0x90   :  { %v188_v60 = vadd.f32 %v187_v52, %v186_v44  ;;  %v479_v62 = vadd.f32 %v478_v54, %v477_v49  ;;  %v210_v1 = vsel %vm160_vm1, %v3558_v53, 0.0  ;;  %v219_v5 = vadd.f32 %v218_v61, %v217_v48 }
  0x91   :  { %v465_v63 = vadd.f32 %v464_v55, %v463_v50  ;;  %v451_v2 = vadd.f32 %v450_v58, %v449_v56  ;;  %v390_v3 = vmul.f32 0.015625, %v202_v59  ;;  %v174_v8 = vadd.f32 %v173_v0, %v172_v57 }
  0x92   :  { %v388_v4 = vmul.f32 0.015625, %v188_v60  ;;  %v480_v6 = vrot.slane %v479_v62, 2  ;;  %v211_v9 = vrot.slane %v210_v1, 4  ;;  %v220_v13 = vrot.slane %v219_v5, 2 }
  0x93   :  { %v466_v7 = vrot.slane %v465_v63, 2  ;;  %v452_v10 = vrot.slane %v451_v2, 2  ;;  %v3564_v11 = vmul.f32 %v390_v3, %v81_v17  ;;  %v386_v16 = vmul.f32 0.015625, %v174_v8 }
  0x94   :  { %v3566_v12 = vmul.f32 %v388_v4, %v75_v18  ;;  %v481_v14 = vadd.f32 %v480_v6, %v479_v62  ;;  %v212_v19 = vadd.f32 %v211_v9, %v210_v1  ;;  %v221_v24 = vadd.f32 %v220_v13, %v219_v5 }
  0x95   :  { %v467_v15 = vadd.f32 %v466_v7, %v465_v63  ;;  %v453_v20 = vadd.f32 %v452_v10, %v451_v2  ;;  %v484_v21 = vsel %vm160_vm1, %v3564_v11, 0.0  ;;  %v3573_v18 = vmul.f32 %v386_v16, %v3540_v22 }
  0x96   :  { %v470_v23 = vsel %vm160_vm1, %v3566_v12, 0.0  ;;  %v482_v25 = vrot.slane %v481_v14, 1  ;;  %v485_v27 = vrot.slane %v484_v21, 4  ;;  %v222_v29 = vrot.slane %v221_v24, 1 }
  0x97   :  { %v468_v26 = vrot.slane %v467_v15, 1  ;;  %v471_v17 = vrot.slane %v470_v23, 4  ;;  %v454_v28 = vrot.slane %v453_v20, 1  ;;  %v213_v30 = vrot.slane %v212_v19, 2 }
  0x98   :  { %v483_v31 = vadd.f32 %v482_v25, %v481_v14  ;;  %v486_v33 = vadd.f32 %v485_v27, %v484_v21  ;;  %v456_v36 = vsel %vm160_vm1, %v3573_v18, 0.0  ;;  %v223_v37 = vadd.f32 %v222_v29, %v221_v24 }
  0x99   :  { %v469_v32 = vadd.f32 %v468_v26, %v467_v15  ;;  %v472_v34 = vadd.f32 %v471_v17, %v470_v23  ;;  %v455_v35 = vadd.f32 %v454_v28, %v453_v20  ;;  %v214_v38 = vadd.f32 %v213_v30, %v212_v19 }
  0x9a   :  { %v677_v39 = vmul.f32 0.25, %v483_v31  ;;  %v487_v43 = vrot.slane %v486_v33, 2  ;;  %v457_v48 = vrot.slane %v456_v36, 4  ;;  %v393_v22 = vmul.f32 0.015625, %v223_v37 }
  0x9b   :  { %v675_v40 = vmul.f32 0.25, %v469_v32  ;;  %v473_v44 = vrot.slane %v472_v34, 2  ;;  %v673_v47 = vmul.f32 0.25, %v455_v35  ;;  %v215_v49 = vrot.slane %v214_v38, 1 }
  0x9c   :  { %v3578_v50 = vsub.f32 %v3544_v41, %v677_v39  ;;  %v488_v52 = vadd.f32 %v487_v43, %v486_v33  ;;  %v458_v56 = vadd.f32 %v457_v48, %v456_v36  ;;  %v3587_v57 = vmul.f32 %v393_v22, %v3548_v45 }
  0x9d   :  { %v3581_v51 = vsub.f32 %v3546_v42, %v675_v40  ;;  %v474_v54 = vadd.f32 %v473_v44, %v472_v34  ;;  %v3584_v55 = vsub.f32 %v3550_v46, %v673_v47  ;;  %v216_v58 = vadd.f32 %v215_v49, %v214_v38 }
  0x9e   :  { %v741_v59 = vmul.f32 %v3578_v50, %v3578_v50  ;;  %v489_v60 = vrot.slane %v488_v52, 1  ;;  %v459_v62 = vrot.slane %v458_v56, 2  ;;  %v505_v46 = vsel %vm160_vm1, %v3587_v57, 0.0 }
  0x9f   :  { %v739_v41 = vmul.f32 %v3581_v51, %v3581_v51  ;;  %v475_v61 = vrot.slane %v474_v54, 1  ;;  %v737_v42 = vmul.f32 %v3584_v55, %v3584_v55  ;;  %v392_v63 = vmul.f32 0.015625, %v216_v58 }
  0xa0   :  { %v797_v45 = vsel %vm160_vm1, %v741_v59, 0.0  ;;  %v490_v1 = vadd.f32 %v489_v60, %v488_v52  ;;  %v460_v6 = vadd.f32 %v459_v62, %v458_v56  ;;  %v506_v10 = vrot.slane %v505_v46, 4 }
  0xa1   :  { %v783_v0 = vsel %vm160_vm1, %v739_v41, 0.0  ;;  %v476_v2 = vadd.f32 %v475_v61, %v474_v54  ;;  %v798_v3 = vrot.slane %v797_v45, 4  ;;  %v769_v5 = vsel %vm160_vm1, %v737_v42, 0.0 }
  0xa2   :  { %v784_v4 = vrot.slane %v783_v0, 4  ;;  %v770_v7 = vrot.slane %v769_v5, 4  ;;  %v678_v8 = vmul.f32 0.25, %v490_v1  ;;  %v461_v15 = vrot.slane %v460_v6, 1 }
  0xa3   :  { %v676_v9 = vmul.f32 0.25, %v476_v2  ;;  %v799_v13 = vadd.f32 %v798_v3, %v797_v45  ;;  %v3601_v16 = vmul.f32 %v392_v63, %v3558_v53  ;;  %v507_v23 = vadd.f32 %v506_v10, %v505_v46 }
  0xa4   :  { %v785_v14 = vadd.f32 %v784_v4, %v783_v0  ;;  %v771_v19 = vadd.f32 %v770_v7, %v769_v5  ;;  %v3604_v20 = vsub.f32 %v3564_v11, %v678_v8  ;;  %v462_v26 = vadd.f32 %v461_v15, %v460_v6 }
  0xa5   :  { %v3607_v21 = vsub.f32 %v3566_v12, %v676_v9  ;;  %v800_v24 = vrot.slane %v799_v13, 2  ;;  %v498_v27 = vsel %vm160_vm1, %v3601_v16, 0.0  ;;  %v508_v29 = vrot.slane %v507_v23, 2 }
  0xa6   :  { %v786_v25 = vrot.slane %v785_v14, 2  ;;  %v772_v17 = vrot.slane %v771_v19, 2  ;;  %v742_v28 = vmul.f32 %v3604_v20, %v3604_v20  ;;  %v674_v31 = vmul.f32 0.25, %v462_v26 }
  0xa7   :  { %v740_v53 = vmul.f32 %v3607_v21, %v3607_v21  ;;  %v801_v11 = vadd.f32 %v800_v24, %v799_v13  ;;  %v499_v12 = vrot.slane %v498_v27, 4  ;;  %v509_v35 = vadd.f32 %v508_v29, %v507_v23  ;;  %v3638_v23 = vpop.xlane.xlu0 %83 }
  0xa8   :  { %v787_v30 = vadd.f32 %v786_v25, %v785_v14  ;;  %v773_v32 = vadd.f32 %v772_v17, %v771_v19  ;;  %v804_v33 = vsel %vm160_vm1, %v742_v28, 0.0  ;;  %v3618_v43 = vsub.f32 %v3573_v18, %v674_v31 }
  0xa9   :  { %v790_v34 = vsel %vm160_vm1, %v740_v53, 0.0  ;;  %v802_v36 = vrot.slane %v801_v11, 1  ;;  %v805_v38 = vrot.slane %v804_v33, 4  ;;  %v510_v44 = vrot.slane %v509_v35, 1 }
  0xaa   :  { %v788_v37 = vrot.slane %v787_v30, 1  ;;  %v791_v39 = vrot.slane %v790_v34, 4  ;;  %v774_v40 = vrot.slane %v773_v32, 1  ;;  %v500_v47 = vadd.f32 %v499_v12, %v498_v27 }
  0xab   :  { %v803_v48 = vadd.f32 %v802_v36, %v801_v11  ;;  %v806_v49 = vadd.f32 %v805_v38, %v804_v33  ;;  %v738_v56 = vmul.f32 %v3618_v43, %v3618_v43  ;;  %v511_v58 = vadd.f32 %v510_v44, %v509_v35 }
  0xac   :  { %v789_v22 = vadd.f32 %v788_v37, %v787_v30  ;;  %v792_v52 = vadd.f32 %v791_v39, %v790_v34  ;;  %v775_v54 = vadd.f32 %v774_v40, %v773_v32  ;;  %v501_v59 = vrot.slane %v500_v47, 2 }
  0xad   :  { %v3622_v41 = vmul.f32 0.33333334, %v803_v48  ;;  %v807_v18 = vrot.slane %v806_v49, 2  ;;  %v681_v62 = vmul.f32 0.25, %v511_v58  ;;  %v776_v46 = vsel %vm160_vm1, %v738_v56, 0.0 }
  0xae   :  { %v3624_v60 = vmul.f32 0.33333334, %v789_v22  ;;  %v3626_v61 = vmul.f32 0.33333334, %v775_v54  ;;  %v793_v42 = vrot.slane %v792_v52, 2  ;;  %v502_v63 = vadd.f32 %v501_v59, %v500_v47 }
  0xaf   :  { %3100 = vrsqrt.f32 %v3622_v41  ;;  %v808_v45 = vadd.f32 %v807_v18, %v806_v49  ;;  %v777_v1 = vrot.slane %v776_v46, 4  ;;  %v3633_v2 = vsub.f32 %v3587_v57, %v681_v62 }
  0xb0   :  { %3102 = vrsqrt.f32 %v3624_v60  ;;  %v794_v0 = vadd.f32 %v793_v42, %v792_v52  ;;  %v503_v3 = vrot.slane %v502_v63, 1  ;;  %vm1080_vm2 = vcmp.eq.f32.partialorder %v3622_v41, inf }
  0xb1   :  { %3104 = vrsqrt.f32 %v3626_v61  ;;  %v809_v4 = vrot.slane %v808_v45, 1  ;;  %v778_v6 = vadd.f32 %v777_v1, %v776_v46  ;;  %v745_v7 = vmul.f32 %v3633_v2, %v3633_v2 }
  0xb2   :  { %v795_v5 = vrot.slane %v794_v0, 1  ;;  %v504_v9 = vadd.f32 %v503_v3, %v502_v63  ;;  %v203_v30 = vsel %vm160_vm1, %v3638_v23, 0.0  ;;  %vm1082_vm3 = vcmp.eq.f32.partialorder %v3622_v41, 0.0 }
  0xb3   :  { %v810_v14 = vadd.f32 %v809_v4, %v808_v45  ;;  %v779_v19 = vrot.slane %v778_v6, 2  ;;  %v825_v25 = vsel %vm160_vm1, %v745_v7, 0.0  ;;  %v1083_v33 = vand.u32 2147483648, %v3622_v41 }
  0xb4   :  { %v796_v15 = vadd.f32 %v795_v5, %v794_v0  ;;  %v826_v29 = vrot.slane %v825_v25, 4  ;;  %v680_v11 = vmul.f32 0.25, %v504_v9  ;;  %vm1056_vm4 = vcmp.eq.f32.partialorder %v3624_v60, inf }
  0xb5   :  { %v3101_v8 = vpop.eup %3100  ;;  %v3643_v17 = vmul.f32 0.33333334, %v810_v14  ;;  %v780_v32 = vadd.f32 %v779_v19, %v778_v6  ;;  %vm1058_vm5 = vcmp.eq.f32.partialorder %v3624_v60, 0.0  ;;  %v204_v40 = vrot.slane %v203_v30, 4 }
  0xb6   :  { %v3103_v10 = vpop.eup %3102  ;;  %v1074_v13 = vmul.f32 %v3101_v8, %v3622_v41  ;;  %v3645_v28 = vmul.f32 0.33333334, %v796_v15  ;;  %v827_v37 = vadd.f32 %v826_v29, %v825_v25  ;;  %v3657_v39 = vsub.f32 %v3601_v16, %v680_v11 }
  0xb7   :  { %v3105_v24 = vpop.eup %3104  ;;  %v1050_v57 = vmul.f32 %v3103_v10, %v3624_v60  ;;  %3106 = vrsqrt.f32 %v3643_v17  ;;  %v1059_v47 = vand.u32 2147483648, %v3624_v60  ;;  %v781_v22 = vrot.slane %v780_v32, 1 }
  0xb8   :  { %v1075_v26 = vmul.f32 %v3101_v8, %v1074_v13  ;;  %v1026_v27 = vmul.f32 %v3105_v24, %v3626_v61  ;;  %3108 = vrsqrt.f32 %v3645_v28  ;;  %vm1032_vm6 = vcmp.eq.f32.partialorder %v3626_v61, inf }
  0xb9   :  { %v1051_v53 = vmul.f32 %v3103_v10, %v1050_v57  ;;  %vm1034_vm7 = vcmp.eq.f32.partialorder %v3626_v61, 0.0  ;;  %v828_v52 = vrot.slane %v827_v37, 2  ;;  %v1035_v59 = vand.u32 2147483648, %v3626_v61 }
  0xba   :  { %v1076_v31 = vmul.f32 0.5, %v1075_v26  ;;  %v1027_v12 = vmul.f32 %v3105_v24, %v1026_v27  ;;  %v782_v16 = vadd.f32 %v781_v22, %v780_v32  ;;  %v744_v46 = vmul.f32 %v3657_v39, %v3657_v39 }
  0xbb   :  { %v1052_v34 = vmul.f32 0.5, %v1051_v53  ;;  %v205_v63 = vadd.f32 %v204_v40, %v203_v30  ;;  %v829_v7 = vadd.f32 %v828_v52, %v827_v37  ;;  %vm1092_vm8 = vcmp.eq.f32.partialorder %v3643_v17, inf }
  0xbc   :  { %v1077_v35 = vsub.f32 1.5, %v1076_v31  ;;  %v1028_v36 = vmul.f32 0.5, %v1027_v12  ;;  %v3673_v3 = vmul.f32 0.33333334, %v782_v16  ;;  %vm1094_vm9 = vcmp.eq.f32.partialorder %v3643_v17, 0.0 }
  0xbd   :  { %v1053_v38 = vsub.f32 1.5, %v1052_v34  ;;  %v3107_v54 = vpop.eup %3106  ;;  %v206_v19 = vrot.slane %v205_v63, 2  ;;  %v830_v25 = vrot.slane %v829_v7, 1  ;;  %vm1068_vm10 = vcmp.eq.f32.partialorder %v3645_v28, inf }
  0xbe   :  { %v1078_v44 = vmul.f32 %v3101_v8, %v1077_v35  ;;  %v1029_v48 = vsub.f32 1.5, %v1028_v36  ;;  %v3109_v18 = vpop.eup %3108  ;;  %v1086_v62 = vmul.f32 %v3107_v54, %v3643_v17  ;;  %3110 = vrsqrt.f32 %v3673_v3 }
  0xbf   :  { %v1054_v49 = vmul.f32 %v3103_v10, %v1053_v38  ;;  %v1062_v1 = vmul.f32 %v3109_v18, %v3645_v28  ;;  %v1071_v30 = vand.u32 2147483648, %v3645_v28  ;;  %vm1070_vm11 = vcmp.eq.f32.partialorder %v3645_v28, 0.0 }
  0xc0   :  { %v1079_v56 = vmul.f32 %v1078_v44, %v3622_v41  ;;  %v1030_v58 = vmul.f32 %v3105_v24, %v1029_v48  ;;  %v1087_v6 = vmul.f32 %v3107_v54, %v1086_v62  ;;  %v3711_v34 = vadd.f32 %v206_v19, %v205_v63  ;;  %v1923_v19 = vld [vmem:[%s5648_s1 + $0x2] sm:$0x1] }
  0xc1   :  { %v1055_v42 = vmul.f32 %v1054_v49, %v3624_v60  ;;  %v1063_v13 = vmul.f32 %v3109_v18, %v1062_v1  ;;  %v831_v37 = vadd.f32 %v830_v25, %v829_v7  ;;  %v3085_v44 = vld [vmem:[%s5649_s2 + $0x2] ss:$0 sm:$0xff] }
  0xc2   :  { %v1081_v45 = vsel %vm1080_vm2, %v3622_v41, %v1079_v56  ;;  %v1031_v0 = vmul.f32 %v1030_v58, %v3626_v61  ;;  %v1088_v15 = vmul.f32 0.5, %v1087_v6 }
  0xc3   :  { %v1084_v4 = vsel %vm1082_vm3, %v1083_v33, %v1081_v45  ;;  %v1057_v5 = vsel %vm1056_vm4, %v3624_v60, %v1055_v42  ;;  %v1095_v60 = vand.u32 2147483648, %v3643_v17  ;;  %v1064_v53 = vmul.f32 0.5, %v1063_v13 }
  0xc4   :  { %v3680_v8 = vadd.f32 1e-05, %v1084_v4  ;;  %v1060_v9 = vsel %vm1058_vm5, %v1059_v47, %v1057_v5  ;;  %v1033_v10 = vsel %vm1032_vm6, %v3626_v61, %v1031_v0  ;;  %v1089_v57 = vsub.f32 1.5, %v1088_v15  ;;  %v3111_v31 = vpop.eup %3110 }
  0xc5   :  { %v3687_v14 = vadd.f32 1e-05, %v1060_v9  ;;  %v1036_v41 = vsel %vm1034_vm7, %v1035_v59, %v1033_v10  ;;  %v3700_v61 = vsel %vm160_vm1, %v744_v46, 0.0  ;;  %v1065_v32 = vsub.f32 1.5, %v1064_v53  ;;  %v1925_v10 = vld [vmem:[%s5648_s1 + $0x4] sm:$0x1] }
  0xc6   :  { %3112 = vrcp.f32 %v3680_v8  ;;  %v3697_v24 = vadd.f32 1e-05, %v1036_v41  ;;  %v1510_v26 = vand.u32 2147483647, %v3680_v8  ;;  %v1512_v27 = vand.u32 2147483648, %v3680_v8 }
  0xc7   :  { %3114 = vrcp.f32 %v3687_v14  ;;  %v1480_v29 = vand.u32 2147483647, %v3687_v14  ;;  %v1482_v11 = vand.u32 2147483648, %v3687_v14  ;;  %v1090_v12 = vmul.f32 %v3107_v54, %v1089_v57 }
  0xc8   :  { %3116 = vrcp.f32 %v3697_v24  ;;  %v819_v33 = vrot.slane %v3700_v61, 4  ;;  %vm1506_vm12 = vweird.f32 %v3680_v8  ;;  %vm1476_vm13 = vweird.f32 %v3687_v14 }
  0xc9   :  { %v1038_v36 = vmul.f32 %v3111_v31, %v3673_v3  ;;  %vm3717_vm14 = vcmp.eq.f32.partialorder %v1510_v26, 8.507059e+37  ;;  %v1513_v47 = vor.u32 1.1754944e-38, %v1512_v27  ;;  %v1091_v48 = vmul.f32 %v1090_v12, %v3643_v17 }
  0xca   :  { %v1066_v22 = vmul.f32 %v3109_v18, %v1065_v32  ;;  %vm3723_vm15 = vcmp.eq.f32.partialorder %v1480_v29, 8.507059e+37  ;;  %v1483_v54 = vor.u32 1.1754944e-38, %v1482_v11  ;;  %v3727_v58 = vmul.f32 0.33333334, %v831_v37 }
  0xcb   :  { %v1039_v56 = vmul.f32 %v3111_v31, %v1038_v36  ;;  %vm1446_vm2 = vweird.f32 %v3697_v24  ;;  %v1093_v16 = vsel %vm1092_vm8, %v3643_v17, %v1091_v48  ;;  %v1450_v17 = vand.u32 2147483647, %v3697_v24  ;;  %v3084_v36 = vld [vmem:[%s5649_s2 + $0x4] ss:$0 sm:$0xff] }
  0xcc   :  { %v3113_v35 = vpop.eup %3112  ;;  %v1067_v42 = vmul.f32 %v1066_v22, %v3645_v28  ;;  %v1096_v46 = vsel %vm1094_vm9, %v1095_v60, %v1093_v16  ;;  %3118 = vrsqrt.f32 %v3727_v58  ;;  %vm1044_vm5 = vcmp.eq.f32.partialorder %v3673_v3, inf }
  0xcd   :  { %v3115_v38 = vpop.eup %3114  ;;  %v1502_v40 = vmul.f32 %v3113_v35, %v3680_v8  ;;  %v1040_v63 = vmul.f32 0.5, %v1039_v56  ;;  %vm1507_vm3 = vweird.f32 %v3113_v35  ;;  %v3738_v1 = vadd.f32 1e-05, %v1096_v46 }
  0xce   :  { %v1472_v49 = vmul.f32 %v3115_v38, %v3687_v14  ;;  %v3117_v18 = vpop.eup %3116  ;;  %vm1477_vm4 = vweird.f32 %v3115_v38  ;;  %v1069_v5 = vsel %vm1068_vm10, %v3645_v28, %v1067_v42  ;;  %vm1508_vm6 = vmor %vm1506_vm12, %vm1507_vm3  ;;  %v1452_v41 = vand.u32 2147483648, %v3697_v24 }
  0xcf   :  { %v1503_v59 = vsub.f32 1.0, %v1502_v40  ;;  %v1442_v0 = vmul.f32 %v3117_v18, %v3697_v24  ;;  %v1041_v6 = vsub.f32 1.5, %v1040_v63  ;;  %3120 = vrcp.f32 %v3738_v1  ;;  %vm1478_vm8 = vmor %vm1476_vm13, %vm1477_vm4 }
  0xd0   :  { %v1473_v62 = vsub.f32 1.0, %v1472_v49  ;;  %vm1447_vm7 = vweird.f32 %v3117_v18  ;;  %v1072_v15 = vsel %vm1070_vm11, %v1071_v30, %v1069_v5  ;;  %vm1046_vm9 = vcmp.eq.f32.partialorder %v3673_v3, 0.0 }
  0xd1   :  { %v1504_v45 = vmul.f32 %v3113_v35, %v1503_v59  ;;  %v1443_v9 = vsub.f32 1.0, %v1442_v0  ;;  %v3760_v25 = vadd.f32 1e-05, %v1072_v15  ;;  %v1042_v8 = vmul.f32 %v3111_v31, %v1041_v6  ;;  %v1921_v31 = vld [vmem:[%s5648_s1] sm:$0x1]  ;;  %vm1448_vm10 = vmor %vm1446_vm2, %vm1447_vm7 }
  0xd2   :  { %v1474_v4 = vmul.f32 %v3115_v38, %v1473_v62  ;;  %v3762_v26 = vpop.eup %3118  ;;  %v1047_v53 = vand.u32 2147483648, %v3673_v3  ;;  %vm1451_vm11 = vcmp.eq.f32.partialorder %v1450_v17, 8.507059e+37  ;;  %v1453_v12 = vor.u32 1.1754944e-38, %v1452_v41 }
  0xd3   :  { %v1505_v7 = vadd.f32 %v3113_v35, %v1504_v45  ;;  %v1444_v57 = vmul.f32 %v3117_v18, %v1443_v9  ;;  %3122 = vrcp.f32 %v3760_v25  ;;  %v3780_v32 = vadd.f32 %v819_v33, %v3700_v61 }
  0xd4   :  { %v1475_v13 = vadd.f32 %v3115_v38, %v1474_v4  ;;  %v1043_v40 = vmul.f32 %v1042_v8, %v3673_v3  ;;  %v1122_v24 = vmul.f32 %v3762_v26, %v3727_v58  ;;  %vm1521_vm12 = vweird.f32 %v3738_v1 }
  0xd5   :  { %v1509_v60 = vsel %vm1508_vm6, %v3113_v35, %v1505_v7  ;;  %v1445_v14 = vadd.f32 %v3117_v18, %v1444_v57  ;;  %v3121_v35 = vpop.eup %3120  ;;  %v1525_v49 = vand.u32 2147483647, %v3738_v1  ;;  %v1527_v52 = vand.u32 2147483648, %v3738_v1 }
  0xd6   :  { %v1514_v27 = vsel %vm3717_vm14, %v1513_v47, %v1509_v60  ;;  %v1479_v28 = vsel %vm1478_vm8, %v3115_v38, %v1475_v13  ;;  %v1517_v61 = vmul.f32 %v3121_v35, %v3738_v1  ;;  %v1045_v59 = vsel %vm1044_vm5, %v3673_v3, %v1043_v40  ;;  %v1926_v3 = vld [vmem:[%s5648_s1 + $0x5] sm:$0x1]  ;;  %v1924_v1 = vld [vmem:[%s5648_s1 + $0x3] sm:$0x1] }
  0xd7   :  { %v1941_v29 = vmul.f32 %v1925_v10, %v1514_v27  ;;  %v1484_v11 = vsel %vm3723_vm15, %v1483_v54, %v1479_v28  ;;  %v1449_v38 = vsel %vm1448_vm10, %v3117_v18, %v1445_v14  ;;  %v1123_v16 = vmul.f32 %v3762_v26, %v1122_v24 }
  0xd8   :  { %v1939_v30 = vmul.f32 %v1923_v19, %v1484_v11  ;;  %v1454_v48 = vsel %vm1451_vm11, %v1453_v12, %v1449_v38  ;;  %v1518_v56 = vsub.f32 1.0, %v1517_v61  ;;  %v1495_v46 = vand.u32 2147483647, %v3760_v25  ;;  %v3817_v19 = vpop.xlane.xlu2 %98 }
  0xd9   :  { %v2005_v37 = vperm.slane %v1941_v29, 0  ;;  %v1937_v22 = vmul.f32 %v1921_v31, %v1454_v48  ;;  %v3123_v42 = vpop.eup %3122  ;;  %v1048_v63 = vsel %vm1046_vm9, %v1047_v53, %v1045_v59  ;;  %vm1522_vm13 = vweird.f32 %v3121_v35  ;;  %v3088_v59 = vld [vmem:[%s5649_s2 + $0x3] ss:$0 sm:$0xff] }
  0xda   :  { %v2003_v47 = vperm.slane %v1939_v30, 0  ;;  %v1519_v45 = vmul.f32 %v3121_v35, %v1518_v56  ;;  %v1487_v0 = vmul.f32 %v3123_v42, %v3760_v25  ;;  %v1497_v6 = vand.u32 2147483648, %v3760_v25  ;;  %vm1523_vm14 = vmor %vm1521_vm12, %vm1522_vm13 }
  0xdb   :  { %v2069_v33 = vmul.f32 %v2005_v37, %v3578_v50  ;;  %v3086_v50 = vld [vmem:[%s5649_s2] ss:$0 sm:$0xff]  ;;  %v2001_v62 = vperm.slane %v1937_v22, 0  ;;  %v3810_v7 = vadd.f32 1e-05, %v1048_v63  ;;  %v1124_v13 = vmul.f32 0.5, %v1123_v16 }
  0xdc   :  { %v2067_v54 = vmul.f32 %v2003_v47, %v3581_v51  ;;  %v1520_v17 = vadd.f32 %v3121_v35, %v1519_v45  ;;  %v1488_v10 = vsub.f32 1.0, %v1487_v0  ;;  %vm1526_vm15 = vcmp.eq.f32.partialorder %v1525_v49, 8.507059e+37 }
  0xdd   :  { %v2165_v18 = vadd.f32 %v3084_v36, %v2069_v33  ;;  %v2065_v5 = vmul.f32 %v2001_v62, %v3584_v55  ;;  %v1528_v15 = vor.u32 1.1754944e-38, %v1527_v52  ;;  %vm1492_vm2 = vweird.f32 %v3123_v42 }
  0xde   :  { %v2163_v51 = vadd.f32 %v3085_v44, %v2067_v54  ;;  %v1524_v55 = vsel %vm1523_vm14, %v3121_v35, %v1520_v17  ;;  %v1489_v60 = vmul.f32 %v3123_v42, %v1488_v10  ;;  %vm1491_vm3 = vweird.f32 %v3760_v25 }
  0xdf   :  { %v3048_v4 = vmul.f32 -1.442695, %v2165_v18  ;;  %v2161_v41 = vadd.f32 %v3086_v50, %v2065_v5  ;;  %v1529_v57 = vsel %vm1526_vm15, %v1528_v15, %v1524_v55  ;;  %vm3820_vm4 = vcmp.eq.f32.partialorder %v1495_v46, 8.507059e+37  ;;  %vm1493_vm5 = vmor %vm1491_vm3, %vm1492_vm2 }
  0xe0   :  { %v3046_v9 = vmul.f32 -1.442695, %v2163_v51  ;;  %v1942_v27 = vmul.f32 %v1926_v3, %v1529_v57  ;;  %v1490_v28 = vadd.f32 %v3123_v42, %v1489_v60  ;;  %v1498_v53 = vor.u32 1.1754944e-38, %v1497_v6 }
  0xe1   :  { %3124 = vpow2.f32 %v3048_v4  ;;  %v1125_v29 = vsub.f32 1.5, %v1124_v13  ;;  %v3044_v11 = vmul.f32 -1.442695, %v2161_v41  ;;  %v821_v14 = vrot.slane %v3780_v32, 2  ;;  %v3864_v4 = vpop.xlane.xlu1 %95 }
  0xe2   :  { %3126 = vpow2.f32 %v3046_v9  ;;  %v208_v25 = vrot.slane %v3711_v34, 1  ;;  %v238_v30 = vsel %vm160_vm1, %v3817_v19, 0.0  ;;  %v2006_v31 = vperm.slane %v1942_v27, 0  ;;  %v1922_v27 = vld [vmem:[%s5648_s1 + $0x1] sm:$0x1] }
  0xe3   :  { %3128 = vrcp.f32 %v3810_v7  ;;  %v1494_v12 = vsel %vm1493_vm5, %v3123_v42, %v1490_v28  ;;  %v1126_v35 = vmul.f32 %v3762_v26, %v1125_v29  ;;  %v239_v36 = vrot.slane %v238_v30, 4  ;;  %v3087_v26 = vld [vmem:[%s5649_s2 + $0x5] ss:$0 sm:$0xff] }
  0xe4   :  { %v1499_v38 = vsel %vm3820_vm4, %v1498_v53, %v1494_v12  ;;  %v822_v40 = vadd.f32 %v821_v14, %v3780_v32  ;;  %v209_v24 = vadd.f32 %v208_v25, %v3711_v34  ;;  %vm1128_vm6 = vcmp.eq.f32.partialorder %v3727_v58, inf }
  0xe5   :  { %v1940_v47 = vmul.f32 %v1924_v1, %v1499_v38  ;;  %v1127_v48 = vmul.f32 %v1126_v35, %v3727_v58  ;;  %vm1130_vm7 = vcmp.eq.f32.partialorder %v3727_v58, 0.0  ;;  %v2070_v33 = vmul.f32 %v2006_v31, %v3604_v20 }
  0xe6   :  { %v1131_v22 = vand.u32 2147483648, %v3727_v58  ;;  %v823_v32 = vrot.slane %v822_v40, 1  ;;  %v391_v49 = vmul.f32 0.015625, %v209_v24  ;;  %3130 = vpow2.f32 %v3044_v11 }
  0xe7   :  { %v3125_v37 = vpop.eup %3124  ;;  %v2004_v34 = vperm.slane %v1940_v47, 0  ;;  %v240_v54 = vadd.f32 %v239_v36, %v238_v30  ;;  %v1465_v16 = vand.u32 2147483647, %v3810_v7  ;;  %v1129_v42 = vsel %vm1128_vm6, %v3727_v58, %v1127_v48 }
  0xe8   :  { %v3127_v44 = vpop.eup %3126  ;;  %v3846_v56 = vadd.f32 1.0, %v3125_v37  ;;  %v824_v20 = vadd.f32 %v823_v32, %v822_v40  ;;  %v1467_v46 = vand.u32 2147483648, %v3810_v7  ;;  %v2166_v63 = vadd.f32 %v3087_v26, %v2070_v33  ;;  %v3897_v40 = vpop.xlane.xlu2 %107 }
  0xe9   :  { %v3129_v61 = vpop.eup %3128  ;;  %v3853_v18 = vadd.f32 1.0, %v3127_v44  ;;  %v2068_v50 = vmul.f32 %v2004_v34, %v3607_v21  ;;  %v1132_v51 = vsel %vm1130_vm7, %v1131_v22, %v1129_v42  ;;  %v3862_v0 = vmul.f32 %v391_v49, %v3638_v23 }
  0xea   :  { %v1457_v52 = vmul.f32 %v3129_v61, %v3810_v7  ;;  %v3859_v45 = vmul.f32 0.33333334, %v824_v20  ;;  %vm1462_vm8 = vweird.f32 %v3129_v61  ;;  %v3866_v6 = vadd.f32 1e-05, %v1132_v51 }
  0xeb   :  { %v241_v9 = vrot.slane %v240_v54, 2  ;;  %3132 = vrcp.f32 %v3846_v56  ;;  %v2164_v21 = vadd.f32 %v3088_v59, %v2068_v50  ;;  %vm1461_vm9 = vweird.f32 %v3810_v7  ;;  %v3880_v7 = vpop.xlane.xlu0 %92 }
  0xec   :  { %v1458_v62 = vsub.f32 1.0, %v1457_v52  ;;  %v3131_v17 = vpop.eup %3130  ;;  %vm3870_vm10 = vcmp.eq.f32.partialorder %v1465_v16, 8.507059e+37  ;;  %3134 = vrcp.f32 %v3866_v6  ;;  %v231_v23 = vsel %vm160_vm1, %v3864_v4, 0.0  ;;  %vm1463_vm11 = vmor %vm1461_vm9, %vm1462_vm8 }
  0xed   :  { %v3049_v13 = vmul.f32 -1.442695, %v2166_v63  ;;  %v1468_v41 = vor.u32 1.1754944e-38, %v1467_v46  ;;  %3136 = vrsqrt.f32 %v3859_v45  ;;  %v491_v3 = vsel %vm160_vm1, %v3862_v0, 0.0 }
  0xee   :  { %v1459_v5 = vmul.f32 %v3129_v61, %v1458_v62  ;;  %3138 = vrcp.f32 %v3853_v18  ;;  %v492_v55 = vrot.slane %v491_v3, 4  ;;  %v242_v60 = vadd.f32 %v241_v9, %v240_v54 }
  0xef   :  { %v3883_v57 = vadd.f32 1.0, %v3131_v17  ;;  %v3047_v8 = vmul.f32 -1.442695, %v2164_v21  ;;  %v232_v28 = vrot.slane %v231_v23, 4  ;;  %v1570_v53 = vand.u32 2147483647, %v3866_v6 }
  0xf0   :  { %v1460_v58 = vadd.f32 %v3129_v61, %v1459_v5  ;;  %v493_v29 = vadd.f32 %v492_v55, %v491_v3  ;;  %v243_v11 = vrot.slane %v242_v60, 1  ;;  %v224_v14 = vsel %vm160_vm1, %v3880_v7, 0.0  ;;  %v3089_v17 = vld [vmem:[%s5649_s2 + $0x1] ss:$0 sm:$0xff]  ;;  %v1929_v3 = vld [vmem:[%s5648_s1 + $0x8] sm:$0x1] }
  0xf1   :  { %v3893_v25 = vpop.eup %3132  ;;  %3140 = vpow2.f32 %v3049_v13  ;;  %v1119_v30 = vand.u32 2147483648, %v3859_v45  ;;  %v233_v31 = vadd.f32 %v232_v28, %v231_v23  ;;  %v225_v12 = vrot.slane %v224_v14, 4 }
  0xf2   :  { %v1464_v15 = vsel %vm1463_vm11, %v3129_v61, %v1460_v58  ;;  %v3135_v35 = vpop.eup %3134  ;;  %vm1566_vm12 = vweird.f32 %v3866_v6  ;;  %v494_v37 = vrot.slane %v493_v29, 2  ;;  %v244_v38 = vadd.f32 %v243_v11, %v242_v60 }
  0xf3   :  { %v1469_v1 = vsel %vm3870_vm10, %v1468_v41, %v1464_v15  ;;  %v3137_v24 = vpop.eup %3136  ;;  %v1562_v44 = vmul.f32 %v3135_v35, %v3866_v6  ;;  %v1572_v47 = vand.u32 2147483648, %v3866_v6  ;;  %v234_v48 = vrot.slane %v233_v31, 2 }
  0xf4   :  { %v1938_v36 = vmul.f32 %v1922_v27, %v1469_v1  ;;  %v226_v61 = vadd.f32 %v225_v12, %v224_v14  ;;  %v3901_v26 = vpop.eup %3138  ;;  %3142 = vpow2.f32 %v3047_v8  ;;  %vm3903_vm13 = vcmp.eq.f32.partialorder %v1570_v53, 8.507059e+37 }
  0xf5   :  { %v1110_v22 = vmul.f32 %v3137_v24, %v3859_v45  ;;  %v495_v32 = vadd.f32 %v494_v37, %v493_v29  ;;  %v1563_v49 = vsub.f32 1.0, %v1562_v44  ;;  %v396_v34 = vmul.f32 0.015625, %v244_v38  ;;  %v3938_v44 = vpop.xlane.xlu1 %104 }
  0xf6   :  { %v235_v52 = vadd.f32 %v234_v48, %v233_v31  ;;  %v259_v54 = vsel %vm160_vm1, %v3897_v40, 0.0  ;;  %v2002_v59 = vperm.slane %v1938_v36, 0  ;;  %v227_v20 = vrot.slane %v226_v61, 2 }
  0xf7   :  { %v1111_v16 = vmul.f32 %v3137_v24, %v1110_v22  ;;  %v496_v42 = vrot.slane %v495_v32, 1  ;;  %v3141_v50 = vpop.eup %3140  ;;  %v1564_v62 = vmul.f32 %v3135_v35, %v1563_v49  ;;  %vm1567_vm14 = vweird.f32 %v3135_v35 }
  0xf8   :  { %vm1116_vm15 = vcmp.eq.f32.partialorder %v3859_v45, inf  ;;  %v3912_v46 = vmul.f32 %v396_v34, %v3817_v19  ;;  %v236_v63 = vrot.slane %v235_v52, 1  ;;  %v1573_v51 = vor.u32 1.1754944e-38, %v1572_v47  ;;  %vm1568_vm3 = vmor %vm1566_vm12, %vm1567_vm14 }
  0xf9   :  { %v1112_v5 = vmul.f32 0.5, %v1111_v16  ;;  %vm1118_vm2 = vcmp.eq.f32.partialorder %v3859_v45, 0.0  ;;  %v497_v9 = vadd.f32 %v496_v42, %v495_v32  ;;  %v228_v21 = vadd.f32 %v227_v20, %v226_v61 }
  0xfa   :  { %v1565_v58 = vadd.f32 %v3135_v35, %v1564_v62  ;;  %v526_v10 = vsel %vm160_vm1, %v3912_v46, 0.0  ;;  %v237_v23 = vadd.f32 %v236_v63, %v235_v52  ;;  %v260_v13 = vrot.slane %v259_v54, 4  ;;  %v3143_v41 = vpop.eup %3142 }
  0xfb   :  { %v2066_v19 = vmul.f32 %v2002_v59, %v3618_v43  ;;  %v1113_v15 = vsub.f32 1.5, %v1112_v5  ;;  %v679_v55 = vmul.f32 0.25, %v497_v9  ;;  %v527_v60 = vrot.slane %v526_v10, 4 }
  0xfc   :  { %v1569_v8 = vsel %vm1568_vm3, %v3135_v35, %v1565_v58  ;;  %v395_v27 = vmul.f32 0.015625, %v237_v23  ;;  %v229_v1 = vrot.slane %v228_v21, 1  ;;  %v261_v28 = vadd.f32 %v260_v13, %v259_v54  ;;  %v3090_v54 = vld [vmem:[%s5649_s2 + $0x8] ss:$0 sm:$0xff] }
  0xfd   :  { %v1574_v53 = vsel %vm3903_vm13, %v1573_v51, %v1569_v8  ;;  %v1114_v29 = vmul.f32 %v3137_v24, %v1113_v15  ;;  %v3930_v43 = vsub.f32 %v3862_v0, %v679_v55  ;;  %v528_v11 = vadd.f32 %v527_v60, %v526_v10  ;;  %v3970_v55 = vpop.xlane.xlu0 %101 }
  0xfe   :  { %v1945_v14 = vmul.f32 %v1929_v3, %v1574_v53  ;;  %v3933_v31 = vmul.f32 %v395_v27, %v3864_v4  ;;  %v230_v6 = vadd.f32 %v229_v1, %v228_v21  ;;  %v262_v12 = vrot.slane %v261_v28, 2 }
  0xff   :  { %v2162_v36 = vadd.f32 %v3089_v17, %v2066_v19  ;;  %v1115_v35 = vmul.f32 %v1114_v29, %v3859_v45  ;;  %v743_v37 = vmul.f32 %v3930_v43, %v3930_v43  ;;  %v529_v38 = vrot.slane %v528_v11, 2 }
 0x100   :  { %v2009_v24 = vperm.slane %v1945_v14, 0  ;;  %v519_v0 = vsel %vm160_vm1, %v3933_v31, 0.0  ;;  %v394_v47 = vmul.f32 0.015625, %v230_v6  ;;  %v263_v48 = vadd.f32 %v262_v12, %v261_v28 }
 0x101   :  { %v1117_v4 = vsel %vm1116_vm15, %v3859_v45, %v1115_v35  ;;  %v811_v61 = vsel %vm160_vm1, %v743_v37, 0.0  ;;  %v530_v33 = vadd.f32 %v529_v38, %v528_v11  ;;  %v520_v22 = vrot.slane %v519_v0, 4 }
 0x102   :  { %v2073_v32 = vmul.f32 %v2009_v24, %v3633_v2  ;;  %v1120_v49 = vsel %vm1118_vm2, %v1119_v30, %v1117_v4  ;;  %v812_v34 = vrot.slane %v811_v61, 4  ;;  %v252_v52 = vsel %vm160_vm1, %v3938_v44, 0.0 }
 0x103   :  { %v3956_v59 = vadd.f32 1e-05, %v1120_v49  ;;  %v531_v16 = vrot.slane %v530_v33, 1  ;;  %v521_v42 = vadd.f32 %v520_v22, %v519_v0  ;;  %v3959_v20 = vmul.f32 %v394_v47, %v3880_v7 }
 0x104   :  { %3144 = vrcp.f32 %v3883_v57  ;;  %v3045_v2 = vmul.f32 -1.442695, %v2162_v36  ;;  %v813_v45 = vadd.f32 %v812_v34, %v811_v61  ;;  %v264_v30 = vrot.slane %v263_v48, 1 }
 0x105   :  { %3146 = vrcp.f32 %v3956_v59  ;;  %v253_v62 = vrot.slane %v252_v52, 4  ;;  %v3963_v63 = vadd.f32 1.0, %v3141_v50  ;;  %v532_v5 = vadd.f32 %v531_v16, %v530_v33 }
 0x106   :  { %v814_v51 = vrot.slane %v813_v45, 2  ;;  %v522_v9 = vrot.slane %v521_v42, 2  ;;  %v3965_v21 = vadd.f32 1.0, %v3143_v41  ;;  %v2169_v17 = vadd.f32 %v3090_v54, %v2073_v32 }
 0x107   :  { %v512_v7 = vsel %vm160_vm1, %v3959_v20, 0.0  ;;  %v265_v58 = vadd.f32 %v264_v30, %v263_v48  ;;  %3148 = vpow2.f32 %v3045_v2  ;;  %v684_v23 = vmul.f32 0.25, %v532_v5 }
 0x108   :  { %v815_v10 = vadd.f32 %v814_v51, %v813_v45  ;;  %v523_v13 = vadd.f32 %v522_v9, %v521_v42  ;;  %v1555_v19 = vand.u32 2147483647, %v3956_v59  ;;  %v513_v3 = vrot.slane %v512_v7, 4 }
 0x109   :  { %v399_v15 = vmul.f32 0.015625, %v265_v58  ;;  %v254_v50 = vadd.f32 %v253_v62, %v252_v52  ;;  %v1557_v41 = vand.u32 2147483648, %v3956_v59  ;;  %v3976_v27 = vsub.f32 %v3912_v46, %v684_v23 }
 0x10a   :  { %v3972_v60 = vpop.eup %3144  ;;  %v816_v8 = vrot.slane %v815_v10, 1  ;;  %v524_v1 = vrot.slane %v523_v13, 1  ;;  %v3052_v53 = vmul.f32 -1.442695, %v2169_v17  ;;  %v514_v29 = vadd.f32 %v513_v3, %v512_v7 }
 0x10b   :  { %v3147_v28 = vpop.eup %3146  ;;  %v3979_v11 = vmul.f32 %v399_v15, %v3897_v40  ;;  %v255_v14 = vrot.slane %v254_v50, 2  ;;  %v748_v36 = vmul.f32 %v3976_v27, %v3976_v27  ;;  %v245_v35 = vsel %vm160_vm1, %v3970_v55, 0.0 }
 0x10c   :  { %v1547_v6 = vmul.f32 %v3147_v28, %v3956_v59  ;;  %v817_v12 = vadd.f32 %v816_v8, %v815_v10  ;;  %v525_v37 = vadd.f32 %v524_v1, %v523_v13  ;;  %v515_v46 = vrot.slane %v514_v29, 2 }
 0x10d   :  { %v547_v38 = vsel %vm160_vm1, %v3979_v11, 0.0  ;;  %v256_v24 = vadd.f32 %v255_v14, %v254_v50  ;;  %v3988_v0 = vpop.eup %3148  ;;  %v846_v48 = vsel %vm160_vm1, %v748_v36, 0.0  ;;  %v246_v32 = vrot.slane %v245_v35, 4 }
 0x10e   :  { %v1548_v40 = vsub.f32 1.0, %v1547_v6  ;;  %v3990_v47 = vmul.f32 0.33333334, %v817_v12  ;;  %v548_v4 = vrot.slane %v547_v38, 4  ;;  %v847_v61 = vrot.slane %v846_v48, 4 }
 0x10f   :  { %v683_v33 = vmul.f32 0.25, %v525_v37  ;;  %v516_v22 = vadd.f32 %v515_v46, %v514_v29  ;;  %vm1551_vm4 = vweird.f32 %v3956_v59  ;;  %vm1552_vm5 = vweird.f32 %v3147_v28  ;;  %v1928_v59 = vld [vmem:[%s5648_s1 + $0x7] sm:$0x1] }
 0x110   :  { %v1549_v49 = vmul.f32 %v3147_v28, %v1548_v40  ;;  %3150 = vrsqrt.f32 %v3990_v47  ;;  %vm3995_vm6 = vcmp.eq.f32.partialorder %v1555_v19, 8.507059e+37  ;;  %v1558_v52 = vor.u32 1.1754944e-38, %v1557_v41  ;;  %vm1553_vm7 = vmor %vm1551_vm4, %vm1552_vm5 }
 0x111   :  { %v848_v54 = vadd.f32 %v847_v61, %v846_v48  ;;  %v4000_v16 = vsub.f32 %v3933_v31, %v683_v33  ;;  %v517_v2 = vrot.slane %v516_v22, 1  ;;  %v549_v45 = vadd.f32 %v548_v4, %v547_v38 }
 0x112   :  { %v1550_v42 = vadd.f32 %v3147_v28, %v1549_v49  ;;  %v257_v30 = vrot.slane %v256_v24, 1  ;;  %3152 = vpow2.f32 %v3052_v53  ;;  %v247_v5 = vadd.f32 %v246_v32, %v245_v35 }
 0x113   :  { %v849_v62 = vrot.slane %v848_v54, 2  ;;  %v747_v51 = vmul.f32 %v4000_v16, %v4000_v16  ;;  %v518_v17 = vadd.f32 %v517_v2, %v516_v22  ;;  %v550_v7 = vrot.slane %v549_v45, 2 }
 0x114   :  { %v1554_v9 = vsel %vm1553_vm7, %v3147_v28, %v1550_v42  ;;  %v258_v31 = vadd.f32 %v257_v30, %v256_v24  ;;  %v248_v13 = vrot.slane %v247_v5, 2  ;;  %3154 = vrcp.f32 %v3963_v63 }
 0x115   :  { %v1559_v58 = vsel %vm3995_vm6, %v1558_v52, %v1554_v9  ;;  %v850_v10 = vadd.f32 %v849_v62, %v848_v54  ;;  %v839_v23 = vsel %vm160_vm1, %v747_v51, 0.0  ;;  %v682_v50 = vmul.f32 0.25, %v518_v17  ;;  %v4030_v52 = vpop.xlane.xlu2 %116 }
 0x116   :  { %v3151_v19 = vpop.eup %3150  ;;  %v1944_v3 = vmul.f32 %v1928_v59, %v1559_v58  ;;  %v840_v15 = vrot.slane %v839_v23, 4  ;;  %v551_v41 = vadd.f32 %v550_v7, %v549_v45  ;;  %v398_v53 = vmul.f32 0.015625, %v258_v31 }
 0x117   :  { %v1098_v8 = vmul.f32 %v3151_v19, %v3990_v47  ;;  %v851_v1 = vrot.slane %v850_v10, 1  ;;  %v249_v28 = vadd.f32 %v248_v13, %v247_v5  ;;  %v4013_v14 = vsub.f32 %v3959_v20, %v682_v50  ;;  %v3091_v5 = vld [vmem:[%s5649_s2 + $0x7] ss:$0 sm:$0xff] }
 0x118   :  { %v841_v29 = vadd.f32 %v840_v15, %v839_v23  ;;  %v552_v6 = vrot.slane %v551_v41, 1  ;;  %v3153_v12 = vpop.eup %3152  ;;  %v4016_v37 = vmul.f32 %v398_v53, %v3938_v44  ;;  %3156 = vrcp.f32 %v3965_v21 }
 0x119   :  { %v1099_v36 = vmul.f32 %v3151_v19, %v1098_v8  ;;  %v852_v35 = vadd.f32 %v851_v1, %v850_v10  ;;  %v250_v46 = vrot.slane %v249_v28, 1  ;;  %v746_v24 = vmul.f32 %v4013_v14, %v4013_v14 }
 0x11a   :  { %v842_v38 = vrot.slane %v841_v29, 2  ;;  %v553_v40 = vadd.f32 %v552_v6, %v551_v41  ;;  %v2008_v48 = vperm.slane %v1944_v3, 0  ;;  %v540_v44 = vsel %vm160_vm1, %v4016_v37, 0.0  ;;  %v4032_v54 = vpop.eup %3154 }
 0x11b   :  { %v1100_v4 = vmul.f32 0.5, %v1099_v36  ;;  %v4021_v61 = vmul.f32 0.33333334, %v852_v35  ;;  %v251_v20 = vadd.f32 %v250_v46, %v249_v28  ;;  %v832_v22 = vsel %vm160_vm1, %v746_v24, 0.0 }
 0x11c   :  { %v843_v33 = vadd.f32 %v842_v38, %v841_v29  ;;  %v687_v32 = vmul.f32 0.25, %v553_v40  ;;  %v4027_v49 = vadd.f32 1.0, %v3988_v0  ;;  %v4034_v42 = vadd.f32 1.0, %v3153_v12 }
 0x11d   :  { %v1101_v34 = vsub.f32 1.5, %v1100_v4  ;;  %3158 = vrsqrt.f32 %v4021_v61  ;;  %vm1104_vm8 = vcmp.eq.f32.partialorder %v3990_v47, inf  ;;  %v833_v45 = vrot.slane %v832_v22, 4 }
 0x11e   :  { %v844_v2 = vrot.slane %v843_v33, 1  ;;  %v4038_v59 = vsub.f32 %v3979_v11, %v687_v32  ;;  %v541_v62 = vrot.slane %v540_v44, 4  ;;  %v397_v0 = vmul.f32 0.015625, %v251_v20  ;;  %v4040_v51 = vpop.eup %3156 }
 0x11f   :  { %v1102_v30 = vmul.f32 %v3151_v19, %v1101_v34  ;;  %v2072_v9 = vmul.f32 %v2008_v48, %v3657_v39  ;;  %v834_v7 = vadd.f32 %v833_v45, %v832_v22  ;;  %v280_v31 = vsel %vm160_vm1, %v4030_v52, 0.0  ;;  %v4074_v34 = vpop.xlane.xlu1 %113 }
 0x120   :  { %v845_v17 = vadd.f32 %v844_v2, %v843_v33  ;;  %vm1106_vm9 = vcmp.eq.f32.partialorder %v3990_v47, 0.0  ;;  %v751_v11 = vmul.f32 %v4038_v59, %v4038_v59  ;;  %v542_v10 = vadd.f32 %v541_v62, %v540_v44 }
 0x121   :  { %v1103_v58 = vmul.f32 %v1102_v30, %v3990_v47  ;;  %v1107_v23 = vand.u32 2147483648, %v3990_v47  ;;  %v835_v19 = vrot.slane %v834_v7, 2  ;;  %v4056_v39 = vmul.f32 %v397_v0, %v3970_v55 }
 0x122   :  { %v4053_v13 = vmul.f32 0.33333334, %v845_v17  ;;  %v867_v50 = vsel %vm160_vm1, %v751_v11, 0.0  ;;  %v543_v41 = vrot.slane %v542_v10, 2  ;;  %v281_v8 = vrot.slane %v280_v31, 4 }
 0x123   :  { %v3159_v3 = vpop.eup %3158  ;;  %v1105_v15 = vsel %vm1104_vm8, %v3990_v47, %v1103_v58  ;;  %v2168_v1 = vadd.f32 %v3091_v5, %v2072_v9  ;;  %v836_v55 = vadd.f32 %v835_v19, %v834_v7  ;;  %v868_v47 = vrot.slane %v867_v50, 4 }
 0x124   :  { %v1108_v53 = vsel %vm1106_vm9, %v1107_v23, %v1105_v15  ;;  %v1158_v28 = vmul.f32 %v3159_v3, %v4021_v61  ;;  %3160 = vrsqrt.f32 %v4053_v13  ;;  %v544_v6 = vadd.f32 %v543_v41, %v542_v10 }
 0x125   :  { %3162 = vrcp.f32 %v4027_v49  ;;  %v4065_v29 = vadd.f32 1e-05, %v1108_v53  ;;  %v533_v36 = vsel %vm160_vm1, %v4056_v39, 0.0  ;;  %v282_v35 = vadd.f32 %v281_v8, %v280_v31 }
 0x126   :  { %3164 = vrcp.f32 %v4034_v42  ;;  %v1159_v12 = vmul.f32 %v3159_v3, %v1158_v28  ;;  %v3051_v46 = vmul.f32 -1.442695, %v2168_v1  ;;  %v837_v24 = vrot.slane %v836_v55, 1 }
 0x127   :  { %3166 = vrcp.f32 %v4065_v29  ;;  %v869_v40 = vadd.f32 %v868_v47, %v867_v50  ;;  %vm1164_vm10 = vcmp.eq.f32.partialorder %v4021_v61, inf  ;;  %vm1166_vm11 = vcmp.eq.f32.partialorder %v4021_v61, 0.0 }
 0x128   :  { %v1160_v38 = vmul.f32 0.5, %v1159_v12  ;;  %v545_v48 = vrot.slane %v544_v6, 1  ;;  %v534_v4 = vrot.slane %v533_v36, 4  ;;  %v1167_v22 = vand.u32 2147483648, %v4021_v61 }
 0x129   :  { %v838_v32 = vadd.f32 %v837_v24, %v836_v55  ;;  %v870_v44 = vrot.slane %v869_v40, 2  ;;  %v283_v0 = vrot.slane %v282_v35, 2  ;;  %3168 = vpow2.f32 %v3051_v46 }
 0x12a   :  { %v3161_v20 = vpop.eup %3160  ;;  %v1161_v33 = vsub.f32 1.5, %v1160_v38  ;;  %v546_v30 = vadd.f32 %v545_v48, %v544_v6  ;;  %v535_v62 = vadd.f32 %v534_v4, %v533_v36  ;;  %v4085_v23 = vsel %vm160_vm1, %v4074_v34, 0.0 }
 0x12b   :  { %v4076_v2 = vpop.eup %3162  ;;  %v1146_v45 = vmul.f32 %v3161_v20, %v4053_v13  ;;  %v4081_v17 = vmul.f32 0.33333334, %v838_v32  ;;  %v871_v7 = vadd.f32 %v870_v44, %v869_v40  ;;  %vm1152_vm12 = vcmp.eq.f32.partialorder %v4053_v13, inf }
 0x12c   :  { %v4079_v5 = vpop.eup %3164  ;;  %v1162_v9 = vmul.f32 %v3159_v3, %v1161_v33  ;;  %v686_v11 = vmul.f32 0.25, %v546_v30  ;;  %v536_v10 = vrot.slane %v535_v62, 2  ;;  %v284_v3 = vadd.f32 %v283_v0, %v282_v35 }
 0x12d   :  { %v3167_v31 = vpop.eup %3166  ;;  %v1147_v58 = vmul.f32 %v3161_v20, %v1146_v45  ;;  %3170 = vrsqrt.f32 %v4081_v17  ;;  %v1540_v50 = vand.u32 2147483647, %v4065_v29  ;;  %v1542_v41 = vand.u32 2147483648, %v4065_v29 }
 0x12e   :  { %v1532_v19 = vmul.f32 %v3167_v31, %v4065_v29  ;;  %v1163_v15 = vmul.f32 %v1162_v9, %v4021_v61  ;;  %vm1154_vm13 = vcmp.eq.f32.partialorder %v4053_v13, 0.0  ;;  %v872_v28 = vrot.slane %v871_v7, 1 }
 0x12f   :  { %v1148_v8 = vmul.f32 0.5, %v1147_v58  ;;  %v4098_v55 = vsub.f32 %v4016_v37, %v686_v11  ;;  %vm1537_vm14 = vweird.f32 %v3167_v31  ;;  %v537_v47 = vadd.f32 %v536_v10, %v535_v62  ;;  %v3169_v36 = vpop.eup %3168 }
 0x130   :  { %v1533_v1 = vsub.f32 1.0, %v1532_v19  ;;  %v1165_v53 = vsel %vm1164_vm10, %v4021_v61, %v1163_v15  ;;  %v873_v38 = vadd.f32 %v872_v28, %v871_v7  ;;  %v285_v24 = vrot.slane %v284_v3, 1  ;;  %v1927_v61 = vld [vmem:[%s5648_s1 + $0x6] sm:$0x1] }
 0x131   :  { %v1168_v6 = vsel %vm1166_vm11, %v1167_v22, %v1165_v53  ;;  %v1149_v12 = vsub.f32 1.5, %v1148_v8  ;;  %v1155_v48 = vand.u32 2147483648, %v4053_v13  ;;  %v750_v4 = vmul.f32 %v4098_v55, %v4098_v55  ;;  %v3092_v8 = vld [vmem:[%s5649_s2 + $0x6] ss:$0 sm:$0xff] }
 0x132   :  { %v1534_v35 = vmul.f32 %v3167_v31, %v1533_v1  ;;  %v4102_v46 = vadd.f32 1e-05, %v1168_v6  ;;  %v538_v37 = vrot.slane %v537_v47, 1  ;;  %vm1536_vm15 = vweird.f32 %v4065_v29 }
 0x133   :  { %v1150_v40 = vmul.f32 %v3161_v20, %v1149_v12  ;;  %v3171_v33 = vpop.eup %3170  ;;  %vm1541_vm2 = vcmp.eq.f32.partialorder %v1540_v50, 8.507059e+37  ;;  %vm1538_vm3 = vmor %vm1536_vm15, %vm1537_vm14  ;;  %v1543_v20 = vor.u32 1.1754944e-38, %v1542_v41  ;;  %v4115_v45 = vmul.f32 0.33333334, %v873_v38 }
 0x134   :  { %v1535_v32 = vadd.f32 %v3167_v31, %v1534_v35  ;;  %3172 = vrcp.f32 %v4102_v46  ;;  %v1134_v44 = vmul.f32 %v3171_v33, %v4081_v17  ;;  %v539_v62 = vadd.f32 %v538_v37, %v537_v47 }
 0x135   :  { %v1151_v22 = vmul.f32 %v1150_v40, %v4053_v13  ;;  %v286_v0 = vadd.f32 %v285_v24, %v284_v3  ;;  %v274_v29 = vrot.slane %v4085_v23, 4  ;;  %v860_v11 = vsel %vm160_vm1, %v750_v4, 0.0 }
 0x136   :  { %v1539_v30 = vsel %vm1538_vm3, %v3167_v31, %v1535_v32  ;;  %v1135_v58 = vmul.f32 %v3171_v33, %v1134_v44  ;;  %v4122_v10 = vadd.f32 1.0, %v3169_v36  ;;  %3174 = vrsqrt.f32 %v4115_v45 }
 0x137   :  { %v1544_v9 = vsel %vm1541_vm2, %v1543_v20, %v1539_v30  ;;  %v1153_v7 = vsel %vm1152_vm12, %v4053_v13, %v1151_v22  ;;  %v1615_v31 = vand.u32 2147483647, %v4102_v46  ;;  %vm1140_vm4 = vcmp.eq.f32.partialorder %v4081_v17, inf }
 0x138   :  { %v1943_v19 = vmul.f32 %v1927_v61, %v1544_v9  ;;  %v1156_v15 = vsel %vm1154_vm13, %v1155_v48, %v1153_v7  ;;  %v1136_v50 = vmul.f32 0.5, %v1135_v58  ;;  %vm1142_vm5 = vcmp.eq.f32.partialorder %v4081_v17, 0.0  ;;  %v1932_v58 = vld [vmem:[%s5648_s1 + $0xb] sm:$0x1] }
 0x139   :  { %v4128_v3 = vadd.f32 1e-05, %v1156_v15  ;;  %v861_v53 = vrot.slane %v860_v11, 4  ;;  %v685_v13 = vmul.f32 0.25, %v539_v62  ;;  %v402_v28 = vmul.f32 0.015625, %v286_v0 }
 0x13a   :  { %v3173_v41 = vpop.eup %3172  ;;  %v2007_v1 = vperm.slane %v1943_v19, 0  ;;  %v1143_v12 = vand.u32 2147483648, %v4081_v17  ;;  %v4139_v47 = vadd.f32 %v274_v29, %v4085_v23  ;;  %vm1611_vm6 = vweird.f32 %v4102_v46 }
 0x13b   :  { %v1607_v6 = vmul.f32 %v3173_v41, %v4102_v46  ;;  %3176 = vrcp.f32 %v4128_v3  ;;  %v1617_v35 = vand.u32 2147483648, %v4102_v46  ;;  %v1137_v38 = vsub.f32 1.5, %v1136_v50 }
 0x13c   :  { %v2071_v36 = vmul.f32 %v2007_v1, %v3930_v43  ;;  %vm4144_vm7 = vcmp.eq.f32.partialorder %v1615_v31, 8.507059e+37  ;;  %v862_v48 = vadd.f32 %v861_v53, %v860_v11  ;;  %v4149_v4 = vsub.f32 %v4056_v39, %v685_v13  ;;  %v3175_v37 = vpop.eup %3174 }
 0x13d   :  { %v1608_v24 = vsub.f32 1.0, %v1607_v6  ;;  %vm1612_vm8 = vweird.f32 %v3173_v41  ;;  %v1138_v23 = vmul.f32 %v3171_v33, %v1137_v38  ;;  %v4152_v43 = vmul.f32 %v402_v28, %v4030_v52 }
 0x13e   :  { %v2167_v32 = vadd.f32 %v3092_v8, %v2071_v36  ;;  %v1194_v20 = vmul.f32 %v3175_v37, %v4115_v45  ;;  %v863_v22 = vrot.slane %v862_v48, 2  ;;  %v749_v44 = vmul.f32 %v4149_v4, %v4149_v4  ;;  %vm1613_vm9 = vmor %vm1611_vm6, %vm1612_vm8 }
 0x13f   :  { %v1609_v61 = vmul.f32 %v3173_v41, %v1608_v24  ;;  %v1618_v62 = vor.u32 1.1754944e-38, %v1617_v35  ;;  %v1600_v0 = vand.u32 2147483647, %v4128_v3  ;;  %v1139_v39 = vmul.f32 %v1138_v23, %v4081_v17 }
 0x140   :  { %v3050_v30 = vmul.f32 -1.442695, %v2167_v32  ;;  %v1195_v7 = vmul.f32 %v3175_v37, %v1194_v20  ;;  %v864_v33 = vadd.f32 %v863_v22, %v862_v48  ;;  %v853_v52 = vsel %vm160_vm1, %v749_v44, 0.0  ;;  %v3093_v32 = vld [vmem:[%s5649_s2 + $0xb] ss:$0 sm:$0xff] }
 0x141   :  { %v3177_v29 = vpop.eup %3176  ;;  %v1610_v9 = vadd.f32 %v3173_v41, %v1609_v61  ;;  %v1141_v19 = vsel %vm1140_vm4, %v4081_v17, %v1139_v39  ;;  %v568_v15 = vsel %vm160_vm1, %v4152_v43, 0.0  ;;  %v854_v28 = vrot.slane %v853_v52, 4 }
 0x142   :  { %3178 = vpow2.f32 %v3050_v30  ;;  %v1592_v11 = vmul.f32 %v3177_v29, %v4128_v3  ;;  %v1144_v50 = vsel %vm1142_vm5, %v1143_v12, %v1141_v19  ;;  %v1196_v8 = vmul.f32 0.5, %v1195_v7 }
 0x143   :  { %v1614_v31 = vsel %vm1613_vm9, %v3173_v41, %v1610_v9  ;;  %v865_v1 = vrot.slane %v864_v33, 1  ;;  %v4176_v13 = vadd.f32 1e-05, %v1144_v50  ;;  %v1602_v36 = vand.u32 2147483648, %v4128_v3 }
 0x144   :  { %v1619_v53 = vsel %vm4144_vm7, %v1618_v62, %v1614_v31  ;;  %v1593_v46 = vsub.f32 1.0, %v1592_v11  ;;  %v1197_v35 = vsub.f32 1.5, %v1196_v8  ;;  %vm1597_vm10 = vweird.f32 %v3177_v29 }
 0x145   :  { %v1948_v6 = vmul.f32 %v1932_v58, %v1619_v53  ;;  %v866_v38 = vadd.f32 %v865_v1, %v864_v33  ;;  %3180 = vrcp.f32 %v4176_v13  ;;  %v569_v17 = vrot.slane %v568_v15, 4 }
 0x146   :  { %v1594_v24 = vmul.f32 %v3177_v29, %v1593_v46  ;;  %v1198_v12 = vmul.f32 %v3175_v37, %v1197_v35  ;;  %vm1200_vm11 = vcmp.eq.f32.partialorder %v4115_v45, inf  ;;  %vm1596_vm12 = vweird.f32 %v4128_v3  ;;  %v1931_v37 = vld [vmem:[%s5648_s1 + $0xa] sm:$0x1] }
 0x147   :  { %v2012_v41 = vperm.slane %v1948_v6, 0  ;;  %v4181_v40 = vmul.f32 0.33333334, %v866_v38  ;;  %v1203_v61 = vand.u32 2147483648, %v4115_v45  ;;  %v855_v20 = vadd.f32 %v854_v28, %v853_v52  ;;  %vm1598_vm13 = vmor %vm1596_vm12, %vm1597_vm10  ;;  %v4219_v38 = vpop.xlane.xlu0 %110 }
 0x148   :  { %v3179_v48 = vpop.eup %3178  ;;  %v1595_v23 = vadd.f32 %v3177_v29, %v1594_v24  ;;  %vm1601_vm14 = vcmp.eq.f32.partialorder %v1600_v0, 8.507059e+37  ;;  %v1603_v44 = vor.u32 1.1754944e-38, %v1602_v36  ;;  %v1199_v30 = vmul.f32 %v1198_v12, %v4115_v45  ;;  %v3094_v36 = vld [vmem:[%s5649_s2 + $0xa] ss:$0 sm:$0xff] }
 0x149   :  { %v2076_v22 = vmul.f32 %v2012_v41, %v3976_v27  ;;  %3182 = vrsqrt.f32 %v4181_v40  ;;  %v570_v39 = vadd.f32 %v569_v17, %v568_v15  ;;  %v276_v3 = vrot.slane %v4139_v47, 2 }
 0x14a   :  { %v1599_v62 = vsel %vm1598_vm13, %v3177_v29, %v1595_v23  ;;  %v1585_v7 = vand.u32 2147483647, %v4176_v13  ;;  %v1201_v27 = vsel %vm1200_vm11, %v4115_v45, %v1199_v30  ;;  %vm1202_vm15 = vcmp.eq.f32.partialorder %v4115_v45, 0.0 }
 0x14b   :  { %v1604_v9 = vsel %vm1601_vm14, %v1603_v44, %v1599_v62  ;;  %v3181_v33 = vpop.eup %3180  ;;  %v2172_v0 = vadd.f32 %v3093_v32, %v2076_v22  ;;  %v1204_v58 = vsel %vm1202_vm15, %v1203_v61, %v1201_v27  ;;  %v856_v11 = vrot.slane %v855_v20, 2  ;;  %v4233_v62 = vpop.xlane.xlu2 %125 }
 0x14c   :  { %v1947_v52 = vmul.f32 %v1931_v37, %v1604_v9  ;;  %v4201_v29 = vadd.f32 1.0, %v3179_v48  ;;  %v1577_v19 = vmul.f32 %v3181_v33, %v4176_v13  ;;  %v1587_v15 = vand.u32 2147483648, %v4176_v13  ;;  %v1930_v37 = vld [vmem:[%s5648_s1 + $0x9] sm:$0x1] }
 0x14d   :  { %v4205_v31 = vadd.f32 1e-05, %v1204_v58  ;;  %v857_v8 = vadd.f32 %v856_v11, %v855_v20  ;;  %v571_v1 = vrot.slane %v570_v39, 2  ;;  %v277_v53 = vadd.f32 %v276_v3, %v4139_v47 }
 0x14e   :  { %5691 = vst [vmem:[#allocation8_spill] sm:$0xff] %v4201_v29  ;;  %v2011_v50 = vperm.slane %v1947_v52, 0  ;;  %3184 = vrcp.f32 %v4122_v10  ;;  %v1578_v45 = vsub.f32 1.0, %v1577_v19  ;;  %vm1581_vm2 = vweird.f32 %v4176_v13 }
 0x14f   :  { %vm4210_vm3 = vcmp.eq.f32.partialorder %v1585_v7, 8.507059e+37  ;;  %v3183_v28 = vpop.eup %3182  ;;  %v3055_v6 = vmul.f32 -1.442695, %v2172_v0  ;;  %3186 = vrcp.f32 %v4205_v31  ;;  %v858_v47 = vrot.slane %v857_v8, 1 }
 0x150   :  { %v2075_v35 = vmul.f32 %v2011_v50, %v4000_v16  ;;  %v1579_v24 = vmul.f32 %v3181_v33, %v1578_v45  ;;  %vm1582_vm4 = vweird.f32 %v3181_v33  ;;  %v1182_v17 = vmul.f32 %v3183_v28, %v4181_v40 }
 0x151   :  { %v572_v41 = vadd.f32 %v571_v1, %v570_v39  ;;  %3188 = vrcp.f32 %v4201_v29  ;;  %v1588_v12 = vor.u32 1.1754944e-38, %v1587_v15  ;;  %v859_v48 = vadd.f32 %v858_v47, %v857_v8  ;;  %vm1583_vm5 = vmor %vm1581_vm2, %vm1582_vm4 }
 0x152   :  { %v278_v32 = vrot.slane %v277_v53, 1  ;;  %v1580_v23 = vadd.f32 %v3181_v33, %v1579_v24  ;;  %v1183_v61 = vmul.f32 %v3183_v28, %v1182_v17  ;;  %v266_v16 = vsel %vm160_vm1, %v4219_v38, 0.0 }
 0x153   :  { %v573_v20 = vrot.slane %v572_v41, 1  ;;  %3190 = vpow2.f32 %v3055_v6  ;;  %v2171_v22 = vadd.f32 %v3094_v36, %v2075_v35  ;;  %v1660_v44 = vand.u32 2147483647, %v4205_v31 }
 0x154   :  { %vm1188_vm6 = vcmp.eq.f32.partialorder %v4181_v40, inf  ;;  %v1191_v30 = vand.u32 2147483648, %v4181_v40  ;;  %v4235_v39 = vpop.eup %3184  ;;  %v1584_v3 = vsel %vm1583_vm5, %v3181_v33, %v1580_v23  ;;  %v1184_v9 = vmul.f32 0.5, %v1183_v61 }
 0x155   :  { %vm1190_vm7 = vcmp.eq.f32.partialorder %v4181_v40, 0.0  ;;  %v4238_v7 = vmul.f32 0.33333334, %v859_v48  ;;  %v574_v27 = vadd.f32 %v573_v20, %v572_v41  ;;  %v3187_v0 = vpop.eup %3186  ;;  %v1589_v13 = vsel %vm4210_vm3, %v1588_v12, %v1584_v3  ;;  %v3095_v12 = vld [vmem:[%s5649_s2 + $0x9] ss:$0 sm:$0xff] }
 0x156   :  { %vm1656_vm8 = vweird.f32 %v4205_v31  ;;  %v279_v52 = vadd.f32 %v278_v32, %v277_v53  ;;  %v267_v58 = vrot.slane %v266_v16, 4  ;;  %v1946_v11 = vmul.f32 %v1930_v37, %v1589_v13  ;;  %v1935_v37 = vld [vmem:[%s5648_s1 + $0xe] sm:$0x1] }
 0x157   :  { %v1652_v19 = vmul.f32 %v3187_v0, %v4205_v31  ;;  %v1185_v15 = vsub.f32 1.5, %v1184_v9  ;;  %v301_v33 = vsel %vm160_vm1, %v4233_v62, 0.0  ;;  %v4246_v50 = vpop.eup %3188  ;;  %v3054_v8 = vmul.f32 -1.442695, %v2171_v22 }
 0x158   :  { %5694 = vst [vmem:[#allocation9_spill] sm:$0xff] %v4246_v50  ;;  %vm4248_vm9 = vcmp.eq.f32.partialorder %v1660_v44, 8.507059e+37  ;;  %v1662_v45 = vand.u32 2147483648, %v4205_v31  ;;  %v690_v46 = vmul.f32 0.25, %v574_v27  ;;  %v2010_v6 = vperm.slane %v1946_v11, 0 }
 0x159   :  { %v1653_v53 = vsub.f32 1.0, %v1652_v19  ;;  %v1186_v36 = vmul.f32 %v3183_v28, %v1185_v15  ;;  %3192 = vrsqrt.f32 %v4238_v7  ;;  %v3191_v35 = vpop.eup %3190  ;;  %v401_v24 = vmul.f32 0.015625, %v279_v52 }
 0x15a   :  { %v4255_v47 = vsub.f32 %v4152_v43, %v690_v46  ;;  %v268_v17 = vadd.f32 %v267_v58, %v266_v16  ;;  %v302_v41 = vrot.slane %v301_v33, 4  ;;  %v2074_v48 = vmul.f32 %v2010_v6, %v4013_v14 }
 0x15b   :  { %v1654_v32 = vmul.f32 %v3187_v0, %v1653_v53  ;;  %vm1657_vm10 = vweird.f32 %v3187_v0  ;;  %v1187_v23 = vmul.f32 %v1186_v36, %v4181_v40  ;;  %3194 = vpow2.f32 %v3054_v8  ;;  %v4288_v8 = vpop.xlane.xlu1 %122 }
 0x15c   :  { %v754_v28 = vmul.f32 %v4255_v47, %v4255_v47  ;;  %v4265_v43 = vmul.f32 %v401_v24, %v4074_v34  ;;  %v269_v61 = vrot.slane %v268_v17, 2  ;;  %v4267_v20 = vadd.f32 1.0, %v3191_v35  ;;  %vm1658_vm11 = vmor %vm1656_vm8, %vm1657_vm10 }
 0x15d   :  { %v1655_v16 = vadd.f32 %v3187_v0, %v1654_v32  ;;  %v1663_v22 = vor.u32 1.1754944e-38, %v1662_v45  ;;  %v1189_v14 = vsel %vm1188_vm6, %v4181_v40, %v1187_v23  ;;  %v303_v9 = vadd.f32 %v302_v41, %v301_v33  ;;  %v3096_v23 = vld [vmem:[%s5649_s2 + $0xe] ss:$0 sm:$0xff] }
 0x15e   :  { %v1192_v34 = vsel %vm1190_vm7, %v1191_v30, %v1189_v14  ;;  %v888_v44 = vsel %vm160_vm1, %v754_v28, 0.0  ;;  %v561_v3 = vsel %vm160_vm1, %v4265_v43, 0.0  ;;  %v2170_v13 = vadd.f32 %v3095_v12, %v2074_v48 }
 0x15f   :  { %v3193_v27 = vpop.eup %3192  ;;  %v1659_v52 = vsel %vm1658_vm11, %v3187_v0, %v1655_v16  ;;  %v4282_v58 = vadd.f32 1e-05, %v1192_v34  ;;  %v270_v11 = vadd.f32 %v269_v61, %v268_v17  ;;  %v889_v15 = vrot.slane %v888_v44, 4 }
 0x160   :  { %v1664_v19 = vsel %vm4248_vm9, %v1663_v22, %v1659_v52  ;;  %v1170_v31 = vmul.f32 %v3193_v27, %v4238_v7  ;;  %v562_v40 = vrot.slane %v561_v3, 4  ;;  %3196 = vrcp.f32 %v4267_v20 }
 0x161   :  { %v1951_v30 = vmul.f32 %v1935_v37, %v1664_v19  ;;  %v3195_v45 = vpop.eup %3194  ;;  %3198 = vrcp.f32 %v4282_v58  ;;  %v890_v0 = vadd.f32 %v889_v15, %v888_v44  ;;  %v3053_v46 = vmul.f32 -1.442695, %v2170_v13 }
 0x162   :  { %v1171_v33 = vmul.f32 %v3193_v27, %v1170_v31  ;;  %vm1176_vm12 = vcmp.eq.f32.partialorder %v4238_v7, inf  ;;  %v563_v1 = vadd.f32 %v562_v40, %v561_v3  ;;  %v271_v53 = vrot.slane %v270_v11, 1 }
 0x163   :  { %v2015_v6 = vperm.slane %v1951_v30, 0  ;;  %vm1178_vm13 = vcmp.eq.f32.partialorder %v4238_v7, 0.0  ;;  %v891_v35 = vrot.slane %v890_v0, 2  ;;  %v304_v24 = vrot.slane %v303_v9, 2 }
 0x164   :  { %v1172_v36 = vmul.f32 0.5, %v1171_v33  ;;  %v294_v17 = vsel %vm160_vm1, %v4288_v8, 0.0  ;;  %v4295_v41 = vadd.f32 1.0, %v3195_v45  ;;  %v1179_v12 = vand.u32 2147483648, %v4238_v7 }
 0x165   :  { %v564_v48 = vrot.slane %v563_v1, 2  ;;  %v272_v32 = vadd.f32 %v271_v53, %v270_v11  ;;  %v2079_v28 = vmul.f32 %v2015_v6, %v4038_v59  ;;  %v892_v16 = vadd.f32 %v891_v35, %v890_v0 }
 0x166   :  { %v1173_v61 = vsub.f32 1.5, %v1172_v36  ;;  %v305_v22 = vadd.f32 %v304_v24, %v303_v9  ;;  %v4302_v14 = vpop.eup %3196  ;;  %3200 = vpow2.f32 %v3053_v46  ;;  %v295_v44 = vrot.slane %v294_v17, 4 }
 0x167   :  { %5697 = vst [vmem:[#allocation10_spill] sm:$0xff] %v4302_v14  ;;  %v565_v37 = vadd.f32 %v564_v48, %v563_v1  ;;  %v400_v34 = vmul.f32 0.015625, %v272_v32  ;;  %v3199_v3 = vpop.eup %3198  ;;  %vm1641_vm14 = vweird.f32 %v4282_v58  ;;  %v893_v52 = vrot.slane %v892_v16, 1  ;;  %v4321_v32 = vpop.xlane.xlu0 %119 }
 0x168   :  { %v1174_v13 = vmul.f32 %v3193_v27, %v1173_v61  ;;  %v306_v11 = vrot.slane %v305_v22, 1  ;;  %v1637_v19 = vmul.f32 %v3199_v3, %v4282_v58  ;;  %v1645_v31 = vand.u32 2147483647, %v4282_v58 }
 0x169   :  { %v1647_v59 = vand.u32 2147483648, %v4282_v58  ;;  %v566_v15 = vrot.slane %v565_v37, 1  ;;  %v2175_v9 = vadd.f32 %v3096_v23, %v2079_v28  ;;  %v894_v30 = vadd.f32 %v893_v52, %v892_v16 }
 0x16a   :  { %v1175_v40 = vmul.f32 %v1174_v13, %v4238_v7  ;;  %v4310_v45 = vmul.f32 %v400_v34, %v4219_v38  ;;  %v1638_v33 = vsub.f32 1.0, %v1637_v19  ;;  %vm1642_vm15 = vweird.f32 %v3199_v3 }
 0x16b   :  { %v567_v0 = vadd.f32 %v566_v15, %v565_v37  ;;  %v296_v27 = vadd.f32 %v295_v44, %v294_v17  ;;  %v4315_v6 = vmul.f32 0.33333334, %v894_v30  ;;  %v307_v53 = vadd.f32 %v306_v11, %v305_v22  ;;  %v1934_v37 = vld [vmem:[%s5648_s1 + $0xd] sm:$0x1]  ;;  %vm1643_vm3 = vmor %vm1641_vm14, %vm1642_vm15 }
 0x16c   :  { %v1177_v46 = vsel %vm1176_vm12, %v4238_v7, %v1175_v40  ;;  %v554_v1 = vsel %vm160_vm1, %v4310_v45, 0.0  ;;  %v3201_v36 = vpop.eup %3200  ;;  %v1639_v35 = vmul.f32 %v3199_v3, %v1638_v33  ;;  %v3058_v17 = vmul.f32 -1.442695, %v2175_v9 }
 0x16d   :  { %v1180_v38 = vsel %vm1178_vm13, %v1179_v12, %v1177_v46  ;;  %v689_v24 = vmul.f32 0.25, %v567_v0  ;;  %v555_v48 = vrot.slane %v554_v1, 4  ;;  %vm4323_vm2 = vcmp.eq.f32.partialorder %v1645_v31, 8.507059e+37 }
 0x16e   :  { %v4327_v28 = vadd.f32 1e-05, %v1180_v38  ;;  %3202 = vrsqrt.f32 %v4315_v6  ;;  %v1640_v61 = vadd.f32 %v3199_v3, %v1639_v35  ;;  %v1648_v16 = vor.u32 1.1754944e-38, %v1647_v59 }
 0x16f   :  { %v4331_v22 = vsub.f32 %v4265_v43, %v689_v24  ;;  %v556_v7 = vadd.f32 %v555_v48, %v554_v1  ;;  %v4333_v12 = vadd.f32 1.0, %v3201_v36  ;;  %v297_v34 = vrot.slane %v296_v27, 2 }
 0x170   :  { %3204 = vrcp.f32 %v4327_v28  ;;  %v287_v44 = vsel %vm160_vm1, %v4321_v32, 0.0  ;;  %v1644_v13 = vsel %vm1643_vm3, %v3199_v3, %v1640_v61  ;;  %v405_v11 = vmul.f32 0.015625, %v307_v53 }
 0x171   :  { %5700 = vst [vmem:[#allocation11_spill] sm:$0xff] %v4333_v12  ;;  %v753_v43 = vmul.f32 %v4331_v22, %v4331_v22  ;;  %v557_v52 = vrot.slane %v556_v7, 2  ;;  %3206 = vpow2.f32 %v3058_v17  ;;  %v1649_v19 = vsel %vm4323_vm2, %v1648_v16, %v1644_v13 }
 0x172   :  { %v1630_v31 = vand.u32 2147483647, %v4327_v28  ;;  %v1632_v58 = vand.u32 2147483648, %v4327_v28  ;;  %v1950_v59 = vmul.f32 %v1934_v37, %v1649_v19  ;;  %v4352_v40 = vmul.f32 %v405_v11, %v4233_v62 }
 0x173   :  { %v881_v15 = vsel %vm160_vm1, %v753_v43, 0.0  ;;  %v558_v9 = vadd.f32 %v557_v52, %v556_v7  ;;  %v1239_v30 = vand.u32 2147483648, %v4315_v6  ;;  %v298_v0 = vadd.f32 %v297_v34, %v296_v27  ;;  %v3097_v52 = vld [vmem:[%s5649_s2 + $0xd] ss:$0 sm:$0xff] }
 0x174   :  { %v3203_v3 = vpop.eup %3202  ;;  %v882_v33 = vrot.slane %v881_v15, 4  ;;  %v288_v46 = vrot.slane %v287_v44, 4  ;;  %v2014_v1 = vperm.slane %v1950_v59, 0  ;;  %vm1626_vm4 = vweird.f32 %v4327_v28 }
 0x175   :  { %v1230_v53 = vmul.f32 %v3203_v3, %v4315_v6  ;;  %v559_v36 = vrot.slane %v558_v9, 1  ;;  %v589_v35 = vsel %vm160_vm1, %v4352_v40, 0.0  ;;  %v299_v62 = vrot.slane %v298_v0, 1 }
 0x176   :  { %v3205_v38 = vpop.eup %3204  ;;  %v883_v24 = vadd.f32 %v882_v33, %v881_v15  ;;  %v590_v48 = vrot.slane %v589_v35, 4  ;;  %v289_v17 = vadd.f32 %v288_v46, %v287_v44  ;;  %vm4360_vm5 = vcmp.eq.f32.partialorder %v1630_v31, 8.507059e+37 }
 0x177   :  { %v1622_v23 = vmul.f32 %v3205_v38, %v4327_v28  ;;  %v1633_v27 = vor.u32 1.1754944e-38, %v1632_v58  ;;  %v1231_v16 = vmul.f32 %v3203_v3, %v1230_v53  ;;  %v3207_v7 = vpop.eup %3206  ;;  %vm1236_vm6 = vcmp.eq.f32.partialorder %v4315_v6, inf }
 0x178   :  { %v884_v37 = vrot.slane %v883_v24, 2  ;;  %v560_v34 = vadd.f32 %v559_v36, %v558_v9  ;;  %v591_v13 = vadd.f32 %v590_v48, %v589_v35  ;;  %v300_v43 = vadd.f32 %v299_v62, %v298_v0 }
 0x179   :  { %v2078_v44 = vmul.f32 %v2014_v1, %v4098_v55  ;;  %v1623_v11 = vsub.f32 1.0, %v1622_v23  ;;  %v1232_v19 = vmul.f32 0.5, %v1231_v16  ;;  %vm1238_vm7 = vcmp.eq.f32.partialorder %v4315_v6, 0.0 }
 0x17a   :  { %v290_v31 = vrot.slane %v289_v17, 2  ;;  %v885_v58 = vadd.f32 %v884_v37, %v883_v24  ;;  %v688_v59 = vmul.f32 0.25, %v560_v34  ;;  %v592_v15 = vrot.slane %v591_v13, 2  ;;  %v1933_v24 = vld [vmem:[%s5648_s1 + $0xc] sm:$0x1] }
 0x17b   :  { %v404_v33 = vmul.f32 0.015625, %v300_v43  ;;  %v1624_v46 = vmul.f32 %v3205_v38, %v1623_v11  ;;  %vm1627_vm8 = vweird.f32 %v3205_v38  ;;  %v1233_v9 = vsub.f32 1.5, %v1232_v19 }
 0x17c   :  { %v291_v53 = vadd.f32 %v290_v31, %v289_v17  ;;  %v886_v0 = vrot.slane %v885_v58, 1  ;;  %v4371_v36 = vsub.f32 %v4310_v45, %v688_v59  ;;  %v593_v35 = vadd.f32 %v592_v15, %v591_v13  ;;  %vm1628_vm9 = vmor %vm1626_vm4, %vm1627_vm8 }
 0x17d   :  { %v4374_v55 = vmul.f32 %v404_v33, %v4288_v8  ;;  %v2174_v1 = vadd.f32 %v3097_v52, %v2078_v44  ;;  %v1625_v48 = vadd.f32 %v3205_v38, %v1624_v46  ;;  %v1234_v62 = vmul.f32 %v3203_v3, %v1233_v9 }
 0x17e   :  { %v292_v23 = vrot.slane %v291_v53, 1  ;;  %v887_v17 = vadd.f32 %v886_v0, %v885_v58  ;;  %v752_v45 = vmul.f32 %v4371_v36, %v4371_v36  ;;  %v594_v16 = vrot.slane %v593_v35, 1 }
 0x17f   :  { %v582_v8 = vsel %vm160_vm1, %v4374_v55, 0.0  ;;  %v1629_v37 = vsel %vm1628_vm9, %v3205_v38, %v1625_v48  ;;  %v1235_v34 = vmul.f32 %v1234_v62, %v4315_v6  ;;  %v4394_v38 = vadd.f32 1.0, %v3207_v7 }
 0x180   :  { %v583_v3 = vrot.slane %v582_v8, 4  ;;  %v293_v13 = vadd.f32 %v292_v23, %v291_v53  ;;  %v1634_v43 = vsel %vm4360_vm5, %v1633_v27, %v1629_v37  ;;  %v4388_v52 = vmul.f32 0.33333334, %v887_v17  ;;  %v4406_v53 = vpop.xlane.xlu2 %134 }
 0x181   :  { %v874_v28 = vsel %vm160_vm1, %v752_v45, 0.0  ;;  %v595_v44 = vadd.f32 %v594_v16, %v593_v35  ;;  %v1949_v11 = vmul.f32 %v1933_v24, %v1634_v43  ;;  %v1237_v19 = vsel %vm1236_vm6, %v4315_v6, %v1235_v34  ;;  %5703 = vst [vmem:[#allocation12_spill] sm:$0xff] %v4394_v38 }
 0x182   :  { %v875_v31 = vrot.slane %v874_v28, 4  ;;  %v584_v58 = vadd.f32 %v583_v3, %v582_v8  ;;  %v1240_v61 = vsel %vm1238_vm7, %v1239_v30, %v1237_v19  ;;  %3208 = vrsqrt.f32 %v4388_v52  ;;  %v3098_v19 = vld [vmem:[%s5649_s2 + $0xc] ss:$0 sm:$0xff] }
 0x183   :  { %3210 = vrcp.f32 %v4295_v41  ;;  %v3057_v27 = vmul.f32 -1.442695, %v2174_v1  ;;  %v4402_v59 = vadd.f32 1e-05, %v1240_v61  ;;  %v693_v33 = vmul.f32 0.25, %v595_v44 }
 0x184   :  { %v876_v15 = vadd.f32 %v875_v31, %v874_v28  ;;  %3212 = vrcp.f32 %v4333_v12  ;;  %v585_v46 = vrot.slane %v584_v58, 2  ;;  %v403_v9 = vmul.f32 0.015625, %v293_v13 }
 0x185   :  { %v2013_v7 = vperm.slane %v1949_v11, 0  ;;  %3214 = vrcp.f32 %v4402_v59  ;;  %v4410_v30 = vsub.f32 %v4352_v40, %v693_v33  ;;  %v322_v24 = vsel %vm160_vm1, %v4406_v53, 0.0 }
 0x186   :  { %3216 = vrcp.f32 %v4394_v38  ;;  %v877_v6 = vrot.slane %v876_v15, 2  ;;  %v586_v0 = vadd.f32 %v585_v46, %v584_v58  ;;  %v4413_v35 = vmul.f32 %v403_v9, %v4321_v32 }
 0x187   :  { %3218 = vpow2.f32 %v3057_v27  ;;  %v757_v23 = vmul.f32 %v4410_v30, %v4410_v30  ;;  %v2077_v40 = vmul.f32 %v2013_v7, %v4149_v4  ;;  %v323_v13 = vrot.slane %v322_v24, 4 }
 0x188   :  { %v3209_v1 = vpop.eup %3208  ;;  %v878_v62 = vadd.f32 %v877_v6, %v876_v15  ;;  %v587_v16 = vrot.slane %v586_v0, 1  ;;  %v575_v32 = vsel %vm160_vm1, %v4413_v35, 0.0  ;;  %vm1701_vm10 = vweird.f32 %v4402_v59 }
 0x189   :  { %v4420_v17 = vpop.eup %3210  ;;  %v1218_v45 = vmul.f32 %v3209_v1, %v4388_v52  ;;  %v909_v34 = vsel %vm160_vm1, %v757_v23, 0.0  ;;  %v576_v3 = vrot.slane %v575_v32, 4  ;;  %v1705_v58 = vand.u32 2147483647, %v4402_v59 }
 0x18a   :  { %v4426_v8 = vpop.eup %3212  ;;  %v879_v37 = vrot.slane %v878_v62, 1  ;;  %v910_v44 = vrot.slane %v909_v34, 4  ;;  %v588_v11 = vadd.f32 %v587_v16, %v586_v0  ;;  %vm1224_vm11 = vcmp.eq.f32.partialorder %v4388_v52, inf  ;;  %v4442_v16 = vpop.xlane.xlu1 %131 }
 0x18b   :  { %5704 = vst [vmem:[#allocation13_spill] sm:$0xff] %v4426_v8  ;;  %v3215_v43 = vpop.eup %3214  ;;  %v1219_v28 = vmul.f32 %v3209_v1, %v1218_v45  ;;  %v577_v27 = vadd.f32 %v576_v3, %v575_v32  ;;  %vm1226_vm12 = vcmp.eq.f32.partialorder %v4388_v52, 0.0  ;;  %v324_v7 = vadd.f32 %v323_v13, %v322_v24 }
 0x18c   :  { %v4430_v4 = vpop.eup %3216  ;;  %v1697_v31 = vmul.f32 %v3215_v43, %v4402_v59  ;;  %v880_v61 = vadd.f32 %v879_v37, %v878_v62  ;;  %v911_v46 = vadd.f32 %v910_v44, %v909_v34  ;;  %v692_v9 = vmul.f32 0.25, %v588_v11 }
 0x18d   :  { %5705 = vst [vmem:[#allocation14_spill] sm:$0xff] %v4430_v4  ;;  %v3219_v15 = vpop.eup %3218  ;;  %v1220_v33 = vmul.f32 0.5, %v1219_v28  ;;  %v1707_v0 = vand.u32 2147483648, %v4402_v59  ;;  %v578_v45 = vrot.slane %v577_v27, 2  ;;  %v325_v32 = vrot.slane %v324_v7, 2 }
 0x18e   :  { %v1698_v6 = vsub.f32 1.0, %v1697_v31  ;;  %v4440_v23 = vmul.f32 0.33333334, %v880_v61  ;;  %v912_v8 = vrot.slane %v911_v46, 2  ;;  %v4445_v62 = vsub.f32 %v4374_v55, %v692_v9  ;;  %v3356_v59 = vld [vmem:[%s5648_s1 + $0x1] sm:$0x1] }
 0x18f   :  { %v1221_v48 = vsub.f32 1.5, %v1220_v33  ;;  %v2173_v37 = vadd.f32 %v3098_v19, %v2077_v40  ;;  %vm1702_vm13 = vweird.f32 %v3215_v43  ;;  %v315_v28 = vsel %vm160_vm1, %v4442_v16, 0.0 }
 0x190   :  { %v1699_v3 = vmul.f32 %v3215_v43, %v1698_v6  ;;  %3220 = vrsqrt.f32 %v4440_v23  ;;  %v913_v34 = vadd.f32 %v912_v8, %v911_v46  ;;  %v756_v13 = vmul.f32 %v4445_v62, %v4445_v62  ;;  %vm1703_vm15 = vmor %vm1701_vm10, %vm1702_vm13 }
 0x191   :  { %v1222_v24 = vmul.f32 %v3209_v1, %v1221_v48  ;;  %vm1706_vm14 = vcmp.eq.f32.partialorder %v1705_v58, 8.507059e+37  ;;  %v579_v11 = vadd.f32 %v578_v45, %v577_v27  ;;  %v326_v31 = vadd.f32 %v325_v32, %v324_v7 }
 0x192   :  { %v1700_v44 = vadd.f32 %v3215_v43, %v1699_v3  ;;  %v1708_v55 = vor.u32 1.1754944e-38, %v1707_v0  ;;  %v914_v19 = vrot.slane %v913_v34, 1  ;;  %v902_v1 = vsel %vm160_vm1, %v756_v13, 0.0 }
 0x193   :  { %v1223_v40 = vmul.f32 %v1222_v24, %v4388_v52  ;;  %v903_v8 = vrot.slane %v902_v1, 4  ;;  %v580_v61 = vrot.slane %v579_v11, 1  ;;  %v316_v33 = vrot.slane %v315_v28, 4 }
 0x194   :  { %v1704_v48 = vsel %vm1703_vm15, %v3215_v43, %v1700_v44  ;;  %v915_v27 = vadd.f32 %v914_v19, %v913_v34  ;;  %v327_v9 = vrot.slane %v326_v31, 1  ;;  %v5706_v0 = vand.u32 2147483648, %v4388_v52 }
 0x195   :  { %v1709_v46 = vsel %vm1706_vm14, %v1708_v55, %v1704_v48  ;;  %v1225_v58 = vsel %vm1224_vm11, %v4388_v52, %v1223_v40  ;;  %v904_v45 = vadd.f32 %v903_v8, %v902_v1  ;;  %v581_v32 = vadd.f32 %v580_v61, %v579_v11 }
 0x196   :  { %v3221_v7 = vpop.eup %3220  ;;  %v1954_v6 = vmul.f32 %v3356_v59, %v1709_v46  ;;  %v1228_v43 = vsel %vm1226_vm12, %v5706_v0, %v1225_v58  ;;  %v4466_v3 = vadd.f32 1.0, %v3219_v15  ;;  %v4471_v13 = vmul.f32 0.33333334, %v915_v27 }
 0x197   :  { %v4468_v24 = vadd.f32 1e-05, %v1228_v43  ;;  %v1206_v34 = vmul.f32 %v3221_v7, %v4440_v23  ;;  %v3056_v44 = vmul.f32 -1.442695, %v2173_v37  ;;  %v905_v40 = vrot.slane %v904_v45, 2 }
 0x198   :  { %5707 = vst [vmem:[#allocation15_spill] sm:$0xff] %v4466_v3  ;;  %v2018_v55 = vperm.slane %v1954_v6, 0  ;;  %v691_v19 = vmul.f32 0.25, %v581_v32  ;;  %v328_v48 = vadd.f32 %v327_v9, %v326_v31  ;;  %v317_v46 = vadd.f32 %v316_v33, %v315_v28  ;;  %v4482_v28 = vpop.xlane.xlu0 %128 }
 0x199   :  { %3222 = vrcp.f32 %v4468_v24  ;;  %v1207_v52 = vmul.f32 %v3221_v7, %v1206_v34  ;;  %v906_v1 = vadd.f32 %v905_v40, %v904_v45  ;;  %vm1212_vm2 = vcmp.eq.f32.partialorder %v4440_v23, inf }
 0x19a   :  { %3224 = vrsqrt.f32 %v4471_v13  ;;  %v2082_v15 = vmul.f32 %v2018_v55, %v4255_v47  ;;  %v4478_v8 = vsub.f32 %v4413_v35, %v691_v19  ;;  %vm1214_vm3 = vcmp.eq.f32.partialorder %v4440_v23, 0.0  ;;  %v3357_v35 = vld [vmem:[%s5649_s2 + $0x1] ss:$0 sm:$0xff] }
 0x19b   :  { %3226 = vrcp.f32 %v4466_v3  ;;  %v1208_v11 = vmul.f32 0.5, %v1207_v52  ;;  %v408_v37 = vmul.f32 0.015625, %v328_v48  ;;  %v318_v31 = vrot.slane %v317_v46, 2 }
 0x19c   :  { %3228 = vpow2.f32 %v3056_v44  ;;  %v1215_v33 = vand.u32 2147483648, %v4440_v23  ;;  %v907_v58 = vrot.slane %v906_v1, 1  ;;  %v755_v47 = vmul.f32 %v4478_v8, %v4478_v8 }
 0x19d   :  { %v1209_v61 = vsub.f32 1.5, %v1208_v11  ;;  %v2178_v9 = vadd.f32 %v3357_v35, %v2082_v15  ;;  %v1690_v59 = vand.u32 2147483647, %v4468_v24  ;;  %v1692_v6 = vand.u32 2147483648, %v4468_v24 }
 0x19e   :  { %v4493_v0 = vmul.f32 %v408_v37, %v4406_v53  ;;  %v319_v34 = vadd.f32 %v318_v31, %v317_v46  ;;  %v308_v44 = vsel %vm160_vm1, %v4482_v28, 0.0  ;;  %v908_v19 = vadd.f32 %v907_v58, %v906_v1 }
 0x19f   :  { %v3223_v27 = vpop.eup %3222  ;;  %v1210_v32 = vmul.f32 %v3221_v7, %v1209_v61  ;;  %v895_v48 = vsel %vm160_vm1, %v755_v47, 0.0  ;;  %v309_v61 = vrot.slane %v308_v44, 4  ;;  %vm1686_vm5 = vweird.f32 %v4468_v24 }
 0x1a0   :  { %v3225_v43 = vpop.eup %3224  ;;  %v1682_v45 = vmul.f32 %v3223_v27, %v4468_v24  ;;  %v610_v52 = vsel %vm160_vm1, %v4493_v0, 0.0  ;;  %v896_v37 = vrot.slane %v895_v48, 4  ;;  %vm1687_vm4 = vweird.f32 %v3223_v27 }
 0x1a1   :  { %v4498_v55 = vpop.eup %3226  ;;  %v1266_v40 = vmul.f32 %v3225_v43, %v4471_v13  ;;  %v1211_v11 = vmul.f32 %v1210_v32, %v4440_v23  ;;  %v611_v7 = vrot.slane %v610_v52, 4  ;;  %v4505_v31 = vmul.f32 0.33333334, %v908_v19  ;;  %vm1688_vm6 = vmor %vm1686_vm5, %vm1687_vm4 }
 0x1a2   :  { %5708 = vst [vmem:[#allocation16_spill] sm:$0xff] %v4498_v55  ;;  %v3229_v53 = vpop.eup %3228  ;;  %v1683_v15 = vsub.f32 1.0, %v1682_v45  ;;  %v897_v58 = vadd.f32 %v896_v37, %v895_v48  ;;  %v3061_v12 = vmul.f32 -1.442695, %v2178_v9  ;;  %v1693_v19 = vor.u32 1.1754944e-38, %v1692_v6 }
 0x1a3   :  { %v1267_v46 = vmul.f32 %v3225_v43, %v1266_v40  ;;  %v1213_v1 = vsel %vm1212_vm2, %v4440_v23, %v1211_v11  ;;  %v612_v47 = vadd.f32 %v611_v7, %v610_v52  ;;  %3230 = vrsqrt.f32 %v4505_v31  ;;  %v3358_v9 = vld [vmem:[%s5648_s1] sm:$0x1] }
 0x1a4   :  { %v1684_v35 = vmul.f32 %v3223_v27, %v1683_v15  ;;  %v1216_v45 = vsel %vm1214_vm3, %v1215_v33, %v1213_v1  ;;  %v898_v38 = vrot.slane %v897_v58, 2  ;;  %v320_v48 = vrot.slane %v319_v34, 1 }
 0x1a5   :  { %v1268_v32 = vmul.f32 0.5, %v1267_v46  ;;  %v4514_v4 = vadd.f32 1e-05, %v1216_v45  ;;  %v613_v11 = vrot.slane %v612_v47, 2  ;;  %vm1691_vm7 = vcmp.eq.f32.partialorder %v1690_v59, 8.507059e+37 }
 0x1a6   :  { %v1685_v40 = vadd.f32 %v3223_v27, %v1684_v35  ;;  %v310_v23 = vadd.f32 %v309_v61, %v308_v44  ;;  %v4518_v24 = vadd.f32 1.0, %v3229_v53  ;;  %vm1272_vm8 = vcmp.eq.f32.partialorder %v4471_v13, inf  ;;  %v4524_v35 = vpop.xlane.xlu2 %143 }
 0x1a7   :  { %v1269_v15 = vsub.f32 1.5, %v1268_v32  ;;  %3232 = vrcp.f32 %v4514_v4  ;;  %v899_v7 = vadd.f32 %v898_v38, %v897_v58  ;;  %v614_v46 = vadd.f32 %v613_v11, %v612_v47 }
 0x1a8   :  { %v1689_v52 = vsel %vm1688_vm6, %v3223_v27, %v1685_v40  ;;  %5709 = vst [vmem:[#allocation17_spill] sm:$0xff] %v4518_v24  ;;  %3234 = vpow2.f32 %v3061_v12  ;;  %vm1274_vm9 = vcmp.eq.f32.partialorder %v4471_v13, 0.0  ;;  %v1275_v44 = vand.u32 2147483648, %v4471_v13 }
 0x1a9   :  { %v1694_v33 = vsel %vm1691_vm7, %v1693_v19, %v1689_v52  ;;  %v1270_v37 = vmul.f32 %v3225_v43, %v1269_v15  ;;  %v3231_v27 = vpop.eup %3230  ;;  %v321_v43 = vadd.f32 %v320_v48, %v319_v34  ;;  %v900_v61 = vrot.slane %v899_v7, 1 }
 0x1aa   :  { %v1953_v6 = vmul.f32 %v3358_v9, %v1694_v33  ;;  %v1254_v12 = vmul.f32 %v3231_v27, %v4505_v31  ;;  %v311_v1 = vrot.slane %v310_v23, 2  ;;  %v615_v58 = vrot.slane %v614_v46, 1 }
 0x1ab   :  { %v1271_v59 = vmul.f32 %v1270_v37, %v4471_v13  ;;  %v407_v47 = vmul.f32 0.015625, %v321_v43  ;;  %v4535_v45 = vsel %vm160_vm1, %v4524_v35, 0.0  ;;  %v901_v15 = vadd.f32 %v900_v61, %v899_v7 }
 0x1ac   :  { %v2017_v53 = vperm.slane %v1953_v6, 0  ;;  %v1255_v34 = vmul.f32 %v3231_v27, %v1254_v12  ;;  %v1675_v48 = vand.u32 2147483647, %v4514_v4  ;;  %vm1260_vm10 = vcmp.eq.f32.partialorder %v4505_v31, inf }
 0x1ad   :  { %v1273_v38 = vsel %vm1272_vm8, %v4471_v13, %v1271_v59  ;;  %v3233_v32 = vpop.eup %3232  ;;  %v1677_v33 = vand.u32 2147483648, %v4514_v4  ;;  %vm1262_vm11 = vcmp.eq.f32.partialorder %v4505_v31, 0.0  ;;  %v4545_v9 = vmul.f32 0.33333334, %v901_v15 }
 0x1ae   :  { %v2081_v40 = vmul.f32 %v2017_v53, %v4331_v22  ;;  %v1276_v19 = vsel %vm1274_vm9, %v1275_v44, %v1273_v38  ;;  %v1667_v11 = vmul.f32 %v3233_v32, %v4514_v4  ;;  %v3235_v13 = vpop.eup %3234  ;;  %v1256_v37 = vmul.f32 0.5, %v1255_v34  ;;  %v3359_v44 = vld [vmem:[%s5649_s2] ss:$0 sm:$0xff] }
 0x1af   :  { %v4540_v52 = vadd.f32 1e-05, %v1276_v19  ;;  %v312_v22 = vadd.f32 %v311_v1, %v310_v23  ;;  %v616_v7 = vadd.f32 %v615_v58, %v614_v46  ;;  %v4549_v59 = vmul.f32 %v407_v47, %v4442_v16 }
 0x1b0   :  { %v1668_v6 = vsub.f32 1.0, %v1667_v11  ;;  %v2177_v43 = vadd.f32 %v3359_v44, %v2081_v40  ;;  %v1257_v53 = vsub.f32 1.5, %v1256_v37  ;;  %v1263_v12 = vand.u32 2147483648, %v4505_v31 }
 0x1b1   :  { %3236 = vrcp.f32 %v4540_v52  ;;  %v4556_v61 = vadd.f32 1.0, %v3235_v13  ;;  %vm1671_vm12 = vweird.f32 %v4514_v4  ;;  %vm1672_vm13 = vweird.f32 %v3233_v32  ;;  %v1936_v4 = vld [vmem:[%s5648_s1 + $0xf] sm:$0x1] }
 0x1b2   :  { %3238 = vrsqrt.f32 %v4545_v9  ;;  %v1669_v23 = vmul.f32 %v3233_v32, %v1668_v6  ;;  %vm4559_vm14 = vcmp.eq.f32.partialorder %v1675_v48, 8.507059e+37  ;;  %v1678_v16 = vor.u32 1.1754944e-38, %v1677_v33  ;;  %vm1673_vm15 = vmor %vm1671_vm12, %vm1672_vm13 }
 0x1b3   :  { %v1258_v1 = vmul.f32 %v3231_v27, %v1257_v53  ;;  %v344_v38 = vrot.slane %v4535_v45, 4  ;;  %v696_v47 = vmul.f32 0.25, %v616_v7  ;;  %v603_v40 = vsel %vm160_vm1, %v4549_v59, 0.0 }
 0x1b4   :  { %v1670_v58 = vadd.f32 %v3233_v32, %v1669_v23  ;;  %v313_v19 = vrot.slane %v312_v22, 1  ;;  %v3060_v34 = vmul.f32 -1.442695, %v2177_v43  ;;  %vm1746_vm2 = vweird.f32 %v4540_v52 }
 0x1b5   :  { %v1259_v15 = vmul.f32 %v1258_v1, %v4505_v31  ;;  %v604_v11 = vrot.slane %v603_v40, 4  ;;  %v1750_v13 = vand.u32 2147483647, %v4540_v52  ;;  %v4573_v33 = vsub.f32 %v4493_v0, %v696_v47 }
 0x1b6   :  { %v1674_v48 = vsel %vm1673_vm15, %v3233_v32, %v1670_v58  ;;  %v314_v37 = vadd.f32 %v313_v19, %v312_v22  ;;  %v1752_v43 = vand.u32 2147483648, %v4540_v52  ;;  %3240 = vpow2.f32 %v3060_v34 }
 0x1b7   :  { %v3237_v27 = vpop.eup %3236  ;;  %v1679_v7 = vsel %vm4559_vm14, %v1678_v16, %v1674_v48  ;;  %v1261_v53 = vsel %vm1260_vm10, %v4505_v31, %v1259_v15  ;;  %v760_v22 = vmul.f32 %v4573_v33, %v4573_v33  ;;  %v605_v1 = vadd.f32 %v604_v11, %v603_v40  ;;  %v4595_v15 = vpop.xlane.xlu1 %140 }
 0x1b8   :  { %v3239_v6 = vpop.eup %3238  ;;  %v1742_v44 = vmul.f32 %v3237_v27, %v4540_v52  ;;  %v1952_v23 = vmul.f32 %v1936_v4, %v1679_v7  ;;  %v1264_v32 = vsel %vm1262_vm11, %v1263_v12, %v1261_v53  ;;  %vm4589_vm3 = vcmp.eq.f32.partialorder %v1750_v13, 8.507059e+37  ;;  %v3099_v52 = vld [vmem:[%s5649_s2 + $0xf] ss:$0 sm:$0xff] }
 0x1b9   :  { %v1242_v0 = vmul.f32 %v3239_v6, %v4545_v9  ;;  %v4587_v16 = vadd.f32 1e-05, %v1264_v32  ;;  %v930_v19 = vsel %vm160_vm1, %v760_v22, 0.0  ;;  %v406_v4 = vmul.f32 0.015625, %v314_v37 }
 0x1ba   :  { %v1743_v46 = vsub.f32 1.0, %v1742_v44  ;;  %v2016_v31 = vperm.slane %v1952_v23, 0  ;;  %vm1747_vm4 = vweird.f32 %v3237_v27  ;;  %vm1248_vm5 = vcmp.eq.f32.partialorder %v4545_v9, inf }
 0x1bb   :  { %v1243_v47 = vmul.f32 %v3239_v6, %v1242_v0  ;;  %3242 = vrcp.f32 %v4587_v16  ;;  %vm1250_vm6 = vcmp.eq.f32.partialorder %v4545_v9, 0.0  ;;  %v345_v40 = vadd.f32 %v344_v38, %v4535_v45  ;;  %vm1748_vm7 = vmor %vm1746_vm2, %vm1747_vm4 }
 0x1bc   :  { %v1744_v12 = vmul.f32 %v3237_v27, %v1743_v46  ;;  %v1753_v48 = vor.u32 1.1754944e-38, %v1752_v43  ;;  %v931_v13 = vrot.slane %v930_v19, 4  ;;  %v606_v7 = vrot.slane %v605_v1, 2  ;;  %v3241_v32 = vpop.eup %3240 }
 0x1bd   :  { %v1244_v34 = vmul.f32 0.5, %v1243_v47  ;;  %v1251_v44 = vand.u32 2147483648, %v4545_v9  ;;  %v4604_v53 = vmul.f32 %v406_v4, %v4482_v28  ;;  %v336_v23 = vsel %vm160_vm1, %v4595_v15, 0.0 }
 0x1be   :  { %v1745_v11 = vadd.f32 %v3237_v27, %v1744_v12  ;;  %v2080_v0 = vmul.f32 %v2016_v31, %v4371_v36  ;;  %v932_v38 = vadd.f32 %v931_v13, %v930_v19  ;;  %v607_v43 = vadd.f32 %v606_v7, %v605_v1  ;;  %v3360_v36 = vld [vmem:[%s5648_s1 + $0x4] sm:$0x1] }
 0x1bf   :  { %v1245_v37 = vsub.f32 1.5, %v1244_v34  ;;  %v596_v28 = vsel %vm160_vm1, %v4604_v53, 0.0  ;;  %v346_v47 = vrot.slane %v345_v40, 2  ;;  %v4619_v12 = vadd.f32 1.0, %v3241_v32 }
 0x1c0   :  { %v1749_v45 = vsel %vm1748_vm7, %v3237_v27, %v1745_v11  ;;  %v933_v19 = vrot.slane %v932_v38, 2  ;;  %v608_v1 = vrot.slane %v607_v43, 1  ;;  %v597_v31 = vrot.slane %v596_v28, 4 }
 0x1c1   :  { %v1754_v22 = vsel %vm4589_vm3, %v1753_v48, %v1749_v45  ;;  %v1246_v46 = vmul.f32 %v3239_v6, %v1245_v37  ;;  %v3243_v4 = vpop.eup %3242  ;;  %v337_v6 = vrot.slane %v336_v23, 4  ;;  %v1735_v11 = vand.u32 2147483647, %v4587_v16 }
 0x1c2   :  { %v1957_v27 = vmul.f32 %v3360_v36, %v1754_v22  ;;  %v1727_v34 = vmul.f32 %v3243_v4, %v4587_v16  ;;  %v934_v48 = vadd.f32 %v933_v19, %v932_v38  ;;  %v609_v13 = vadd.f32 %v608_v1, %v607_v43 }
 0x1c3   :  { %v1247_v58 = vmul.f32 %v1246_v46, %v4545_v9  ;;  %v598_v7 = vadd.f32 %v597_v31, %v596_v28  ;;  %v2176_v37 = vadd.f32 %v3099_v52, %v2080_v0  ;;  %v347_v50 = vadd.f32 %v346_v47, %v345_v40  ;;  %v3361_v47 = vld [vmem:[%s5649_s2 + $0x4] ss:$0 sm:$0xff] }
 0x1c4   :  { %v2021_v45 = vperm.slane %v1957_v27, 0  ;;  %v1728_v55 = vsub.f32 1.0, %v1727_v34  ;;  %v935_v36 = vrot.slane %v934_v48, 1  ;;  %v695_v3 = vmul.f32 0.25, %v609_v13 }
 0x1c5   :  { %v1249_v22 = vsel %vm1248_vm5, %v4545_v9, %v1247_v58  ;;  %v599_v14 = vrot.slane %v598_v7, 2  ;;  %v338_v38 = vadd.f32 %v337_v6, %v336_v23  ;;  %vm1732_vm8 = vweird.f32 %v3243_v4 }
 0x1c6   :  { %v1252_v32 = vsel %vm1250_vm6, %v1251_v44, %v1249_v22  ;;  %v1729_v46 = vmul.f32 %v3243_v4, %v1728_v55  ;;  %v1737_v0 = vand.u32 2147483648, %v4587_v16  ;;  %v936_v43 = vadd.f32 %v935_v36, %v934_v48 }
 0x1c7   :  { %v4629_v29 = vadd.f32 1e-05, %v1252_v32  ;;  %v4633_v52 = vsub.f32 %v4549_v59, %v695_v3  ;;  %v3059_v28 = vmul.f32 -1.442695, %v2176_v37  ;;  %v2085_v27 = vmul.f32 %v2021_v45, %v4410_v30 }
 0x1c8   :  { %v1730_v9 = vadd.f32 %v3243_v4, %v1729_v46  ;;  %vm1731_vm9 = vweird.f32 %v4587_v16  ;;  %v4639_v55 = vmul.f32 0.33333334, %v936_v43  ;;  %v348_v40 = vrot.slane %v347_v50, 1  ;;  %v4651_v16 = vpop.xlane.xlu0 %137 }
 0x1c9   :  { %3244 = vrcp.f32 %v4629_v29  ;;  %vm4642_vm10 = vmor %vm1731_vm9, %vm1732_vm8  ;;  %v759_v3 = vmul.f32 %v4633_v52, %v4633_v52  ;;  %v600_v30 = vadd.f32 %v599_v14, %v598_v7  ;;  %v339_v59 = vrot.slane %v338_v38, 2 }
 0x1ca   :  { %3246 = vrcp.f32 %v4518_v24  ;;  %v1734_v23 = vsel %vm4642_vm10, %v3243_v4, %v1730_v9  ;;  %vm1736_vm11 = vcmp.eq.f32.partialorder %v1735_v11, 8.507059e+37  ;;  %v4656_v19 = vadd.f32 %v3361_v47, %v2085_v27 }
 0x1cb   :  { %3248 = vrcp.f32 %v4556_v61  ;;  %v1738_v1 = vor.u32 1.1754944e-38, %v1737_v0  ;;  %v1720_v31 = vand.u32 2147483647, %v4629_v29  ;;  %v923_v14 = vsel %vm160_vm1, %v759_v3, 0.0  ;;  %v3363_v3 = vld [vmem:[%s5648_s1 + $0x2] sm:$0x1] }
 0x1cc   :  { %3250 = vrcp.f32 %v4619_v12  ;;  %v601_v34 = vrot.slane %v600_v30, 1  ;;  %v349_v58 = vadd.f32 %v348_v40, %v347_v50  ;;  %v924_v11 = vrot.slane %v923_v14, 4 }
 0x1cd   :  { %3252 = vpow2.f32 %v3059_v28  ;;  %v1739_v6 = vsel %vm1736_vm11, %v1738_v1, %v1734_v23  ;;  %v340_v48 = vadd.f32 %v339_v59, %v338_v38  ;;  %v329_v13 = vsel %vm160_vm1, %v4651_v16, 0.0  ;;  %v3362_v38 = vld [vmem:[%s5648_s1 + $0x3] sm:$0x1] }
 0x1ce   :  { %3254 = vrsqrt.f32 %v4639_v55  ;;  %vm1716_vm12 = vweird.f32 %v4629_v29  ;;  %v602_v45 = vadd.f32 %v601_v34, %v600_v30  ;;  %v411_v22 = vmul.f32 0.015625, %v349_v58 }
 0x1cf   :  { %v3245_v4 = vpop.eup %3244  ;;  %v1722_v36 = vand.u32 2147483648, %v4629_v29  ;;  %v925_v50 = vadd.f32 %v924_v11, %v923_v14  ;;  %v341_v46 = vrot.slane %v340_v48, 1  ;;  %v330_v0 = vrot.slane %v329_v13, 4 }
 0x1d0   :  { %v4663_v7 = vpop.eup %3246  ;;  %v1712_v37 = vmul.f32 %v3245_v4, %v4629_v29  ;;  %v1956_v28 = vmul.f32 %v3362_v38, %v1739_v6  ;;  %v694_v9 = vmul.f32 0.25, %v602_v45  ;;  %v4676_v40 = vmul.f32 %v411_v22, %v4524_v35  ;;  %v4689_v35 = vpop.xlane.xlu2 %152 }
 0x1d1   :  { %5716 = vst [vmem:[#allocation18_spill] sm:$0xff] %v4663_v7  ;;  %v4667_v32 = vpop.eup %3248  ;;  %vm1717_vm13 = vweird.f32 %v3245_v4  ;;  %vm4680_vm14 = vcmp.eq.f32.partialorder %v1720_v31, 8.507059e+37  ;;  %v926_v30 = vrot.slane %v925_v50, 2  ;;  %v342_v59 = vadd.f32 %v341_v46, %v340_v48 }
 0x1d2   :  { %5717 = vst [vmem:[#allocation19_spill] sm:$0xff] %v4667_v32  ;;  %v4670_v43 = vpop.eup %3250  ;;  %v1713_v27 = vsub.f32 1.0, %v1712_v37  ;;  %v4685_v1 = vsub.f32 %v4604_v53, %v694_v9  ;;  %v631_v14 = vsel %vm160_vm1, %v4676_v40, 0.0  ;;  %v331_v34 = vadd.f32 %v330_v0, %v329_v13  ;;  %vm1718_vm15 = vmor %vm1716_vm12, %vm1717_vm13 }
 0x1d3   :  { %v4678_v44 = vpop.eup %3252  ;;  %v1723_v58 = vor.u32 1.1754944e-38, %v1722_v36  ;;  %v927_v31 = vadd.f32 %v926_v30, %v925_v50  ;;  %v632_v11 = vrot.slane %v631_v14, 4  ;;  %v2020_v37 = vperm.slane %v1956_v28, 0 }
 0x1d4   :  { %v3255_v23 = vpop.eup %3254  ;;  %v1714_v47 = vmul.f32 %v3245_v4, %v1713_v27  ;;  %v758_v48 = vmul.f32 %v4685_v1, %v4685_v1  ;;  %v410_v22 = vmul.f32 0.015625, %v342_v59  ;;  %v364_v36 = vsel %vm160_vm1, %v4689_v35, 0.0 }
 0x1d5   :  { %v1302_v6 = vmul.f32 %v3255_v23, %v4639_v55  ;;  %v928_v46 = vrot.slane %v927_v31, 1  ;;  %v633_v13 = vadd.f32 %v632_v11, %v631_v14  ;;  %v332_v28 = vrot.slane %v331_v34, 2 }
 0x1d6   :  { %v1715_v45 = vadd.f32 %v3245_v4, %v1714_v47  ;;  %v916_v50 = vsel %vm160_vm1, %v758_v48, 0.0  ;;  %v4701_v38 = vmul.f32 %v410_v22, %v4595_v15  ;;  %v2084_v59 = vmul.f32 %v2020_v37, %v4445_v62 }
 0x1d7   :  { %v1303_v53 = vmul.f32 %v3255_v23, %v1302_v6  ;;  %v929_v30 = vadd.f32 %v928_v46, %v927_v31  ;;  %v917_v29 = vrot.slane %v916_v50, 4  ;;  %v634_v47 = vrot.slane %v633_v13, 2 }
 0x1d8   :  { %v1719_v0 = vsel %vm1718_vm15, %v3245_v4, %v1715_v45  ;;  %v624_v14 = vsel %vm160_vm1, %v4701_v38, 0.0  ;;  %v333_v6 = vadd.f32 %v332_v28, %v331_v34  ;;  %v365_v22 = vrot.slane %v364_v36, 4  ;;  %v3364_v34 = vld [vmem:[%s5649_s2 + $0x3] ss:$0 sm:$0xff] }
 0x1d9   :  { %v1724_v27 = vsel %vm4680_vm14, %v1723_v58, %v1719_v0  ;;  %v1304_v9 = vmul.f32 0.5, %v1303_v53  ;;  %v4708_v11 = vmul.f32 0.33333334, %v929_v30  ;;  %v918_v45 = vadd.f32 %v917_v29, %v916_v50 }
 0x1da   :  { %v625_v15 = vrot.slane %v624_v14, 4  ;;  %v1955_v58 = vmul.f32 %v3363_v3, %v1724_v27  ;;  %v635_v48 = vadd.f32 %v634_v47, %v633_v13  ;;  %v334_v31 = vrot.slane %v333_v6, 1 }
 0x1db   :  { %v1305_v4 = vsub.f32 1.5, %v1304_v9  ;;  %v3064_v62 = vmul.f32 -1.442695, %v4656_v19  ;;  %3256 = vrsqrt.f32 %v4708_v11  ;;  %v2180_v53 = vadd.f32 %v3364_v34, %v2084_v59 }
 0x1dc   :  { %vm1308_vm2 = vcmp.eq.f32.partialorder %v4639_v55, inf  ;;  %vm1310_vm3 = vcmp.eq.f32.partialorder %v4639_v55, 0.0  ;;  %v919_v46 = vrot.slane %v918_v45, 2  ;;  %v636_v13 = vrot.slane %v635_v48, 1 }
 0x1dd   :  { %v1306_v37 = vmul.f32 %v3255_v23, %v1305_v4  ;;  %v626_v50 = vadd.f32 %v625_v15, %v624_v14  ;;  %v335_v28 = vadd.f32 %v334_v31, %v333_v6  ;;  %v2019_v27 = vperm.slane %v1955_v58, 0 }
 0x1de   :  { %v1311_v19 = vand.u32 2147483648, %v4639_v55  ;;  %v920_v23 = vadd.f32 %v919_v46, %v918_v45  ;;  %v366_v9 = vadd.f32 %v365_v22, %v364_v36  ;;  %v637_v29 = vadd.f32 %v636_v13, %v635_v48 }
 0x1df   :  { %v1307_v0 = vmul.f32 %v1306_v37, %v4639_v55  ;;  %v627_v47 = vrot.slane %v626_v50, 2  ;;  %v409_v59 = vmul.f32 0.015625, %v335_v28  ;;  %v3063_v4 = vmul.f32 -1.442695, %v2180_v53  ;;  %v4745_v53 = vpop.xlane.xlu1 %149 }
 0x1e0   :  { %v921_v34 = vrot.slane %v920_v23, 1  ;;  %v367_v7 = vrot.slane %v366_v9, 2  ;;  %v699_v37 = vmul.f32 0.25, %v637_v29  ;;  %3258 = vpow2.f32 %v3064_v62 }
 0x1e1   :  { %v1309_v30 = vsel %vm1308_vm2, %v4639_v55, %v1307_v0  ;;  %v3257_v24 = vpop.eup %3256  ;;  %v628_v14 = vadd.f32 %v627_v47, %v626_v50  ;;  %v4726_v6 = vmul.f32 %v409_v59, %v4651_v16  ;;  %v4730_v15 = vadd.f32 1.0, %v4678_v44 }
 0x1e2   :  { %v1312_v3 = vsel %vm1310_vm3, %v1311_v19, %v1309_v30  ;;  %v1290_v36 = vmul.f32 %v3257_v24, %v4708_v11  ;;  %v922_v45 = vadd.f32 %v921_v34, %v920_v23  ;;  %v368_v55 = vadd.f32 %v367_v7, %v366_v9 }
 0x1e3   :  { %v4723_v32 = vadd.f32 1e-05, %v1312_v3  ;;  %5720 = vst [vmem:[#allocation20_spill] sm:$0xff] %v4730_v15  ;;  %v2083_v58 = vmul.f32 %v2019_v27, %v4478_v8  ;;  %v4737_v22 = vsub.f32 %v4676_v40, %v699_v37  ;;  %v629_v16 = vrot.slane %v628_v14, 1  ;;  %v3365_v40 = vld [vmem:[%s5649_s2 + $0x2] ss:$0 sm:$0xff] }
 0x1e4   :  { %v1291_v48 = vmul.f32 %v3257_v24, %v1290_v36  ;;  %v4734_v31 = vmul.f32 0.33333334, %v922_v45  ;;  %vm1296_vm4 = vcmp.eq.f32.partialorder %v4708_v11, inf  ;;  %v617_v7 = vsel %vm160_vm1, %v4726_v6, 0.0 }
 0x1e5   :  { %3260 = vrcp.f32 %v4723_v32  ;;  %v369_v62 = vrot.slane %v368_v55, 1  ;;  %vm1298_vm5 = vcmp.eq.f32.partialorder %v4708_v11, 0.0  ;;  %v1299_v8 = vand.u32 2147483648, %v4708_v11 }
 0x1e6   :  { %3262 = vpow2.f32 %v3063_v4  ;;  %v1292_v44 = vmul.f32 0.5, %v1291_v48  ;;  %v2179_v46 = vadd.f32 %v3365_v40, %v2083_v58  ;;  %v763_v0 = vmul.f32 %v4737_v22, %v4737_v22  ;;  %v3259_v28 = vpop.eup %3258 }
 0x1e7   :  { %3264 = vrsqrt.f32 %v4734_v31  ;;  %v630_v13 = vadd.f32 %v629_v16, %v628_v14  ;;  %v618_v50 = vrot.slane %v617_v7, 4  ;;  %vm1791_vm6 = vweird.f32 %v4723_v32 }
 0x1e8   :  { %v1795_v27 = vand.u32 2147483647, %v4723_v32  ;;  %v1293_v19 = vsub.f32 1.5, %v1292_v44  ;;  %v370_v23 = vadd.f32 %v369_v62, %v368_v55  ;;  %v951_v30 = vsel %vm160_vm1, %v763_v0, 0.0 }
 0x1e9   :  { %v698_v29 = vmul.f32 0.25, %v630_v13  ;;  %v619_v47 = vadd.f32 %v618_v50, %v617_v7  ;;  %v357_v59 = vsel %vm160_vm1, %v4745_v53, 0.0  ;;  %v1797_v3 = vand.u32 2147483648, %v4723_v32 }
 0x1ea   :  { %v1294_v34 = vmul.f32 %v3257_v24, %v1293_v19  ;;  %v952_v37 = vrot.slane %v951_v30, 4  ;;  %v414_v55 = vmul.f32 0.015625, %v370_v23  ;;  %v358_v62 = vrot.slane %v357_v59, 4 }
 0x1eb   :  { %v3261_v9 = vpop.eup %3260  ;;  %v4762_v36 = vsub.f32 %v4701_v38, %v698_v29  ;;  %v620_v45 = vrot.slane %v619_v47, 2  ;;  %vm1796_vm9 = vcmp.eq.f32.partialorder %v1795_v27, 8.507059e+37  ;;  %vm1284_vm10 = vcmp.eq.f32.partialorder %v4734_v31, inf }
 0x1ec   :  { %v1787_v4 = vmul.f32 %v3261_v9, %v4723_v32  ;;  %v4759_v14 = vpop.eup %3262  ;;  %vm1792_vm7 = vweird.f32 %v3261_v9  ;;  %v1295_v16 = vmul.f32 %v1294_v34, %v4708_v11  ;;  %v953_v7 = vadd.f32 %v952_v37, %v951_v30  ;;  %v3366_v32 = vld [vmem:[%s5648_s1 + $0x7] sm:$0x1] }
 0x1ed   :  { %v3265_v58 = vpop.eup %3264  ;;  %v762_v24 = vmul.f32 %v4762_v36, %v4762_v36  ;;  %v621_v40 = vadd.f32 %v620_v45, %v619_v47  ;;  %v4769_v0 = vmul.f32 %v414_v55, %v4689_v35  ;;  %v359_v19 = vadd.f32 %v358_v62, %v357_v59  ;;  %vm1793_vm8 = vmor %vm1791_vm6, %vm1792_vm7 }
 0x1ee   :  { %v1788_v48 = vsub.f32 1.0, %v1787_v4  ;;  %v1278_v44 = vmul.f32 %v3265_v58, %v4734_v31  ;;  %v1297_v38 = vsel %vm1296_vm4, %v4708_v11, %v1295_v16  ;;  %v954_v50 = vrot.slane %v953_v7, 2 }
 0x1ef   :  { %v1300_v23 = vsel %vm1298_vm5, %v1299_v8, %v1297_v38  ;;  %v944_v29 = vsel %vm160_vm1, %v762_v24, 0.0  ;;  %v622_v4 = vrot.slane %v621_v40, 1  ;;  %v1798_v45 = vor.u32 1.1754944e-38, %v1797_v3 }
 0x1f0   :  { %v1789_v13 = vmul.f32 %v3261_v9, %v1788_v48  ;;  %v1279_v30 = vmul.f32 %v3265_v58, %v1278_v44  ;;  %v4777_v37 = vadd.f32 1e-05, %v1300_v23  ;;  %v955_v47 = vadd.f32 %v954_v50, %v953_v7 }
 0x1f1   :  { %v945_v35 = vrot.slane %v944_v29, 4  ;;  %v623_v59 = vadd.f32 %v622_v4, %v621_v40  ;;  %v652_v11 = vsel %vm160_vm1, %v4769_v0, 0.0  ;;  %v360_v8 = vrot.slane %v359_v19, 2 }
 0x1f2   :  { %v1790_v34 = vadd.f32 %v3261_v9, %v1789_v13  ;;  %v1280_v55 = vmul.f32 0.5, %v1279_v30  ;;  %3266 = vrcp.f32 %v4777_v37  ;;  %v956_v62 = vrot.slane %v955_v47, 1 }
 0x1f3   :  { %3268 = vrcp.f32 %v4730_v15  ;;  %v4786_v44 = vadd.f32 1.0, %v3259_v28  ;;  %v946_v3 = vadd.f32 %v945_v35, %v944_v29  ;;  %v3062_v24 = vmul.f32 -1.442695, %v2179_v46  ;;  %v4799_v29 = vpop.xlane.xlu0 %146 }
 0x1f4   :  { %v1794_v48 = vsel %vm1793_vm8, %v3261_v9, %v1790_v34  ;;  %v1281_v7 = vsub.f32 1.5, %v1280_v55  ;;  %v697_v9 = vmul.f32 0.25, %v623_v59  ;;  %v957_v13 = vadd.f32 %v956_v62, %v955_v47 }
 0x1f5   :  { %v1799_v16 = vsel %vm1796_vm9, %v1798_v45, %v1794_v48  ;;  %5721 = vst [vmem:[#allocation21_spill] sm:$0xff] %v4786_v44  ;;  %v653_v38 = vrot.slane %v652_v11, 4  ;;  %v947_v50 = vrot.slane %v946_v3, 2  ;;  %v361_v30 = vadd.f32 %v360_v8, %v359_v19 }
 0x1f6   :  { %v1960_v27 = vmul.f32 %v3366_v32, %v1799_v16  ;;  %v1282_v40 = vmul.f32 %v3265_v58, %v1281_v7  ;;  %v4793_v23 = vsub.f32 %v4726_v6, %v697_v9  ;;  %v1287_v34 = vand.u32 2147483648, %v4734_v31 }
 0x1f7   :  { %v4797_v45 = vmul.f32 0.33333334, %v957_v13  ;;  %v948_v58 = vadd.f32 %v947_v50, %v946_v3  ;;  %v654_v35 = vadd.f32 %v653_v38, %v652_v11  ;;  %v362_v55 = vrot.slane %v361_v30, 1  ;;  %v3367_v50 = vld [vmem:[%s5649_s2 + $0x7] ss:$0 sm:$0xff] }
 0x1f8   :  { %v2024_v28 = vperm.slane %v1960_v27, 0  ;;  %v1283_v4 = vmul.f32 %v1282_v40, %v4734_v31  ;;  %v3267_v46 = vpop.eup %3266  ;;  %v761_v47 = vmul.f32 %v4793_v23, %v4793_v23  ;;  %vm1286_vm11 = vcmp.eq.f32.partialorder %v4734_v31, 0.0 }
 0x1f9   :  { %v4803_v59 = vpop.eup %3268  ;;  %v1772_v6 = vmul.f32 %v3267_v46, %v4777_v37  ;;  %3270 = vrsqrt.f32 %v4797_v45  ;;  %v4812_v48 = vadd.f32 1.0, %v4759_v14  ;;  %v350_v11 = vsel %vm160_vm1, %v4799_v29, 0.0 }
 0x1fa   :  { %5722 = vst [vmem:[#allocation22_spill] sm:$0xff] %v4803_v59  ;;  %v1285_v19 = vsel %vm1284_vm10, %v4734_v31, %v1283_v4  ;;  %3272 = vpow2.f32 %v3062_v24  ;;  %v2088_v16 = vmul.f32 %v2024_v28, %v4573_v33  ;;  %v949_v32 = vrot.slane %v948_v58, 1 }
 0x1fb   :  { %v1288_v8 = vsel %vm1286_vm11, %v1287_v34, %v1285_v19  ;;  %v1773_v7 = vsub.f32 1.0, %v1772_v6  ;;  %v1782_v27 = vand.u32 2147483648, %v4777_v37  ;;  %v937_v31 = vsel %vm160_vm1, %v761_v47, 0.0 }
 0x1fc   :  { %v4817_v62 = vadd.f32 1e-05, %v1288_v8  ;;  %v655_v3 = vrot.slane %v654_v35, 2  ;;  %v363_v9 = vadd.f32 %v362_v55, %v361_v30  ;;  %vm1777_vm12 = vweird.f32 %v3267_v46 }
 0x1fd   :  { %v1774_v40 = vmul.f32 %v3267_v46, %v1773_v7  ;;  %v1780_v14 = vand.u32 2147483647, %v4777_v37  ;;  %vm1776_vm13 = vweird.f32 %v4777_v37  ;;  %v950_v24 = vadd.f32 %v949_v32, %v948_v58 }
 0x1fe   :  { %3274 = vrcp.f32 %v4817_v62  ;;  %v938_v33 = vrot.slane %v937_v31, 4  ;;  %v351_v13 = vrot.slane %v350_v11, 4  ;;  %v2184_v28 = vadd.f32 %v3367_v50, %v2088_v16  ;;  %vm1778_vm14 = vmor %vm1776_vm13, %vm1777_vm12 }
 0x1ff   :  { %v3271_v38 = vpop.eup %3270  ;;  %v1775_v4 = vadd.f32 %v3267_v46, %v1774_v40  ;;  %v656_v34 = vadd.f32 %v655_v3, %v654_v35  ;;  %v413_v30 = vmul.f32 0.015625, %v363_v9  ;;  %v1783_v55 = vor.u32 1.1754944e-38, %v1782_v27  ;;  %v3368_v27 = vld [vmem:[%s5648_s1 + $0x6] sm:$0x1] }
 0x200   :  { %v4827_v47 = vpop.eup %3272  ;;  %v1338_v6 = vmul.f32 %v3271_v38, %v4797_v45  ;;  %v4830_v19 = vmul.f32 0.33333334, %v950_v24  ;;  %v939_v37 = vadd.f32 %v938_v33, %v937_v31  ;;  %vm1781_vm15 = vcmp.eq.f32.partialorder %v1780_v14, 8.507059e+37 }
 0x201   :  { %v1779_v58 = vsel %vm1778_vm14, %v3267_v46, %v1775_v4  ;;  %v657_v8 = vrot.slane %v656_v34, 1  ;;  %v4833_v7 = vmul.f32 %v413_v30, %v4745_v53  ;;  %v1347_v35 = vand.u32 2147483648, %v4797_v45 }
 0x202   :  { %v1784_v32 = vsel %vm1781_vm15, %v1783_v55, %v1779_v58  ;;  %v1339_v16 = vmul.f32 %v3271_v38, %v1338_v6  ;;  %3276 = vrsqrt.f32 %v4830_v19  ;;  %v3067_v9 = vmul.f32 -1.442695, %v2184_v28 }
 0x203   :  { %v1959_v40 = vmul.f32 %v3368_v27, %v1784_v32  ;;  %vm1344_vm2 = vcmp.eq.f32.partialorder %v4797_v45, inf  ;;  %v940_v46 = vrot.slane %v939_v37, 2  ;;  %v352_v31 = vadd.f32 %v351_v13, %v350_v11 }
 0x204   :  { %v3275_v3 = vpop.eup %3274  ;;  %vm1761_vm3 = vweird.f32 %v4817_v62  ;;  %v1340_v14 = vmul.f32 0.5, %v1339_v16  ;;  %vm1346_vm4 = vcmp.eq.f32.partialorder %v4797_v45, 0.0  ;;  %v658_v24 = vadd.f32 %v657_v8, %v656_v34 }
 0x205   :  { %v1757_v53 = vmul.f32 %v3275_v3, %v4817_v62  ;;  %v1765_v33 = vand.u32 2147483647, %v4817_v62  ;;  %v1767_v50 = vand.u32 2147483648, %v4817_v62  ;;  %v941_v28 = vadd.f32 %v940_v46, %v939_v37 }
 0x206   :  { %v645_v4 = vsel %vm160_vm1, %v4833_v7, 0.0  ;;  %v1341_v55 = vsub.f32 1.5, %v1340_v14  ;;  %v702_v6 = vmul.f32 0.25, %v658_v24  ;;  %v2023_v13 = vperm.slane %v1959_v40, 0 }
 0x207   :  { %v1758_v30 = vsub.f32 1.0, %v1757_v53  ;;  %v646_v11 = vrot.slane %v645_v4, 4  ;;  %vm1762_vm5 = vweird.f32 %v3275_v3  ;;  %v942_v58 = vrot.slane %v941_v28, 1 }
 0x208   :  { %v353_v32 = vrot.slane %v352_v31, 2  ;;  %v3277_v16 = vpop.eup %3276  ;;  %v1342_v59 = vmul.f32 %v3271_v38, %v1341_v55  ;;  %v4849_v34 = vsub.f32 %v4769_v0, %v702_v6  ;;  %3278 = vpow2.f32 %v3067_v9  ;;  %vm1763_vm6 = vmor %vm1761_vm3, %vm1762_vm5 }
 0x209   :  { %v1759_v27 = vmul.f32 %v3275_v3, %v1758_v30  ;;  %v647_v8 = vadd.f32 %v646_v11, %v645_v4  ;;  %v1326_v37 = vmul.f32 %v3277_v16, %v4830_v19  ;;  %v943_v46 = vadd.f32 %v942_v58, %v941_v28 }
 0x20a   :  { %v354_v15 = vadd.f32 %v353_v32, %v352_v31  ;;  %v1343_v14 = vmul.f32 %v1342_v59, %v4797_v45  ;;  %v766_v40 = vmul.f32 %v4849_v34, %v4849_v34  ;;  %vm1766_vm7 = vcmp.eq.f32.partialorder %v1765_v33, 8.507059e+37  ;;  %v3369_v33 = vld [vmem:[%s5648_s1 + $0x5] sm:$0x1] }
 0x20b   :  { %v1760_v53 = vadd.f32 %v3275_v3, %v1759_v27  ;;  %v648_v24 = vrot.slane %v647_v8, 2  ;;  %v1768_v0 = vor.u32 1.1754944e-38, %v1767_v50  ;;  %v1327_v38 = vmul.f32 %v3277_v16, %v1326_v37 }
 0x20c   :  { %v4858_v4 = vmul.f32 0.33333334, %v943_v46  ;;  %v2087_v9 = vmul.f32 %v2023_v13, %v4633_v52  ;;  %v1345_v59 = vsel %vm1344_vm2, %v4797_v45, %v1343_v14  ;;  %v972_v31 = vsel %vm160_vm1, %v766_v40, 0.0  ;;  %v3370_v45 = vld [vmem:[%s5649_s2 + $0x6] ss:$0 sm:$0xff]  ;;  %v4879_v46 = vpop.xlane.xlu1 %158 }
 0x20d   :  { %v1764_v28 = vsel %vm1763_vm6, %v3275_v3, %v1760_v53  ;;  %v1348_v55 = vsel %vm1346_vm4, %v1347_v35, %v1345_v59  ;;  %v1328_v62 = vmul.f32 0.5, %v1327_v38  ;;  %v649_v6 = vadd.f32 %v648_v24, %v647_v8 }
 0x20e   :  { %v1769_v30 = vsel %vm1766_vm7, %v1768_v0, %v1764_v28  ;;  %v4870_v11 = vadd.f32 1e-05, %v1348_v55  ;;  %3280 = vrsqrt.f32 %v4858_v4  ;;  %v355_v52 = vrot.slane %v354_v15, 1  ;;  %v3279_v3 = vpop.eup %3278 }
 0x20f   :  { %v1958_v50 = vmul.f32 %v3369_v33, %v1769_v30  ;;  %3282 = vrcp.f32 %v4786_v44  ;;  %v1329_v13 = vsub.f32 1.5, %v1328_v62  ;;  %v973_v58 = vrot.slane %v972_v31, 4 }
 0x210   :  { %v2183_v35 = vadd.f32 %v3370_v45, %v2087_v9  ;;  %3284 = vrcp.f32 %v4870_v11  ;;  %v650_v37 = vrot.slane %v649_v6, 1  ;;  %v4882_v53 = vadd.f32 1.0, %v4827_v47 }
 0x211   :  { %v2022_v32 = vperm.slane %v1958_v50, 0  ;;  %3286 = vrcp.f32 %v4812_v48  ;;  %v1330_v27 = vmul.f32 %v3277_v16, %v1329_v13  ;;  %v974_v8 = vadd.f32 %v973_v58, %v972_v31 }
 0x212   :  { %vm1332_vm8 = vcmp.eq.f32.partialorder %v4830_v19, inf  ;;  %v356_v40 = vadd.f32 %v355_v52, %v354_v15  ;;  %vm1334_vm9 = vcmp.eq.f32.partialorder %v4830_v19, 0.0  ;;  %v651_v38 = vadd.f32 %v650_v37, %v649_v6  ;;  %v3371_v6 = vld [vmem:[%s5649_s2 + $0x5] ss:$0 sm:$0xff] }
 0x213   :  { %v2086_v14 = vmul.f32 %v2022_v32, %v4685_v1  ;;  %v1331_v24 = vmul.f32 %v1330_v27, %v4830_v19  ;;  %v975_v0 = vrot.slane %v974_v8, 2  ;;  %v3066_v16 = vmul.f32 -1.442695, %v2183_v35 }
 0x214   :  { %v3281_v9 = vpop.eup %3280  ;;  %v1335_v28 = vand.u32 2147483648, %v4830_v19  ;;  %v412_v59 = vmul.f32 0.015625, %v356_v40  ;;  %v378_v47 = vsel %vm160_vm1, %v4879_v46, 0.0  ;;  %v701_v55 = vmul.f32 0.25, %v651_v38 }
 0x215   :  { %v4891_v31 = vpop.eup %3282  ;;  %v1333_v1 = vsel %vm1332_vm8, %v4830_v19, %v1331_v24  ;;  %v1314_v15 = vmul.f32 %v3281_v9, %v4858_v4  ;;  %v976_v30 = vadd.f32 %v975_v0, %v974_v8  ;;  %v4895_v33 = vadd.f32 1.0, %v3279_v3 }
 0x216   :  { %5723 = vst [vmem:[#allocation23_spill] sm:$0xff] %v4891_v31  ;;  %v3285_v62 = vpop.eup %3284  ;;  %v2182_v50 = vadd.f32 %v3371_v6, %v2086_v14  ;;  %v1336_v52 = vsel %vm1334_vm9, %v1335_v28, %v1333_v1  ;;  %v4903_v13 = vmul.f32 %v412_v59, %v4799_v29  ;;  %v379_v3 = vrot.slane %v378_v47, 4 }
 0x217   :  { %v4905_v58 = vpop.eup %3286  ;;  %v1832_v45 = vmul.f32 %v3285_v62, %v4870_v11  ;;  %v4908_v35 = vadd.f32 1e-05, %v1336_v52  ;;  %v1315_v32 = vmul.f32 %v3281_v9, %v1314_v15  ;;  %3288 = vpow2.f32 %v3066_v16 }
 0x218   :  { %v977_v27 = vrot.slane %v976_v30, 1  ;;  %v4911_v8 = vsub.f32 %v4833_v7, %v701_v55  ;;  %v638_v19 = vsel %vm160_vm1, %v4903_v13, 0.0  ;;  %v1840_v29 = vand.u32 2147483647, %v4870_v11 }
 0x219   :  { %v1833_v37 = vsub.f32 1.0, %v1832_v45  ;;  %v1842_v14 = vand.u32 2147483648, %v4870_v11  ;;  %3290 = vrcp.f32 %v4908_v35  ;;  %vm1320_vm10 = vcmp.eq.f32.partialorder %v4858_v4, inf }
 0x21a   :  { %v3065_v40 = vmul.f32 -1.442695, %v2182_v50  ;;  %v1316_v24 = vmul.f32 0.5, %v1315_v32  ;;  %vm1322_vm11 = vcmp.eq.f32.partialorder %v4858_v4, 0.0  ;;  %v978_v0 = vadd.f32 %v977_v27, %v976_v30 }
 0x21b   :  { %v765_v7 = vmul.f32 %v4911_v8, %v4911_v8  ;;  %v1834_v38 = vmul.f32 %v3285_v62, %v1833_v37  ;;  %vm1837_vm12 = vweird.f32 %v3285_v62  ;;  %v639_v16 = vrot.slane %v638_v19, 4 }
 0x21c   :  { %v380_v28 = vadd.f32 %v379_v3, %v378_v47  ;;  %v1317_v59 = vsub.f32 1.5, %v1316_v24  ;;  %v1323_v1 = vand.u32 2147483648, %v4858_v4  ;;  %v4923_v15 = vmul.f32 0.33333334, %v978_v0 }
 0x21d   :  { %v965_v55 = vsel %vm160_vm1, %v765_v7, 0.0  ;;  %v1835_v6 = vadd.f32 %v3285_v62, %v1834_v38  ;;  %vm1836_vm13 = vweird.f32 %v4870_v11  ;;  %v640_v52 = vadd.f32 %v639_v16, %v638_v19  ;;  %v3289_v30 = vpop.eup %3288  ;;  %v3372_v19 = vld [vmem:[%s5648_s1 + $0xa] sm:$0x1] }
 0x21e   :  { %v966_v50 = vrot.slane %v965_v55, 4  ;;  %vm1838_vm14 = vmor %vm1836_vm13, %vm1837_vm12  ;;  %v1843_v45 = vor.u32 1.1754944e-38, %v1842_v14  ;;  %v1318_v32 = vmul.f32 %v3281_v9, %v1317_v59  ;;  %3292 = vrsqrt.f32 %v4923_v15 }
 0x21f   :  { %v381_v27 = vrot.slane %v380_v28, 2  ;;  %v3291_v47 = vpop.eup %3290  ;;  %3294 = vpow2.f32 %v3065_v40  ;;  %v1839_v3 = vsel %vm1838_vm14, %v3285_v62, %v1835_v6  ;;  %vm1841_vm15 = vcmp.eq.f32.partialorder %v1840_v29, 8.507059e+37  ;;  %v4935_v40 = vpop.xlane.xlu0 %155 }
 0x220   :  { %v967_v37 = vadd.f32 %v966_v50, %v965_v55  ;;  %v1844_v24 = vsel %vm1841_vm15, %v1843_v45, %v1839_v3  ;;  %v1817_v0 = vmul.f32 %v3291_v47, %v4908_v35  ;;  %v1825_v7 = vand.u32 2147483647, %v4908_v35 }
 0x221   :  { %v1319_v11 = vmul.f32 %v1318_v32, %v4858_v4  ;;  %v1963_v9 = vmul.f32 %v3372_v19, %v1844_v24  ;;  %v1827_v14 = vand.u32 2147483648, %v4908_v35  ;;  %v641_v16 = vrot.slane %v640_v52, 2 }
 0x222   :  { %v968_v38 = vrot.slane %v967_v37, 2  ;;  %v1818_v62 = vsub.f32 1.0, %v1817_v0  ;;  %vm1822_vm2 = vweird.f32 %v3291_v47  ;;  %v382_v59 = vadd.f32 %v381_v27, %v380_v28 }
 0x223   :  { %v1321_v29 = vsel %vm1320_vm10, %v4858_v4, %v1319_v11  ;;  %v2027_v55 = vperm.slane %v1963_v9, 0  ;;  %v642_v45 = vadd.f32 %v641_v16, %v640_v52  ;;  %v371_v0 = vsel %vm160_vm1, %v4935_v40, 0.0 }
 0x224   :  { %v1324_v6 = vsel %vm1322_vm11, %v1323_v1, %v1321_v29  ;;  %v969_v50 = vadd.f32 %v968_v38, %v967_v37  ;;  %v3293_v32 = vpop.eup %3292  ;;  %v1819_v3 = vmul.f32 %v3291_v47, %v1818_v62  ;;  %v383_v19 = vrot.slane %v382_v59, 1  ;;  %v3373_v1 = vld [vmem:[%s5649_s2 + $0xa] ss:$0 sm:$0xff] }
 0x225   :  { %v4942_v24 = vadd.f32 1e-05, %v1324_v6  ;;  %v3295_v31 = vpop.eup %3294  ;;  %v2091_v44 = vmul.f32 %v2027_v55, %v4737_v22  ;;  %v1374_v11 = vmul.f32 %v3293_v32, %v4923_v15  ;;  %v643_v27 = vrot.slane %v642_v45, 1  ;;  %v3374_v6 = vld [vmem:[%s5648_s1 + $0x9] sm:$0x1] }
 0x226   :  { %v970_v28 = vrot.slane %v969_v50, 1  ;;  %v1820_v9 = vadd.f32 %v3291_v47, %v1819_v3  ;;  %vm1821_vm3 = vweird.f32 %v4908_v35  ;;  %v1828_v4 = vor.u32 1.1754944e-38, %v1827_v14 }
 0x227   :  { %3296 = vrcp.f32 %v4942_v24  ;;  %v2187_v52 = vadd.f32 %v3373_v1, %v2091_v44  ;;  %vm1823_vm4 = vmor %vm1821_vm3, %vm1822_vm2  ;;  %v1375_v37 = vmul.f32 %v3293_v32, %v1374_v11  ;;  %v372_v22 = vrot.slane %v371_v0, 4 }
 0x228   :  { %v971_v38 = vadd.f32 %v970_v28, %v969_v50  ;;  %v1824_v16 = vsel %vm1823_vm4, %v3291_v47, %v1820_v9  ;;  %vm1826_vm5 = vcmp.eq.f32.partialorder %v1825_v7, 8.507059e+37  ;;  %v644_v62 = vadd.f32 %v643_v27, %v642_v45 }
 0x229   :  { %v384_v29 = vadd.f32 %v383_v19, %v382_v59  ;;  %3298 = vrcp.f32 %v4882_v53  ;;  %v3070_v35 = vmul.f32 -1.442695, %v2187_v52  ;;  %v1829_v14 = vsel %vm1826_vm5, %v1828_v4, %v1824_v16 }
 0x22a   :  { %v1376_v55 = vmul.f32 0.5, %v1375_v37  ;;  %v1962_v3 = vmul.f32 %v3374_v6, %v1829_v14  ;;  %v4958_v44 = vmul.f32 0.33333334, %v971_v38  ;;  %v700_v1 = vmul.f32 0.25, %v644_v62 }
 0x22b   :  { %v416_v11 = vmul.f32 0.015625, %v384_v29  ;;  %3300 = vrcp.f32 %v4895_v33  ;;  %v4961_v47 = vadd.f32 1.0, %v3289_v30  ;;  %v373_v59 = vadd.f32 %v372_v22, %v371_v0 }
 0x22c   :  { %v1377_v7 = vsub.f32 1.5, %v1376_v55  ;;  %v2026_v45 = vperm.slane %v1962_v3, 0  ;;  %vm1380_vm6 = vcmp.eq.f32.partialorder %v4923_v15, inf  ;;  %vm1382_vm7 = vcmp.eq.f32.partialorder %v4923_v15, 0.0 }
 0x22d   :  { %v3297_v50 = vpop.eup %3296  ;;  %3302 = vrsqrt.f32 %v4958_v44  ;;  %v4966_v19 = vadd.f32 1.0, %v3295_v31  ;;  %v1383_v9 = vand.u32 2147483648, %v4923_v15  ;;  %v4971_v30 = vsub.f32 %v4903_v13, %v700_v1 }
 0x22e   :  { %3304 = vpow2.f32 %v3070_v35  ;;  %v1802_v28 = vmul.f32 %v3297_v50, %v4942_v24  ;;  %v1378_v27 = vmul.f32 %v3293_v32, %v1377_v7  ;;  %v4974_v0 = vmul.f32 %v416_v11, %v4879_v46 }
 0x22f   :  { %5724 = vst [vmem:[#allocation24_spill] sm:$0xff] %v4966_v19  ;;  %v374_v4 = vrot.slane %v373_v59, 2  ;;  %v4976_v52 = vpop.eup %3298  ;;  %v1810_v38 = vand.u32 2147483647, %v4942_v24  ;;  %v1812_v31 = vand.u32 2147483648, %v4942_v24  ;;  %v2090_v32 = vmul.f32 %v2026_v45, %v4762_v36 }
 0x230   :  { %v1803_v37 = vsub.f32 1.0, %v1802_v28  ;;  %v1379_v22 = vmul.f32 %v1378_v27, %v4923_v15  ;;  %v764_v16 = vmul.f32 %v4971_v30, %v4971_v30  ;;  %v666_v13 = vsel %vm160_vm1, %v4974_v0, 0.0  ;;  %v3375_v45 = vld [vmem:[%s5649_s2 + $0x9] ss:$0 sm:$0xff] }
 0x231   :  { %v375_v46 = vadd.f32 %v374_v4, %v373_v59  ;;  %v4986_v62 = vpop.eup %3300  ;;  %vm1807_vm8 = vweird.f32 %v3297_v50  ;;  %v667_v14 = vrot.slane %v666_v13, 4  ;;  %3306 = vrcp.f32 %v4961_v47 }
 0x232   :  { %v1804_v29 = vmul.f32 %v3297_v50, %v1803_v37  ;;  %v1381_v35 = vsel %vm1380_vm6, %v4923_v15, %v1379_v22  ;;  %vm1806_vm9 = vweird.f32 %v4942_v24  ;;  %v958_v6 = vsel %vm160_vm1, %v764_v16, 0.0  ;;  %v3376_v16 = vld [vmem:[%s5648_s1 + $0x8] sm:$0x1] }
 0x233   :  { %v3303_v55 = vpop.eup %3302  ;;  %v1384_v36 = vsel %vm1382_vm7, %v1383_v9, %v1381_v35  ;;  %v959_v59 = vrot.slane %v958_v6, 4  ;;  %v2186_v28 = vadd.f32 %v3375_v45, %v2090_v32  ;;  %vm1808_vm10 = vmor %vm1806_vm9, %vm1807_vm8  ;;  %v1813_v24 = vor.u32 1.1754944e-38, %v1812_v31 }
 0x234   :  { %v3305_v3 = vpop.eup %3304  ;;  %v1805_v1 = vadd.f32 %v3297_v50, %v1804_v29  ;;  %v4996_v11 = vadd.f32 1e-05, %v1384_v36  ;;  %v1362_v7 = vmul.f32 %v3303_v55, %v4958_v44  ;;  %v668_v27 = vadd.f32 %v667_v14, %v666_v13 }
 0x235   :  { %v376_v15 = vrot.slane %v375_v46, 1  ;;  %3308 = vrcp.f32 %v4966_v19  ;;  %vm1811_vm11 = vcmp.eq.f32.partialorder %v1810_v38, 8.507059e+37  ;;  %v5004_v4 = vadd.f32 1.0, %v3305_v3 }
 0x236   :  { %v1809_v9 = vsel %vm1808_vm10, %v3297_v50, %v1805_v1  ;;  %3310 = vrcp.f32 %v4996_v11  ;;  %v1363_v22 = vmul.f32 %v3303_v55, %v1362_v7  ;;  %vm1368_vm12 = vcmp.eq.f32.partialorder %v4958_v44, inf }
 0x237   :  { %v1814_v37 = vsel %vm1811_vm11, %v1813_v24, %v1809_v9  ;;  %v1371_v31 = vand.u32 2147483648, %v4958_v44  ;;  %v960_v13 = vadd.f32 %v959_v59, %v958_v6  ;;  %v669_v29 = vrot.slane %v668_v27, 2  ;;  %v5012_v35 = vpop.eup %3306 }
 0x238   :  { %v1961_v32 = vmul.f32 %v3376_v16, %v1814_v37  ;;  %v3069_v50 = vmul.f32 -1.442695, %v2186_v28  ;;  %v1364_v38 = vmul.f32 0.5, %v1363_v22  ;;  %vm1370_vm13 = vcmp.eq.f32.partialorder %v4958_v44, 0.0 }
 0x239   :  { %v377_v14 = vadd.f32 %v376_v15, %v375_v46  ;;  %v2352_v36 = vmul.f32 %v3901_v26, %v3853_v18  ;;  %v961_v1 = vrot.slane %v960_v13, 2  ;;  %v670_v7 = vadd.f32 %v669_v29, %v668_v27 }
 0x23a   :  { %v2025_v3 = vperm.slane %v1961_v32, 0  ;;  %vm2356_vm14 = vweird.f32 %v3853_v18  ;;  %v2360_v45 = vand.u32 2147483647, %v3853_v18  ;;  %3312 = vrcp.f32 %v5004_v4 }
 0x23b   :  { %v1365_v6 = vsub.f32 1.5, %v1364_v38  ;;  %v415_v59 = vmul.f32 0.015625, %v377_v14  ;;  %v2353_v24 = vsub.f32 1.0, %v2352_v36  ;;  %v5020_v28 = vpop.eup %3308  ;;  %v962_v46 = vadd.f32 %v961_v1, %v960_v13 }
 0x23c   :  { %5725 = vst [vmem:[#allocation25_spill] sm:$0xff] %v5020_v28  ;;  %v2089_v9 = vmul.f32 %v2025_v3, %v4793_v23  ;;  %v671_v15 = vrot.slane %v670_v7, 1  ;;  %v2362_v37 = vand.u32 2147483648, %v3853_v18  ;;  %v3311_v22 = vpop.eup %3310  ;;  %3314 = vpow2.f32 %v3069_v50 }
 0x23d   :  { %v1366_v27 = vmul.f32 %v3303_v55, %v1365_v6  ;;  %v5025_v16 = vmul.f32 %v415_v59, %v4935_v40  ;;  %v2354_v32 = vmul.f32 %v3901_v26, %v2353_v24  ;;  %v1877_v29 = vmul.f32 %v3311_v22, %v4996_v11  ;;  %v3377_v55 = vld [vmem:[%s5649_s2 + $0x8] ss:$0 sm:$0xff] }
 0x23e   :  { %v1885_v38 = vand.u32 2147483647, %v4996_v11  ;;  %v1887_v14 = vand.u32 2147483648, %v4996_v11  ;;  %v963_v36 = vrot.slane %v962_v46, 1  ;;  %vm5031_vm15 = vcmp.eq.f32.partialorder %v2360_v45, 8.507059e+37 }
 0x23f   :  { %v1367_v13 = vmul.f32 %v1366_v27, %v4958_v44  ;;  %v672_v50 = vadd.f32 %v671_v15, %v670_v7  ;;  %v659_v40 = vsel %vm160_vm1, %v5025_v16, 0.0  ;;  %vm2357_vm2 = vweird.f32 %v3901_v26 }
 0x240   :  { %v2185_v3 = vadd.f32 %v3377_v55, %v2089_v9  ;;  %v1878_v1 = vsub.f32 1.0, %v1877_v29  ;;  %v964_v6 = vadd.f32 %v963_v36, %v962_v46  ;;  %v660_v59 = vrot.slane %v659_v40, 4  ;;  %v5042_v45 = vpop.eup %3312  ;;  %vm5062_vm5 = vmor %vm2356_vm14, %vm2357_vm2 }
 0x241   :  { %v1369_v24 = vsel %vm1368_vm12, %v4958_v44, %v1367_v13  ;;  %v704_v7 = vmul.f32 0.25, %v672_v50  ;;  %v2355_v15 = vadd.f32 %v3901_v26, %v2354_v32  ;;  %vm1882_vm3 = vweird.f32 %v3311_v22 }
 0x242   :  { %v1879_v27 = vmul.f32 %v3311_v22, %v1878_v1  ;;  %v1372_v28 = vsel %vm1370_vm13, %v1371_v31, %v1369_v24  ;;  %v5050_v19 = vmul.f32 0.33333334, %v964_v6  ;;  %v3475_v9 = vmov 0   ;;  %v3315_v46 = vpop.eup %3314 }
 0x243   :  { %3083 = vset.pattern.permute.xlu1 %v3475_v9  ;;  %3081 = vset.pattern.permute.xlu2 %v3475_v9  ;;  %vm1881_vm4 = vweird.f32 %v4996_v11  ;;  %v5053_v29 = vadd.f32 1e-05, %v1372_v28  ;;  %v5056_v36 = vsub.f32 %v4974_v0, %v704_v7  ;;  %v661_v13 = vadd.f32 %v660_v59, %v659_v40 }
 0x244   :  { %3082 = vset.pattern.permute.xlu0 %v3475_v9  ;;  %v1880_v31 = vadd.f32 %v3311_v22, %v1879_v27  ;;  %3316 = vrsqrt.f32 %v5050_v19  ;;  %v2359_v11 = vsel %vm5062_vm5, %v3901_v26, %v2355_v15  ;;  %v2322_v0 = vmul.f32 %v3972_v60, %v3883_v57  ;;  %vm1883_vm6 = vmor %vm1881_vm4, %vm1882_vm3 }
 0x245   :  { %v3068_v28 = vmul.f32 -1.442695, %v2185_v3  ;;  %v1888_v32 = vor.u32 1.1754944e-38, %v1887_v14  ;;  %3318 = vrcp.f32 %v5053_v29  ;;  %v2363_v18 = vor.u32 1.1754944e-38, %v2362_v37  ;;  %v3378_v14 = vld [vmem:[%s5648_s1 + $0xd] sm:$0x1] }
 0x246   :  { %v1884_v50 = vsel %vm1883_vm6, %v3311_v22, %v1880_v31  ;;  %vm1886_vm7 = vcmp.eq.f32.partialorder %v1885_v38, 8.507059e+37  ;;  %v768_v40 = vmul.f32 %v5056_v36, %v5056_v36  ;;  %v662_v55 = vrot.slane %v661_v13, 2 }
 0x247   :  { %v5076_v1 = vadd.f32 1.0, %v3315_v46  ;;  %v1889_v6 = vsel %vm1886_vm7, %v1888_v32, %v1884_v50  ;;  %v1870_v26 = vand.u32 2147483647, %v5053_v29  ;;  %v2364_v3 = vsel %vm5031_vm15, %v2363_v18, %v2359_v11 }
 0x248   :  { %v1966_v59 = vmul.f32 %v3378_v14, %v1889_v6  ;;  %v986_v37 = vsel %vm160_vm1, %v768_v40, 0.0  ;;  %v663_v22 = vadd.f32 %v662_v55, %v661_v13  ;;  %2813 = vperm.xlu1 %3083, %v2364_v3   ;;  %v2323_v38 = vsub.f32 1.0, %v2322_v0 }
 0x249   :  { %3320 = vpow2.f32 %v3068_v28  ;;  %v1872_v24 = vand.u32 2147483648, %v5053_v29  ;;  %v987_v7 = vrot.slane %v986_v37, 4  ;;  %vm2326_vm8 = vweird.f32 %v3883_v57 }
 0x24a   :  { %v3317_v15 = vpop.eup %3316  ;;  %v2030_v27 = vperm.slane %v1966_v59, 0  ;;  %vm1866_vm9 = vweird.f32 %v5053_v29  ;;  %v664_v23 = vrot.slane %v663_v22, 1  ;;  %v2324_v9 = vmul.f32 %v3972_v60, %v2323_v38 }
 0x24b   :  { %v2330_v46 = vand.u32 2147483647, %v3883_v57  ;;  %v3319_v44 = vpop.eup %3318  ;;  %v1350_v13 = vmul.f32 %v3317_v15, %v5050_v19  ;;  %v988_v31 = vadd.f32 %v987_v7, %v986_v37  ;;  %vm2327_vm10 = vweird.f32 %v3972_v60 }
 0x24c   :  { %v2332_v11 = vand.u32 2147483648, %v3883_v57  ;;  %v2094_v0 = vmul.f32 %v2030_v27, %v4849_v34  ;;  %v1862_v28 = vmul.f32 %v3319_v44, %v5053_v29  ;;  %vm1867_vm11 = vweird.f32 %v3319_v44  ;;  %v3379_v34 = vld [vmem:[%s5649_s2 + $0xd] ss:$0 sm:$0xff]  ;;  %vm2328_vm15 = vmor %vm2326_vm8, %vm2327_vm10 }
 0x24d   :  { %vm5095_vm12 = vcmp.eq.f32.partialorder %v1870_v26, 8.507059e+37  ;;  %v665_v18 = vadd.f32 %v664_v23, %v663_v22  ;;  %v1351_v50 = vmul.f32 %v3317_v15, %v1350_v13  ;;  %v989_v40 = vrot.slane %v988_v31, 2  ;;  %vm1868_vm3 = vmor %vm1866_vm9, %vm1867_vm11 }
 0x24e   :  { %v2325_v55 = vadd.f32 %v3972_v60, %v2324_v9  ;;  %vm5100_vm13 = vcmp.eq.f32.partialorder %v2330_v46, 8.507059e+37  ;;  %v2190_v3 = vadd.f32 %v3379_v34, %v2094_v0  ;;  %v1863_v14 = vsub.f32 1.0, %v1862_v28 }
 0x24f   :  { %vm1356_vm14 = vcmp.eq.f32.partialorder %v5050_v19, inf  ;;  %v703_v26 = vmul.f32 0.25, %v665_v18  ;;  %v2333_v59 = vor.u32 1.1754944e-38, %v2332_v11  ;;  %v3321_v37 = vpop.eup %3320  ;;  %v1352_v22 = vmul.f32 0.5, %v1351_v50 }
 0x250   :  { %v990_v38 = vadd.f32 %v989_v40, %v988_v31  ;;  %v2329_v7 = vsel %vm2328_vm15, %v3972_v60, %v2325_v55  ;;  %v2397_v27 = vmul.f32 %v4032_v54, %v3963_v63  ;;  %v3073_v23 = vmul.f32 -1.442695, %v2190_v3 }
 0x251   :  { %v1864_v9 = vmul.f32 %v3319_v44, %v1863_v14  ;;  %v5116_v46 = vsub.f32 %v5025_v16, %v703_v26  ;;  %v2334_v13 = vsel %vm5100_vm13, %v2333_v59, %v2329_v7  ;;  %v1873_v0 = vor.u32 1.1754944e-38, %v1872_v24  ;;  %v3380_v26 = vld [vmem:[%s5648_s1 + $0xc] sm:$0x1] }
 0x252   :  { %v1353_v57 = vsub.f32 1.5, %v1352_v22  ;;  %v991_v28 = vrot.slane %v990_v38, 1  ;;  %2803 = vperm.xlu2 %3081, %v2334_v13   ;;  %v2398_v11 = vsub.f32 1.0, %v2397_v27  ;;  %3322 = vpow2.f32 %v3073_v23 }
 0x253   :  { %v1865_v31 = vadd.f32 %v3319_v44, %v1864_v9  ;;  %v767_v60 = vmul.f32 %v5116_v46, %v5116_v46  ;;  %vm2402_vm2 = vweird.f32 %v4032_v54  ;;  %v2405_v24 = vand.u32 2147483647, %v3963_v63 }
 0x254   :  { %v1354_v16 = vmul.f32 %v3317_v15, %v1353_v57  ;;  %v992_v18 = vadd.f32 %v991_v28, %v990_v38  ;;  %v2399_v50 = vmul.f32 %v4032_v54, %v2398_v11  ;;  %v2407_v6 = vand.u32 2147483648, %v3963_v63 }
 0x255   :  { %v1869_v40 = vsel %vm1868_vm3, %v3319_v44, %v1865_v31  ;;  %v979_v55 = vsel %vm160_vm1, %v767_v60, 0.0  ;;  %v2367_v34 = vmul.f32 %v4040_v51, %v3965_v21  ;;  %vm1358_vm1 = vcmp.eq.f32.partialorder %v5050_v19, 0.0  ;;  %v3381_v31 = vld [vmem:[%s5649_s2 + $0xc] ss:$0 sm:$0xff] }
 0x256   :  { %v1874_v3 = vsel %vm5095_vm12, %v1873_v0, %v1869_v40  ;;  %v1355_v29 = vmul.f32 %v1354_v16, %v5050_v19  ;;  %v5135_v14 = vmul.f32 0.33333334, %v992_v18  ;;  %v980_v15 = vrot.slane %v979_v55, 4 }
 0x257   :  { %v1965_v44 = vmul.f32 %v3380_v26, %v1874_v3  ;;  %v1359_v59 = vand.u32 2147483648, %v5050_v19  ;;  %v2400_v22 = vadd.f32 %v4032_v54, %v2399_v50  ;;  %v5143_v38 = vadd.f32 1.0, %v3321_v37 }
 0x258   :  { %v1357_v32 = vsel %vm1356_vm14, %v5050_v19, %v1355_v29  ;;  %3324 = vrsqrt.f32 %v5135_v14  ;;  %vm2401_vm4 = vweird.f32 %v3963_v63  ;;  %v3323_v7 = vpop.eup %3322  ;;  %v981_v9 = vadd.f32 %v980_v15, %v979_v55 }
 0x259   :  { %v2029_v27 = vperm.slane %v1965_v44, 0  ;;  %v1360_v23 = vsel %vm1358_vm1, %v1359_v59, %v1357_v32  ;;  %vm2403_vm5 = vmor %vm2401_vm4, %vm2402_vm2  ;;  %v2408_v13 = vor.u32 1.1754944e-38, %v2407_v6  ;;  %vm2406_vm6 = vcmp.eq.f32.partialorder %v2405_v24, 8.507059e+37 }
 0x25a   :  { %v5152_v0 = vadd.f32 1e-05, %v1360_v23  ;;  %v2404_v37 = vsel %vm2403_vm5, %v4032_v54, %v2400_v22  ;;  %v2368_v57 = vsub.f32 1.0, %v2367_v34  ;;  %3326 = vrcp.f32 %v5076_v1 }
 0x25b   :  { %v2093_v19 = vmul.f32 %v2029_v27, %v4911_v8  ;;  %v982_v28 = vrot.slane %v981_v9, 2  ;;  %v2409_v63 = vsel %vm2406_vm6, %v2408_v13, %v2404_v37  ;;  %3328 = vrcp.f32 %v5143_v38 }
 0x25c   :  { %v1407_v11 = vand.u32 2147483648, %v5135_v14  ;;  %2828 = vperm.xlu1 %3083, %v2409_v63   ;;  %3330 = vrcp.f32 %v5152_v0  ;;  %v2369_v16 = vmul.f32 %v4040_v51, %v2368_v57  ;;  %v5164_v50 = vadd.f32 1.0, %v3323_v7 }
 0x25d   :  { %v2189_v60 = vadd.f32 %v3381_v31, %v2093_v19  ;;  %v983_v54 = vadd.f32 %v982_v28, %v981_v9  ;;  %vm2371_vm7 = vweird.f32 %v3965_v21  ;;  %vm2372_vm8 = vweird.f32 %v4040_v51 }
 0x25e   :  { %v3325_v18 = vpop.eup %3324  ;;  %v2375_v8 = vand.u32 2147483647, %v3965_v21  ;;  %v2370_v6 = vadd.f32 %v4040_v51, %v2369_v16  ;;  %v1855_v34 = vand.u32 2147483647, %v5152_v0  ;;  %v1857_v3 = vand.u32 2147483648, %v5152_v0  ;;  %vm5173_vm9 = vmor %vm2371_vm7, %vm2372_vm8 }
 0x25f   :  { %v3072_v24 = vmul.f32 -1.442695, %v2189_v60  ;;  %v1398_v40 = vmul.f32 %v3325_v18, %v5135_v14  ;;  %v984_v55 = vrot.slane %v983_v54, 1  ;;  %v2377_v15 = vand.u32 2147483648, %v3965_v21 }
 0x260   :  { %v2337_v26 = vmul.f32 %v4076_v2, %v4027_v49  ;;  %v5180_v44 = vpop.eup %3326  ;;  %v2374_v32 = vsel %vm5173_vm9, %v4040_v51, %v2370_v6  ;;  %vm2376_vm10 = vcmp.eq.f32.partialorder %v2375_v8, 8.507059e+37  ;;  %vm1404_vm11 = vcmp.eq.f32.partialorder %v5135_v14, inf }
 0x261   :  { %v1399_v59 = vmul.f32 %v3325_v18, %v1398_v40  ;;  %v985_v22 = vadd.f32 %v984_v55, %v983_v54  ;;  %v5185_v7 = vpop.eup %3328  ;;  %3332 = vpow2.f32 %v3072_v24  ;;  %v2378_v27 = vor.u32 1.1754944e-38, %v2377_v15 }
 0x262   :  { %v2338_v23 = vsub.f32 1.0, %v2337_v26  ;;  %vm2342_vm12 = vweird.f32 %v4076_v2  ;;  %v3331_v21 = vpop.eup %3330  ;;  %vm1406_vm13 = vcmp.eq.f32.partialorder %v5135_v14, 0.0  ;;  %v2347_v37 = vand.u32 2147483648, %v4027_v49 }
 0x263   :  { %v1400_v9 = vmul.f32 0.5, %v1399_v59  ;;  %v5190_v13 = vmul.f32 0.33333334, %v985_v22  ;;  %v2427_v51 = vmul.f32 %v4235_v39, %v4122_v10  ;;  %v1847_v57 = vmul.f32 %v3331_v21, %v5152_v0 }
 0x264   :  { %v2379_v19 = vsel %vm2376_vm10, %v2378_v27, %v2374_v32  ;;  %v2339_v28 = vmul.f32 %v4076_v2, %v2338_v23  ;;  %v2345_v63 = vand.u32 2147483647, %v4027_v49  ;;  %vm1851_vm14 = vweird.f32 %v5152_v0 }
 0x265   :  { %vm5199_vm15 = vcmp.eq.f32.partialorder %v1855_v34, 8.507059e+37  ;;  %v1401_v60 = vsub.f32 1.5, %v1400_v9  ;;  %3334 = vrsqrt.f32 %v5190_v13  ;;  %2818 = vperm.xlu2 %3081, %v2379_v19   ;;  %v1848_v54 = vsub.f32 1.0, %v1847_v57 }
 0x266   :  { %v1858_v16 = vor.u32 1.1754944e-38, %v1857_v3  ;;  %v2340_v8 = vadd.f32 %v4076_v2, %v2339_v28  ;;  %vm2341_vm2 = vweird.f32 %v4027_v49  ;;  %vm1852_vm3 = vweird.f32 %v3331_v21 }
 0x267   :  { %v1402_v24 = vmul.f32 %v3325_v18, %v1401_v60  ;;  %vm2343_vm1 = vmor %vm2341_vm2, %vm2342_vm12  ;;  %v2348_v40 = vor.u32 1.1754944e-38, %v2347_v37  ;;  %v2428_v55 = vsub.f32 1.0, %v2427_v51  ;;  %v3333_v6 = vpop.eup %3332  ;;  %v1849_v34 = vmul.f32 %v3331_v21, %v1848_v54 }
 0x268   :  { %v2344_v29 = vsel %vm2343_vm1, %v4076_v2, %v2340_v8  ;;  %vm2346_vm4 = vcmp.eq.f32.partialorder %v2345_v63, 8.507059e+37  ;;  %vm2432_vm5 = vweird.f32 %v4235_v39  ;;  %v2435_v49 = vand.u32 2147483647, %v4122_v10  ;;  %vm1853_vm7 = vmor %vm1851_vm14, %vm1852_vm3 }
 0x269   :  { %v1403_v3 = vmul.f32 %v1402_v24, %v5135_v14  ;;  %v2349_v15 = vsel %vm2346_vm4, %v2348_v40, %v2344_v29  ;;  %v2429_v26 = vmul.f32 %v4235_v39, %v2428_v55  ;;  %v1850_v18 = vadd.f32 %v3331_v21, %v1849_v34 }
 0x26a   :  { %2808 = vperm.xlu0 %3082, %v2349_v15   ;;  %vm2431_vm6 = vweird.f32 %v4122_v10  ;;  %v2437_v59 = vand.u32 2147483648, %v4122_v10  ;;  %v2382_v22 = vmul.f32 %v3893_v25, %v3846_v56  ;;  %v5217_v32 = vadd.f32 1.0, %v3333_v6 }
 0x26b   :  { %v3335_v2 = vpop.eup %3334  ;;  %v1405_v27 = vsel %vm1404_vm11, %v5135_v14, %v1403_v3  ;;  %v2430_v23 = vadd.f32 %v4235_v39, %v2429_v26  ;;  %vm2436_vm8 = vcmp.eq.f32.partialorder %v2435_v49, 8.507059e+37  ;;  %v1854_v9 = vsel %vm1853_vm7, %v3331_v21, %v1850_v18  ;;  %vm2433_vm9 = vmor %vm2431_vm6, %vm2432_vm5  ;;  %v3382_v14 = vld [vmem:[%s5648_s1 + $0xb] sm:$0x1] }
 0x26c   :  { %v1408_v10 = vsel %vm1406_vm13, %v1407_v11, %v1405_v27  ;;  %v1386_v37 = vmul.f32 %v3335_v2, %v5190_v13  ;;  %v2438_v0 = vor.u32 1.1754944e-38, %v2437_v59  ;;  %v1859_v51 = vsel %vm5199_vm15, %v1858_v16, %v1854_v9 }
 0x26d   :  { %v5235_v57 = vadd.f32 1e-05, %v1408_v10  ;;  %v2434_v19 = vsel %vm2433_vm9, %v4235_v39, %v2430_v23  ;;  %v2383_v28 = vsub.f32 1.0, %v2382_v22  ;;  %3336 = vrcp.f32 %v5164_v50 }
 0x26e   :  { %v1964_v11 = vmul.f32 %v3382_v14, %v1859_v51  ;;  %v1387_v21 = vmul.f32 %v3335_v2, %v1386_v37  ;;  %v2439_v63 = vsel %vm2436_vm8, %v2438_v0, %v2434_v19  ;;  %vm1392_vm10 = vcmp.eq.f32.partialorder %v5190_v13, inf }
 0x26f   :  { %3338 = vrcp.f32 %v5235_v57  ;;  %v1395_v31 = vand.u32 2147483648, %v5190_v13  ;;  %2838 = vperm.xlu1 %3083, %v2439_v63   ;;  %vm2387_vm11 = vweird.f32 %v3893_v25  ;;  %vm1394_vm12 = vcmp.eq.f32.partialorder %v5190_v13, 0.0 }
 0x270   :  { %v2028_v39 = vperm.slane %v1964_v11, 0  ;;  %v1388_v60 = vmul.f32 0.5, %v1387_v21  ;;  %v2384_v54 = vmul.f32 %v3893_v25, %v2383_v28  ;;  %v2390_v16 = vand.u32 2147483647, %v3846_v56 }
 0x271   :  { %3340 = vrcp.f32 %v5217_v32  ;;  %vm2386_vm13 = vweird.f32 %v3846_v56  ;;  %v2392_v8 = vand.u32 2147483648, %v3846_v56  ;;  %v2442_v24 = vmul.f32 %v4079_v5, %v4034_v42  ;;  %v3383_v56 = vld [vmem:[%s5649_s2 + $0xb] ss:$0 sm:$0xff] }
 0x272   :  { %v2092_v40 = vmul.f32 %v2028_v39, %v4971_v30  ;;  %v1915_v55 = vand.u32 2147483647, %v5235_v57  ;;  %v1389_v6 = vsub.f32 1.5, %v1388_v60  ;;  %v2385_v34 = vadd.f32 %v3893_v25, %v2384_v54  ;;  %vm2388_vm14 = vmor %vm2386_vm13, %vm2387_vm11 }
 0x273   :  { %vm2391_vm15 = vcmp.eq.f32.partialorder %v2390_v16, 8.507059e+37  ;;  %v2393_v29 = vor.u32 1.1754944e-38, %v2392_v8  ;;  %v2443_v3 = vsub.f32 1.0, %v2442_v24  ;;  %vm2447_vm2 = vweird.f32 %v4079_v5  ;;  %v5258_v15 = vpop.eup %3336 }
 0x274   :  { %v2188_v26 = vadd.f32 %v3383_v56, %v2092_v40  ;;  %v1390_v49 = vmul.f32 %v3335_v2, %v1389_v6  ;;  %v2389_v30 = vsel %vm2388_vm14, %v3893_v25, %v2385_v34  ;;  %v2450_v18 = vand.u32 2147483647, %v4034_v42 }
 0x275   :  { %v3339_v59 = vpop.eup %3338  ;;  %v2394_v22 = vsel %vm2391_vm15, %v2393_v29, %v2389_v30  ;;  %v2444_v27 = vmul.f32 %v4079_v5, %v2443_v3  ;;  %v2452_v23 = vand.u32 2147483648, %v4034_v42  ;;  %v2472_v9 = vmul.f32 %v4420_v17, %v4295_v41 }
 0x276   :  { %v1907_v10 = vmul.f32 %v3339_v59, %v5235_v57  ;;  %v1917_v37 = vand.u32 2147483648, %v5235_v57  ;;  %v1391_v0 = vmul.f32 %v1390_v49, %v5190_v13  ;;  %2823 = vperm.xlu2 %3081, %v2394_v22   ;;  %vm2446_vm3 = vweird.f32 %v4034_v42  ;;  %v5739_v22 = vld [vmem:[#allocation8_spill] sm:$0xff] }
 0x277   :  { %v5273_v25 = vpop.eup %3340  ;;  %v3071_v2 = vmul.f32 -1.442695, %v2188_v26  ;;  %vm1912_vm1 = vweird.f32 %v3339_v59  ;;  %v2445_v51 = vadd.f32 %v4079_v5, %v2444_v27  ;;  %v2473_v19 = vsub.f32 1.0, %v2472_v9  ;;  %vm2448_vm4 = vmor %vm2446_vm3, %vm2447_vm2  ;;  %v5740_v27 = vld [vmem:[#allocation9_spill] sm:$0xff] }
 0x278   :  { %v1908_v28 = vsub.f32 1.0, %v1907_v10  ;;  %v1393_v14 = vsel %vm1392_vm10, %v5190_v13, %v1391_v0  ;;  %vm2451_vm5 = vcmp.eq.f32.partialorder %v2450_v18, 8.507059e+37  ;;  %v2453_v11 = vor.u32 1.1754944e-38, %v2452_v23 }
 0x279   :  { %v1396_v42 = vsel %vm1394_vm12, %v1395_v31, %v1393_v14  ;;  %v2449_v21 = vsel %vm2448_vm4, %v4079_v5, %v2445_v51  ;;  %v2474_v63 = vmul.f32 %v4420_v17, %v2473_v19  ;;  %vm2477_vm6 = vweird.f32 %v4420_v17  ;;  %v5738_v31 = vld [vmem:[#allocation10_spill] sm:$0xff] }
 0x27a   :  { %v1909_v39 = vmul.f32 %v3339_v59, %v1908_v28  ;;  %v5286_v60 = vadd.f32 1e-05, %v1396_v42  ;;  %v2454_v54 = vsel %vm2451_vm5, %v2453_v11, %v2449_v21  ;;  %v2480_v16 = vand.u32 2147483647, %v4295_v41  ;;  %v5743_v42 = vld [vmem:[#allocation15_spill] sm:$0xff]  ;;  %v5744_v21 = vld [vmem:[#allocation16_spill] sm:$0xff] }
 0x27b   :  { %2843 = vperm.xlu0 %3082, %v2454_v54   ;;  %v2475_v8 = vadd.f32 %v4420_v17, %v2474_v63  ;;  %vm2476_vm7 = vweird.f32 %v4295_v41  ;;  %v2482_v13 = vand.u32 2147483648, %v4295_v41  ;;  %v2487_v5 = vmul.f32 %v5738_v31, %v4267_v20 }
 0x27c   :  { %v1910_v24 = vadd.f32 %v3339_v59, %v1909_v39  ;;  %vm1911_vm8 = vweird.f32 %v5235_v57  ;;  %vm1916_vm9 = vcmp.eq.f32.partialorder %v1915_v55, 8.507059e+37  ;;  %3342 = vrcp.f32 %v5286_v60  ;;  %vm2478_vm10 = vmor %vm2476_vm7, %vm2477_vm6  ;;  %v3384_v55 = vld [vmem:[%s5648_s1 + $0xf] sm:$0x1] }
 0x27d   :  { %vm1913_vm11 = vmor %vm1911_vm8, %vm1912_vm1  ;;  %v1918_v40 = vor.u32 1.1754944e-38, %v1917_v37  ;;  %v1902_v6 = vand.u32 2147483648, %v5286_v60  ;;  %v2479_v34 = vsel %vm2478_vm10, %v4420_v17, %v2475_v8  ;;  %v2483_v29 = vor.u32 1.1754944e-38, %v2482_v13  ;;  %v3385_v13 = vld [vmem:[%s5649_s2 + $0xf] ss:$0 sm:$0xff] }
 0x27e   :  { %3344 = vpow2.f32 %v3071_v2  ;;  %v1914_v41 = vsel %vm1913_vm11, %v3339_v59, %v1910_v24  ;;  %vm2481_vm12 = vcmp.eq.f32.partialorder %v2480_v16, 8.507059e+37  ;;  %v2488_v3 = vsub.f32 1.0, %v2487_v5 }
 0x27f   :  { %v1919_v56 = vsel %vm1916_vm9, %v1918_v40, %v1914_v41  ;;  %v1900_v26 = vand.u32 2147483647, %v5286_v60  ;;  %v2484_v57 = vsel %vm2481_vm12, %v2483_v29, %v2479_v34  ;;  %vm2492_vm13 = vweird.f32 %v5738_v31 }
 0x280   :  { %v1968_v49 = vmul.f32 %v3384_v55, %v1919_v56  ;;  %2853 = vperm.xlu1 %3083, %v2484_v57   ;;  %v2489_v30 = vmul.f32 %v5738_v31, %v2488_v3  ;;  %v2495_v17 = vand.u32 2147483647, %v4267_v20  ;;  %v2497_v18 = vand.u32 2147483648, %v4267_v20  ;;  %v5745_v3 = vld [vmem:[#allocation12_spill] sm:$0xff]  ;;  %v5746_v56 = vld [vmem:[#allocation14_spill] sm:$0xff] }
 0x281   :  { %vm1896_vm14 = vweird.f32 %v5286_v60  ;;  %v1903_v59 = vor.u32 1.1754944e-38, %v1902_v6  ;;  %vm2491_vm15 = vweird.f32 %v4267_v20  ;;  %v2412_v23 = vmul.f32 %v5740_v27, %v5739_v22 }
 0x282   :  { %v3343_v9 = vpop.eup %3342  ;;  %v2032_v10 = vperm.slane %v1968_v49, 0  ;;  %v2490_v37 = vadd.f32 %v5738_v31, %v2489_v30  ;;  %vm2416_vm2 = vweird.f32 %v5739_v22  ;;  %vm2417_vm3 = vweird.f32 %v5740_v27  ;;  %vm2493_vm4 = vmor %vm2491_vm15, %vm2492_vm13 }
 0x283   :  { %v1892_v0 = vmul.f32 %v3343_v9, %v5286_v60  ;;  %vm5315_vm1 = vcmp.eq.f32.partialorder %v1900_v26, 8.507059e+37  ;;  %vm2496_vm5 = vcmp.eq.f32.partialorder %v2495_v17, 8.507059e+37  ;;  %v2498_v20 = vor.u32 1.1754944e-38, %v2497_v18  ;;  %vm2418_vm8 = vmor %vm2416_vm2, %vm2417_vm3 }
 0x284   :  { %v2413_v51 = vsub.f32 1.0, %v2412_v23  ;;  %v3345_v19 = vpop.eup %3344  ;;  %v2096_v28 = vmul.f32 %v2032_v10, %v5056_v36  ;;  %v2494_v14 = vsel %vm2493_vm4, %v5738_v31, %v2490_v37  ;;  %v2422_v11 = vand.u32 2147483648, %v5739_v22  ;;  %v5747_v37 = vld [vmem:[#allocation11_spill] sm:$0xff] }
 0x285   :  { %v2517_v63 = vmul.f32 %v5744_v21, %v5743_v42  ;;  %v1893_v39 = vsub.f32 1.0, %v1892_v0  ;;  %v2499_v54 = vsel %vm2496_vm5, %v2498_v20, %v2494_v14  ;;  %v2420_v8 = vand.u32 2147483647, %v5739_v22  ;;  %v5748_v0 = vld [vmem:[#allocation13_spill] sm:$0xff] }
 0x286   :  { %v2414_v16 = vmul.f32 %v5740_v27, %v2413_v51  ;;  %v2192_v5 = vadd.f32 %v3385_v13, %v2096_v28  ;;  %vm1897_vm6 = vweird.f32 %v3343_v9  ;;  %2858 = vperm.xlu0 %3082, %v2499_v54   ;;  %v2423_v36 = vor.u32 1.1754944e-38, %v2422_v11 }
 0x287   :  { %v2518_v31 = vsub.f32 1.0, %v2517_v63  ;;  %v1894_v24 = vmul.f32 %v3343_v9, %v1893_v39  ;;  %vm2522_vm7 = vweird.f32 %v5744_v21  ;;  %v2525_v6 = vand.u32 2147483647, %v5743_v42  ;;  %vm1898_vm11 = vmor %vm1896_vm14, %vm1897_vm6 }
 0x288   :  { %v2415_v40 = vadd.f32 %v5740_v27, %v2414_v16  ;;  %v3075_v34 = vmul.f32 -1.442695, %v2192_v5  ;;  %v2527_v41 = vand.u32 2147483648, %v5743_v42  ;;  %v2532_v26 = vmul.f32 %v5746_v56, %v5745_v3 }
 0x289   :  { %v2519_v29 = vmul.f32 %v5744_v21, %v2518_v31  ;;  %v1895_v57 = vadd.f32 %v3343_v9, %v1894_v24  ;;  %vm2421_vm9 = vcmp.eq.f32.partialorder %v2420_v8, 8.507059e+37  ;;  %vm2521_vm10 = vweird.f32 %v5743_v42 }
 0x28a   :  { %v2419_v55 = vsel %vm2418_vm8, %v5740_v27, %v2415_v40  ;;  %3346 = vpow2.f32 %v3075_v34  ;;  %vm2526_vm12 = vcmp.eq.f32.partialorder %v2525_v6, 8.507059e+37  ;;  %vm2523_vm13 = vmor %vm2521_vm10, %vm2522_vm7  ;;  %v2528_v18 = vor.u32 1.1754944e-38, %v2527_v41  ;;  %v3387_v6 = vld [vmem:[%s5649_s2 + $0xe] ss:$0 sm:$0xff]  ;;  %s3476_s2 = smov [#allocation5]  }
 0x28b   :  { %v2424_v49 = vsel %vm2421_vm9, %v2423_v36, %v2419_v55  ;;  %v2520_v30 = vadd.f32 %v5744_v21, %v2519_v29  ;;  %v1899_v17 = vsel %vm1898_vm11, %v3343_v9, %v1895_v57  ;;  %v2533_v22 = vsub.f32 1.0, %v2532_v26  ;;  %v3386_v9 = vld [vmem:[%s5648_s1 + $0xe] sm:$0x1]  ;;  %v5751_v26 = vld [vmem:[#allocation19_spill] sm:$0xff]  ;;  %s3029_s14 = sshll.u32 %s3476_s2, 4  ;;  %s3030_s14 = int_to_ptr.vmem [resolvable:$true] %s3029_s14 }
 0x28c   :  { %2833 = vperm.xlu2 %3081, %v2424_v49   ;;  %v2540_v27 = vand.u32 2147483647, %v5745_v3  ;;  %v1904_v23 = vsel %vm5315_vm1, %v1903_v59, %v1899_v17  ;;  %v2542_v60 = vand.u32 2147483648, %v5745_v3  ;;  %v2457_v20 = vmul.f32 %v5748_v0, %v5747_v37 }
 0x28d   :  { %v2524_v10 = vsel %vm2523_vm13, %v5744_v21, %v2520_v30  ;;  %v1967_v51 = vmul.f32 %v3386_v9, %v1904_v23  ;;  %v2534_v14 = vmul.f32 %v5746_v56, %v2533_v22  ;;  %vm2537_vm14 = vweird.f32 %v5746_v56  ;;  %v5752_v23 = vld [vmem:[#allocation17_spill] sm:$0xff] }
 0x28e   :  { %v2529_v28 = vsel %vm2526_vm12, %v2528_v18, %v2524_v10  ;;  %v5362_v11 = vadd.f32 1.0, %v3345_v19  ;;  %vm2536_vm15 = vweird.f32 %v5745_v3  ;;  %vm5365_vm2 = vcmp.eq.f32.partialorder %v2540_v27, 8.507059e+37  ;;  %v5753_v10 = vld [vmem:[#allocation18_spill] sm:$0xff] }
 0x28f   :  { %2868 = vperm.xlu1 %3083, %v2529_v28   ;;  %v2458_v2 = vsub.f32 1.0, %v2457_v20  ;;  %v2031_v42 = vperm.slane %v1967_v51, 0  ;;  %v2535_v21 = vadd.f32 %v5746_v56, %v2534_v14  ;;  %v2465_v63 = vand.u32 2147483647, %v5747_v37  ;;  %vm2538_vm3 = vmor %vm2536_vm15, %vm2537_vm14 }
 0x290   :  { %v2467_v39 = vand.u32 2147483648, %v5747_v37  ;;  %v3347_v54 = vpop.eup %3346  ;;  %v2543_v16 = vor.u32 1.1754944e-38, %v2542_v60  ;;  %vm2462_vm1 = vweird.f32 %v5748_v0  ;;  %v2562_v8 = vmul.f32 %v4670_v43, %v4619_v12 }
 0x291   :  { %v2459_v19 = vmul.f32 %v5748_v0, %v2458_v2  ;;  %v2095_v13 = vmul.f32 %v2031_v42, %v5116_v46  ;;  %v2539_v5 = vsel %vm2538_vm3, %v5746_v56, %v2535_v21  ;;  %vm2461_vm4 = vweird.f32 %v5747_v37 }
 0x292   :  { %vm2567_vm5 = vweird.f32 %v4670_v43  ;;  %v5380_v36 = vadd.f32 1.0, %v3347_v54  ;;  %v2544_v31 = vsel %vm5365_vm2, %v2543_v16, %v2539_v5  ;;  %v2563_v40 = vsub.f32 1.0, %v2562_v8  ;;  %vm2463_vm6 = vmor %vm2461_vm4, %vm2462_vm1  ;;  %v5754_v8 = vld [vmem:[#allocation21_spill] sm:$0xff] }
 0x293   :  { %v2460_v24 = vadd.f32 %v5748_v0, %v2459_v19  ;;  %v2191_v34 = vadd.f32 %v3387_v6, %v2095_v13  ;;  %2873 = vperm.xlu0 %3082, %v2544_v31   ;;  %vm2466_vm7 = vcmp.eq.f32.partialorder %v2465_v63, 8.507059e+37  ;;  %v2468_v46 = vor.u32 1.1754944e-38, %v2467_v39  ;;  %v5755_v13 = vld [vmem:[#allocation23_spill] sm:$0xff] }
 0x294   :  { %v2572_v29 = vand.u32 2147483648, %v4619_v12  ;;  %v2564_v3 = vmul.f32 %v4670_v43, %v2563_v40  ;;  %v2570_v56 = vand.u32 2147483647, %v4619_v12  ;;  %v2577_v57 = vmul.f32 %v5751_v26, %v4556_v61 }
 0x295   :  { %v2464_v41 = vsel %vm2463_vm6, %v5748_v0, %v2460_v24  ;;  %3348 = vrcp.f32 %v5362_v11  ;;  %v3074_v55 = vmul.f32 -1.442695, %v2191_v34  ;;  %vm2566_vm8 = vweird.f32 %v4619_v12 }
 0x296   :  { %v2469_v49 = vsel %vm2466_vm7, %v2468_v46, %v2464_v41  ;;  %3350 = vrcp.f32 %v5380_v36  ;;  %v2565_v30 = vadd.f32 %v4670_v43, %v2564_v3  ;;  %v2578_v17 = vsub.f32 1.0, %v2577_v57  ;;  %vm2568_vm9 = vmor %vm2566_vm8, %vm2567_vm5  ;;  %v5756_v57 = vld [vmem:[#allocation20_spill] sm:$0xff] }
 0x297   :  { %2848 = vperm.xlu2 %3081, %v2469_v49   ;;  %v2585_v18 = vand.u32 2147483647, %v4556_v61  ;;  %3352 = vpow2.f32 %v3074_v55  ;;  %v2573_v22 = vor.u32 1.1754944e-38, %v2572_v29  ;;  %v2587_v27 = vand.u32 2147483648, %v4556_v61  ;;  %v5757_v55 = vld [vmem:[#allocation22_spill] sm:$0xff] }
 0x298   :  { %v2502_v60 = vmul.f32 %v5753_v10, %v5752_v23  ;;  %v2569_v12 = vsel %vm2568_vm9, %v4670_v43, %v2565_v30  ;;  %vm2571_vm10 = vcmp.eq.f32.partialorder %v2570_v56, 8.507059e+37  ;;  %v2579_v37 = vmul.f32 %v5751_v26, %v2578_v17 }
 0x299   :  { %vm2582_vm11 = vweird.f32 %v5751_v26  ;;  %v2574_v0 = vsel %vm2571_vm10, %v2573_v22, %v2569_v12  ;;  %vm2581_vm12 = vweird.f32 %v4556_v61  ;;  %vm2506_vm13 = vweird.f32 %v5752_v23 }
 0x29a   :  { %v2503_v20 = vsub.f32 1.0, %v2502_v60  ;;  %2883 = vperm.xlu1 %3083, %v2574_v0   ;;  %v2580_v9 = vadd.f32 %v5751_v26, %v2579_v37  ;;  %vm2586_vm14 = vcmp.eq.f32.partialorder %v2585_v18, 8.507059e+37  ;;  %v2512_v51 = vand.u32 2147483648, %v5752_v23  ;;  %vm2583_vm15 = vmor %vm2581_vm12, %vm2582_vm11  ;;  %v3388_v0 = vld [vmem:[#allocation2] sm:$0xf] }
 0x29b   :  { %v2607_v43 = vmul.f32 %v4905_v58, %v4812_v48  ;;  %v5413_v28 = vpop.eup %3348  ;;  %v2588_v14 = vor.u32 1.1754944e-38, %v2587_v27  ;;  %vm2507_vm2 = vweird.f32 %v5753_v10  ;;  %v2510_v61 = vand.u32 2147483647, %v5752_v23 }
 0x29c   :  { %v2504_v59 = vmul.f32 %v5753_v10, %v2503_v20  ;;  %v5418_v2 = vpop.eup %3350  ;;  %v2584_v42 = vsel %vm2583_vm15, %v5751_v26, %v2580_v9  ;;  %vm2611_vm3 = vweird.f32 %v4812_v48  ;;  %v2615_v63 = vand.u32 2147483647, %v4812_v48  ;;  %vm2508_vm1 = vmor %vm2506_vm13, %vm2507_vm2 }
 0x29d   :  { %v2608_v21 = vsub.f32 1.0, %v2607_v43  ;;  %v3353_v39 = vpop.eup %3352  ;;  %v2589_v54 = vsel %vm2586_vm14, %v2588_v14, %v2584_v42  ;;  %v2617_v19 = vand.u32 2147483648, %v4812_v48  ;;  %v2622_v5 = vmul.f32 %v5755_v13, %v5754_v8 }
 0x29e   :  { %v2505_v16 = vadd.f32 %v5753_v10, %v2504_v59  ;;  %v5427_v31 = vadd.f32 1.0, %v3353_v39  ;;  %2888 = vperm.xlu0 %3082, %v2589_v54   ;;  %v2513_v24 = vor.u32 1.1754944e-38, %v2512_v51  ;;  %vm2612_vm4 = vweird.f32 %v4905_v58 }
 0x29f   :  { %v2609_v40 = vmul.f32 %v4905_v58, %v2608_v21  ;;  %vm2511_vm5 = vcmp.eq.f32.partialorder %v2510_v61, 8.507059e+37  ;;  %v2623_v34 = vsub.f32 1.0, %v2622_v5  ;;  %v2630_v46 = vand.u32 2147483647, %v5754_v8  ;;  %vm2613_vm7 = vmor %vm2611_vm3, %vm2612_vm4 }
 0x2a0   :  { %v2509_v6 = vsel %vm2508_vm1, %v5753_v10, %v2505_v16  ;;  %vm2616_vm6 = vcmp.eq.f32.partialorder %v2615_v63, 8.507059e+37  ;;  %v2632_v3 = vand.u32 2147483648, %v5754_v8  ;;  %v2618_v56 = vor.u32 1.1754944e-38, %v2617_v19 }
 0x2a1   :  { %v2514_v29 = vsel %vm2511_vm5, %v2513_v24, %v2509_v6  ;;  %v2610_v41 = vadd.f32 %v4905_v58, %v2609_v40  ;;  %v2624_v26 = vmul.f32 %v5755_v13, %v2623_v34  ;;  %vm2627_vm8 = vweird.f32 %v5755_v13 }
 0x2a2   :  { %2863 = vperm.xlu2 %3081, %v2514_v29   ;;  %v2547_v49 = vmul.f32 %v5757_v55, %v5756_v57  ;;  %3354 = vrcp.f32 %v5427_v31  ;;  %vm2626_vm9 = vweird.f32 %v5754_v8  ;;  %v2555_v17 = vand.u32 2147483647, %v5756_v57 }
 0x2a3   :  { %v2614_v30 = vsel %vm2613_vm7, %v4905_v58, %v2610_v41  ;;  %v2625_v48 = vadd.f32 %v5755_v13, %v2624_v26  ;;  %vm2631_vm10 = vcmp.eq.f32.partialorder %v2630_v46, 8.507059e+37  ;;  %vm2628_vm11 = vmor %vm2626_vm9, %vm2627_vm8  ;;  %v2633_v27 = vor.u32 1.1754944e-38, %v2632_v3 }
 0x2a4   :  { %v2619_v18 = vsel %vm2616_vm6, %v2618_v56, %v2614_v30  ;;  %v2548_v22 = vsub.f32 1.0, %v2547_v49  ;;  %vm2551_vm12 = vweird.f32 %v5756_v57  ;;  %v2557_v23 = vand.u32 2147483648, %v5756_v57 }
 0x2a5   :  { %2898 = vperm.xlu1 %3083, %v2619_v18   ;;  %v2652_v10 = vmul.f32 %v5012_v35, %v4961_v47  ;;  %v2629_v58 = vsel %vm2628_vm11, %v5755_v13, %v2625_v48  ;;  %vm2552_vm13 = vweird.f32 %v5757_v55  ;;  %v2660_v12 = vand.u32 2147483647, %v4961_v47 }
 0x2a6   :  { %v2549_v60 = vmul.f32 %v5757_v55, %v2548_v22  ;;  %v2634_v37 = vsel %vm2631_vm10, %v2633_v27, %v2629_v58  ;;  %vm5456_vm14 = vcmp.eq.f32.partialorder %v2555_v17, 8.507059e+37  ;;  %v2667_v9 = vmul.f32 %v4986_v62, %v4895_v33  ;;  %vm2553_vm3 = vmor %vm2551_vm12, %vm2552_vm13 }
 0x2a7   :  { %v2653_v20 = vsub.f32 1.0, %v2652_v10  ;;  %2903 = vperm.xlu0 %3082, %v2634_v37   ;;  %vm2656_vm15 = vweird.f32 %v4961_v47  ;;  %vm2657_vm2 = vweird.f32 %v5012_v35  ;;  %v2662_v43 = vand.u32 2147483648, %v4961_v47  ;;  %v5762_v10 = vld [vmem:[#allocation24_spill] sm:$0xff] }
 0x2a8   :  { %v2550_v51 = vadd.f32 %v5757_v55, %v2549_v60  ;;  %v5466_v14 = vpop.eup %3354  ;;  %v2558_v59 = vor.u32 1.1754944e-38, %v2557_v23  ;;  %vm5471_vm1 = vcmp.eq.f32.partialorder %v2660_v12, 8.507059e+37  ;;  %v2668_v21 = vsub.f32 1.0, %v2667_v9  ;;  %vm2658_vm5 = vmor %vm2656_vm15, %vm2657_vm2 }
 0x2a9   :  { %v2654_v61 = vmul.f32 %v5012_v35, %v2653_v20  ;;  %vm2672_vm4 = vweird.f32 %v4986_v62  ;;  %v2677_v39 = vand.u32 2147483648, %v4895_v33  ;;  %v2592_v54 = vmul.f32 %v4976_v52, %v4882_v53 }
 0x2aa   :  { %v2554_v63 = vsel %vm2553_vm3, %v5757_v55, %v2550_v51  ;;  %v2669_v8 = vmul.f32 %v4986_v62, %v2668_v21  ;;  %v2675_v13 = vand.u32 2147483647, %v4895_v33  ;;  %v2663_v5 = vor.u32 1.1754944e-38, %v2662_v43 }
 0x2ab   :  { %v2559_v16 = vsel %vm5456_vm14, %v2558_v59, %v2554_v63  ;;  %v2655_v19 = vadd.f32 %v5012_v35, %v2654_v61  ;;  %vm2671_vm6 = vweird.f32 %v4895_v33  ;;  %v2678_v24 = vor.u32 1.1754944e-38, %v2677_v39 }
 0x2ac   :  { %2878 = vperm.xlu2 %3081, %v2559_v16   ;;  %v2593_v40 = vsub.f32 1.0, %v2592_v54  ;;  %v2670_v34 = vadd.f32 %v4986_v62, %v2669_v8  ;;  %v2602_v46 = vand.u32 2147483648, %v4882_v53  ;;  %v2697_v29 = vmul.f32 %v5180_v44, %v5076_v1  ;;  %vm2673_vm7 = vmor %vm2671_vm6, %vm2672_vm4 }
 0x2ad   :  { %v2659_v6 = vsel %vm2658_vm5, %v5012_v35, %v2655_v19  ;;  %vm2597_vm8 = vweird.f32 %v4976_v52  ;;  %v2600_v33 = vand.u32 2147483647, %v4882_v53  ;;  %vm2676_vm9 = vcmp.eq.f32.partialorder %v2675_v13, 8.507059e+37 }
 0x2ae   :  { %v2664_v41 = vsel %vm5471_vm1, %v2663_v5, %v2659_v6  ;;  %v2594_v47 = vmul.f32 %v4976_v52, %v2593_v40  ;;  %v2674_v35 = vsel %vm2673_vm7, %v4986_v62, %v2670_v34  ;;  %vm2596_vm10 = vweird.f32 %v4882_v53  ;;  %v2804_v5 = vpop.permute.xlu2 %2803 }
 0x2af   :  { %2913 = vperm.xlu1 %3083, %v2664_v41   ;;  %v2698_v3 = vsub.f32 1.0, %v2697_v29  ;;  %v2679_v56 = vsel %vm2676_vm9, %v2678_v24, %v2674_v35  ;;  %v2603_v57 = vor.u32 1.1754944e-38, %v2602_v46  ;;  %v2707_v55 = vand.u32 2147483648, %v5076_v1  ;;  %vm2598_vm11 = vmor %vm2596_vm10, %vm2597_vm8 }
 0x2b0   :  { %v2595_v26 = vadd.f32 %v4976_v52, %v2594_v47  ;;  %2918 = vperm.xlu0 %3082, %v2679_v56   ;;  %vm2702_vm12 = vweird.f32 %v5180_v44  ;;  %v2705_v30 = vand.u32 2147483647, %v5076_v1  ;;  %v2712_v62 = vmul.f32 %v5042_v45, %v5004_v4 }
 0x2b1   :  { %v2699_v49 = vmul.f32 %v5180_v44, %v2698_v3  ;;  %vm2601_vm13 = vcmp.eq.f32.partialorder %v2600_v33, 8.507059e+37  ;;  %vm2701_vm14 = vweird.f32 %v5076_v1  ;;  %v2720_v17 = vand.u32 2147483647, %v5004_v4 }
 0x2b2   :  { %v2599_v53 = vsel %vm2598_vm11, %v4976_v52, %v2595_v26  ;;  %v2713_v22 = vsub.f32 1.0, %v2712_v62  ;;  %vm2716_vm15 = vweird.f32 %v5004_v4  ;;  %vm2703_vm2 = vmor %vm2701_vm14, %vm2702_vm12  ;;  %v2708_v27 = vor.u32 1.1754944e-38, %v2707_v55  ;;  %v5763_v52 = vld [vmem:[#allocation25_spill] sm:$0xff] }
 0x2b3   :  { %v2604_v18 = vsel %vm2601_vm13, %v2603_v57, %v2599_v53  ;;  %v2700_v48 = vadd.f32 %v5180_v44, %v2699_v49  ;;  %vm2717_vm3 = vweird.f32 %v5042_v45  ;;  %v2722_v23 = vand.u32 2147483648, %v5004_v4 }
 0x2b4   :  { %2893 = vperm.xlu2 %3081, %v2604_v18   ;;  %v2637_v58 = vmul.f32 %v5763_v52, %v5762_v10  ;;  %vm2706_vm1 = vcmp.eq.f32.partialorder %v2705_v30, 8.507059e+37  ;;  %v2714_v60 = vmul.f32 %v5042_v45, %v2713_v22  ;;  %v2645_v12 = vand.u32 2147483647, %v5762_v10  ;;  %vm2718_vm7 = vmor %vm2716_vm15, %vm2717_vm3 }
 0x2b5   :  { %v2704_v1 = vsel %vm2703_vm2, %v5180_v44, %v2700_v48  ;;  %vm5523_vm4 = vcmp.eq.f32.partialorder %v2720_v17, 8.507059e+37  ;;  %v2742_v9 = vmul.f32 %v5273_v25, %v5217_v32  ;;  %vm2641_vm5 = vweird.f32 %v5762_v10 }
 0x2b6   :  { %v2709_v37 = vsel %vm2706_vm1, %v2708_v27, %v2704_v1  ;;  %v2638_v20 = vsub.f32 1.0, %v2637_v58  ;;  %v2715_v51 = vadd.f32 %v5042_v45, %v2714_v60  ;;  %vm2642_vm6 = vweird.f32 %v5763_v52 }
 0x2b7   :  { %2928 = vperm.xlu1 %3083, %v2709_v37   ;;  %v2647_v44 = vand.u32 2147483648, %v5762_v10  ;;  %v2723_v43 = vor.u32 1.1754944e-38, %v2722_v23  ;;  %vm5538_vm8 = vcmp.eq.f32.partialorder %v2645_v12, 8.507059e+37  ;;  %v2743_v42 = vsub.f32 1.0, %v2742_v9  ;;  %vm2643_vm10 = vmor %vm2641_vm5, %vm2642_vm6  ;;  %v3389_v9 = vld [vmem:[#allocation2 + $0xc] sm:$0xf] }
 0x2b8   :  { %v2639_v59 = vmul.f32 %v5763_v52, %v2638_v20  ;;  %v2719_v21 = vsel %vm2718_vm7, %v5042_v45, %v2715_v51  ;;  %vm2747_vm9 = vweird.f32 %v5273_v25  ;;  %v2752_v63 = vand.u32 2147483648, %v5217_v32 }
 0x2b9   :  { %v2757_v39 = vmul.f32 %v5258_v15, %v5164_v50  ;;  %v2724_v4 = vsel %vm5523_vm4, %v2723_v43, %v2719_v21  ;;  %v2744_v16 = vmul.f32 %v5273_v25, %v2743_v42  ;;  %v2750_v19 = vand.u32 2147483647, %v5217_v32 }
 0x2ba   :  { %v2640_v54 = vadd.f32 %v5763_v52, %v2639_v59  ;;  %2933 = vperm.xlu0 %3082, %v2724_v4   ;;  %v2648_v45 = vor.u32 1.1754944e-38, %v2647_v44  ;;  %vm2746_vm11 = vweird.f32 %v5217_v32  ;;  %v2753_v8 = vor.u32 1.1754944e-38, %v2752_v63  ;;  %v2814_v10 = vpop.permute.xlu1 %2813 }
 0x2bb   :  { %v2758_v13 = vsub.f32 1.0, %v2757_v39  ;;  %v2745_v40 = vadd.f32 %v5273_v25, %v2744_v16  ;;  %v2767_v6 = vand.u32 2147483648, %v5164_v50  ;;  %v2682_v34 = vmul.f32 %v5185_v7, %v5143_v38  ;;  %vm2748_vm12 = vmor %vm2746_vm11, %vm2747_vm9 }
 0x2bc   :  { %v2644_v24 = vsel %vm2643_vm10, %v5763_v52, %v2640_v54  ;;  %vm2762_vm13 = vweird.f32 %v5258_v15  ;;  %v2765_v29 = vand.u32 2147483647, %v5164_v50  ;;  %vm2751_vm14 = vcmp.eq.f32.partialorder %v2750_v19, 8.507059e+37 }
 0x2bd   :  { %v2649_v46 = vsel %vm5538_vm8, %v2648_v45, %v2644_v24  ;;  %v2759_v32 = vmul.f32 %v5258_v15, %v2758_v13  ;;  %v2749_v41 = vsel %vm2748_vm12, %v5273_v25, %v2745_v40  ;;  %vm2761_vm15 = vweird.f32 %v5164_v50  ;;  %v3392_v45 = vld [vmem:[#allocation2 + $0x10] sm:$0xf]  ;;  %v3393_v40 = vld [vmem:[#allocation2 + $0x4] sm:$0xf] }
 0x2be   :  { %2908 = vperm.xlu2 %3081, %v2649_v46   ;;  %v2683_v47 = vsub.f32 1.0, %v2682_v34  ;;  %v2754_v33 = vsel %vm2751_vm14, %v2753_v8, %v2749_v41  ;;  %v2768_v3 = vor.u32 1.1754944e-38, %v2767_v6  ;;  %v2692_v56 = vand.u32 2147483648, %v5143_v38  ;;  %vm2763_vm2 = vmor %vm2761_vm15, %vm2762_vm13  ;;  %v3394_v34 = vld [vmem:[#allocation2 + $0x1c] sm:$0xf] }
 0x2bf   :  { %v2760_v35 = vadd.f32 %v5258_v15, %v2759_v32  ;;  %2943 = vperm.xlu1 %3083, %v2754_v33   ;;  %vm2687_vm3 = vweird.f32 %v5185_v7  ;;  %v2690_v57 = vand.u32 2147483647, %v5143_v38  ;;  %v2787_v25 = vmul.f32 %v5418_v2, %v5380_v36  ;;  %v2819_v23 = vpop.permute.xlu2 %2818  ;;  %v3395_v32 = vld [vmem:[#allocation2 + $0x18] sm:$0xf] }
 0x2c0   :  { %v2684_v26 = vmul.f32 %v5185_v7, %v2683_v47  ;;  %vm2766_vm1 = vcmp.eq.f32.partialorder %v2765_v29, 8.507059e+37  ;;  %vm2686_vm4 = vweird.f32 %v5143_v38  ;;  %v2795_v62 = vand.u32 2147483647, %v5380_v36  ;;  %v3396_v47 = vld [vmem:[#allocation2 + $0x20] sm:$0xf] }
 0x2c1   :  { %v2764_v50 = vsel %vm2763_vm2, %v5258_v15, %v2760_v35  ;;  %v2788_v30 = vsub.f32 1.0, %v2787_v25  ;;  %vm2688_vm5 = vmor %vm2686_vm4, %vm2687_vm3  ;;  %v2693_v53 = vor.u32 1.1754944e-38, %v2692_v56  ;;  %v2797_v17 = vand.u32 2147483648, %v5380_v36 }
 0x2c2   :  { %v2769_v55 = vsel %vm2766_vm1, %v2768_v3, %v2764_v50  ;;  %v2685_v49 = vadd.f32 %v5185_v7, %v2684_v26  ;;  %v2727_v18 = vmul.f32 %v5413_v28, %v5362_v11  ;;  %vm2691_vm6 = vcmp.eq.f32.partialorder %v2690_v57, 8.507059e+37  ;;  %v3397_v3 = vld [vmem:[#allocation2 + $0x24] sm:$0xf]  ;;  %v3398_v57 = vld [vmem:[#allocation2 + $0x28] sm:$0xf] }
 0x2c3   :  { %2948 = vperm.xlu0 %3082, %v2769_v55   ;;  %v2789_v15 = vmul.f32 %v5418_v2, %v2788_v30  ;;  %vm2792_vm7 = vweird.f32 %v5418_v2  ;;  %v2772_v27 = vmul.f32 %v5466_v14, %v5427_v31  ;;  %vm2791_vm8 = vweird.f32 %v5380_v36  ;;  %v3399_v55 = vld [vmem:[#allocation2 + $0x2c] sm:$0xf] }
 0x2c4   :  { %v2689_v48 = vsel %vm2688_vm5, %v5185_v7, %v2685_v49  ;;  %v2728_v22 = vsub.f32 1.0, %v2727_v18  ;;  %vm2796_vm9 = vcmp.eq.f32.partialorder %v2795_v62, 8.507059e+37  ;;  %vm2732_vm10 = vweird.f32 %v5413_v28  ;;  %vm2793_vm11 = vmor %vm2791_vm8, %vm2792_vm7  ;;  %v3400_v62 = vld [vmem:[#allocation2 + $0x30] sm:$0xf]  ;;  %v3401_v18 = vld [vmem:[#allocation2 + $0x34] sm:$0xf] }
 0x2c5   :  { %v2694_v38 = vsel %vm2691_vm6, %v2693_v53, %v2689_v48  ;;  %v2790_v52 = vadd.f32 %v5418_v2, %v2789_v15  ;;  %v2798_v7 = vor.u32 1.1754944e-38, %v2797_v17  ;;  %v2737_v1 = vand.u32 2147483648, %v5362_v11 }
 0x2c6   :  { %2923 = vperm.xlu2 %3081, %v2694_v38   ;;  %v2729_v58 = vmul.f32 %v5413_v28, %v2728_v22  ;;  %v2773_v60 = vsub.f32 1.0, %v2772_v27  ;;  %v2735_v37 = vand.u32 2147483647, %v5362_v11  ;;  %v2961_v20 = vmul.f32 %v3388_v0, %v2804_v5  ;;  %v3402_v22 = vld [vmem:[#allocation2 + $0x3c] sm:$0xf] }
 0x2c7   :  { %v2794_v12 = vsel %vm2793_vm11, %v5418_v2, %v2790_v52  ;;  %v2964_v51 = vmul.f32 %v3389_v9, %v2819_v23  ;;  %vm2731_vm12 = vweird.f32 %v5362_v11  ;;  %v3390_v2 = vld [vmem:[#allocation2 + $0x8] sm:$0xf]  ;;  %v2738_v42 = vor.u32 1.1754944e-38, %v2737_v1  ;;  %v3403_v23 = vld [vmem:[#allocation2 + $0x38] sm:$0xf] }
 0x2c8   :  { %v2799_v44 = vsel %vm2796_vm9, %v2798_v7, %v2794_v12  ;;  %v2730_v36 = vadd.f32 %v5413_v28, %v2729_v58  ;;  %vm2733_vm13 = vmor %vm2731_vm12, %vm2732_vm10  ;;  %v2774_v43 = vmul.f32 %v5466_v14, %v2773_v60  ;;  %2993 = vst.msk [vmem:[#allocation5] sm:$0xf] %vm63_vm0, %v2961_v20  ;;  %v2963_v59 = vmul.f32 %v3390_v2, %v2814_v10  ;;  %v3404_v58 = vld [vmem:[#allocation2 + $0x40] sm:$0xf]  ;;  %v3405_v60 = vld [vmem:[#allocation2 + $0x48] sm:$0xf] }
 0x2c9   :  { %2958 = vperm.xlu1 %3083, %v2799_v44   ;;  %2996 = vst.msk [vmem:[#allocation5 + $0xc] sm:$0xf] %vm63_vm0, %v2964_v51  ;;  %vm2736_vm14 = vcmp.eq.f32.partialorder %v2735_v37, 8.507059e+37  ;;  %vm2777_vm15 = vweird.f32 %v5466_v14  ;;  %v2782_v63 = vand.u32 2147483648, %v5427_v31  ;;  %vm2776_vm2 = vweird.f32 %v5427_v31  ;;  %v3406_v0 = vld [vmem:[#allocation2 + $0x44] sm:$0xf] }
 0x2ca   :  { %v2734_v61 = vsel %vm2733_vm13, %v5413_v28, %v2730_v36  ;;  %2995 = vst.msk [vmem:[#allocation5 + $0x8] sm:$0xf] %vm63_vm0, %v2963_v59  ;;  %v2775_v11 = vadd.f32 %v5466_v14, %v2774_v43  ;;  %v2780_v4 = vand.u32 2147483647, %v5427_v31  ;;  %v3391_v28 = vld [vmem:[#allocation2 + $0x14] sm:$0xf]  ;;  %vm2778_vm3 = vmor %vm2776_vm2, %vm2777_vm15 }
 0x2cb   :  { %v2739_v21 = vsel %vm2736_vm14, %v2738_v42, %v2734_v61  ;;  %v2783_v13 = vor.u32 1.1754944e-38, %v2782_v63  ;;  %v3407_v44 = vld [vmem:[#allocation2 + $0x4c] sm:$0xf]  ;;  %v3408_v43 = vld [vmem:[#allocation2 + $0x54] sm:$0xf] }
 0x2cc   :  { %v2779_v19 = vsel %vm2778_vm3, %v5466_v14, %v2775_v11  ;;  %vm2781_vm1 = vcmp.eq.f32.partialorder %v2780_v4, 8.507059e+37  ;;  %v3409_v61 = vld [vmem:[#allocation2 + $0x50] sm:$0xf]  ;;  %v3410_v11 = vld [vmem:[#allocation2 + $0x60] sm:$0xf] }
 0x2cd   :  { %v2784_v5 = vsel %vm2781_vm1, %v2783_v13, %v2779_v19  ;;  %v3411_v4 = vld [vmem:[#allocation2 + $0x58] sm:$0xf] }
 0x2ce   :  { %2938 = vperm.xlu2 %3081, %v2739_v21   ;;  %v2829_v39 = vpop.permute.xlu1 %2828 }
 0x2cf   :  { %v2966_v54 = vmul.f32 %v3391_v28, %v2829_v39 }
 0x2d0   :  { %v2824_v16 = vpop.permute.xlu2 %2823 }
 0x2d1   :  { %v2965_v8 = vmul.f32 %v3392_v45, %v2824_v16  ;;  %2998 = vst.msk [vmem:[#allocation5 + $0x14] sm:$0xf] %vm63_vm0, %v2966_v54  ;;  %v3412_v16 = vld [vmem:[#allocation2 + $0x5c] sm:$0xf] }
 0x2d3   :  { %2997 = vst.msk [vmem:[#allocation5 + $0x10] sm:$0xf] %vm63_vm0, %v2965_v8  ;;  %v3413_v8 = vld [vmem:[#allocation2 + $0x6c] sm:$0xf] }
 0x2d6   :  { %2953 = vperm.xlu2 %3081, %v2784_v5  }
 0x2dc   :  { %v2809_v24 = vpop.permute.xlu0 %2808 }
 0x2dd   :  { %v2962_v6 = vmul.f32 %v3393_v40, %v2809_v24  ;;  %v3414_v24 = vld [vmem:[#allocation2 + $0x64] sm:$0xf] }
 0x2df   :  { %2994 = vst.msk [vmem:[#allocation5 + $0x4] sm:$0xf] %vm63_vm0, %v2962_v6 }
 0x2e1   :  { %v2839_v31 = vpop.permute.xlu1 %2838 }
 0x2e2   :  { %v2968_v46 = vmul.f32 %v3394_v34, %v2839_v31  ;;  %v3415_v31 = vld [vmem:[#allocation2 + $0x68] sm:$0xf] }
 0x2e4   :  { %3000 = vst.msk [vmem:[#allocation5 + $0x1c] sm:$0xf] %vm63_vm0, %v2968_v46 }
 0x2e6   :  { %v2834_v14 = vpop.permute.xlu2 %2833 }
 0x2e7   :  { %v2967_v29 = vmul.f32 %v3395_v32, %v2834_v14  ;;  %v3416_v14 = vld [vmem:[#allocation2 + $0x78] sm:$0xf] }
 0x2e9   :  { %2999 = vst.msk [vmem:[#allocation5 + $0x18] sm:$0xf] %vm63_vm0, %v2967_v29 }
 0x2ed   :  { %v2844_v41 = vpop.permute.xlu0 %2843 }
 0x2ee   :  { %v2969_v33 = vmul.f32 %v3396_v47, %v2844_v41  ;;  %v3417_v41 = vld [vmem:[#allocation2 + $0x70] sm:$0xf] }
 0x2f0   :  { %3001 = vst.msk [vmem:[#allocation5 + $0x20] sm:$0xf] %vm63_vm0, %v2969_v33 }
 0x2f1   :  { %v2849_v35 = vpop.permute.xlu2 %2848 }
 0x2f2   :  { %v2970_v56 = vmul.f32 %v3397_v3, %v2849_v35  ;;  %v2854_v26 = vpop.permute.xlu1 %2853  ;;  %v3418_v35 = vld [vmem:[#allocation2 + $0x74] sm:$0xf] }
 0x2f3   :  { %v2971_v25 = vmul.f32 %v3398_v57, %v2854_v26  ;;  %v3419_v26 = vld [vmem:[#allocation2 + $0x7c] sm:$0xf] }
 0x2f4   :  { %3002 = vst.msk [vmem:[#allocation5 + $0x24] sm:$0xf] %vm63_vm0, %v2970_v56 }
 0x2f5   :  { %3003 = vst.msk [vmem:[#allocation5 + $0x28] sm:$0xf] %vm63_vm0, %v2971_v25 }
 0x2f8   :  { %v2859_v50 = vpop.permute.xlu0 %2858 }
 0x2f9   :  { %v2972_v49 = vmul.f32 %v3399_v55, %v2859_v50 }
 0x2fb   :  { %3004 = vst.msk [vmem:[#allocation5 + $0x2c] sm:$0xf] %vm63_vm0, %v2972_v49 }
 0x2fc   :  { %v2864_v30 = vpop.permute.xlu2 %2863 }
 0x2fd   :  { %v2973_v53 = vmul.f32 %v3400_v62, %v2864_v30 }
 0x2ff   :  { %3005 = vst.msk [vmem:[#allocation5 + $0x30] sm:$0xf] %vm63_vm0, %v2973_v53 }
 0x301   :  { %v2869_v17 = vpop.permute.xlu1 %2868 }
 0x302   :  { %v2974_v48 = vmul.f32 %v3401_v18, %v2869_v17 }
 0x304   :  { %3006 = vst.msk [vmem:[#allocation5 + $0x34] sm:$0xf] %vm63_vm0, %v2974_v48 }
 0x305   :  { %v2874_v38 = vpop.permute.xlu0 %2873 }
 0x306   :  { %v2879_v15 = vpop.permute.xlu2 %2878  ;;  %v2975_v10 = vmul.f32 %v3403_v23, %v2874_v38 }
 0x307   :  { %v2976_v27 = vmul.f32 %v3402_v22, %v2879_v15 }
 0x308   :  { %3007 = vst.msk [vmem:[#allocation5 + $0x38] sm:$0xf] %vm63_vm0, %v2975_v10 }
 0x309   :  { %3008 = vst.msk [vmem:[#allocation5 + $0x3c] sm:$0xf] %vm63_vm0, %v2976_v27 }
 0x30c   :  { %v2884_v52 = vpop.permute.xlu1 %2883 }
 0x30d   :  { %v2977_v1 = vmul.f32 %v3404_v58, %v2884_v52 }
 0x30e   :  { %v2894_v7 = vpop.permute.xlu2 %2893 }
 0x30f   :  { %v2979_v12 = vmul.f32 %v3405_v60, %v2894_v7  ;;  %3009 = vst.msk [vmem:[#allocation5 + $0x40] sm:$0xf] %vm63_vm0, %v2977_v1 }
 0x310   :  { %v2889_v37 = vpop.permute.xlu0 %2888 }
 0x311   :  { %3011 = vst.msk [vmem:[#allocation5 + $0x48] sm:$0xf] %vm63_vm0, %v2979_v12  ;;  %v2978_v20 = vmul.f32 %v3406_v0, %v2889_v37 }
 0x313   :  { %3010 = vst.msk [vmem:[#allocation5 + $0x44] sm:$0xf] %vm63_vm0, %v2978_v20 }
 0x317   :  { %v2899_v9 = vpop.permute.xlu1 %2898 }
 0x318   :  { %v2909_v51 = vpop.permute.xlu2 %2908  ;;  %v2980_v36 = vmul.f32 %v3407_v44, %v2899_v9 }
 0x319   :  { %v2982_v2 = vmul.f32 %v3408_v43, %v2909_v51  ;;  %v2904_v59 = vpop.permute.xlu0 %2903 }
 0x31a   :  { %3012 = vst.msk [vmem:[#allocation5 + $0x4c] sm:$0xf] %vm63_vm0, %v2980_v36  ;;  %v2981_v42 = vmul.f32 %v3409_v61, %v2904_v59 }
 0x31b   :  { %3014 = vst.msk [vmem:[#allocation5 + $0x54] sm:$0xf] %vm63_vm0, %v2982_v2 }
 0x31c   :  { %3013 = vst.msk [vmem:[#allocation5 + $0x50] sm:$0xf] %vm63_vm0, %v2981_v42 }
 0x320   :  { %v2924_v21 = vpop.permute.xlu2 %2923 }
 0x321   :  { %v2985_v63 = vmul.f32 %v3410_v11, %v2924_v21  ;;  %v2914_v39 = vpop.permute.xlu1 %2913 }
 0x322   :  { %v2983_v28 = vmul.f32 %v3411_v4, %v2914_v39  ;;  %v2919_v54 = vpop.permute.xlu0 %2918 }
 0x323   :  { %3017 = vst.msk [vmem:[#allocation5 + $0x60] sm:$0xf] %vm63_vm0, %v2985_v63  ;;  %v2984_v19 = vmul.f32 %v3412_v16, %v2919_v54 }
 0x324   :  { %3015 = vst.msk [vmem:[#allocation5 + $0x58] sm:$0xf] %vm63_vm0, %v2983_v28 }
 0x325   :  { %3016 = vst.msk [vmem:[#allocation5 + $0x5c] sm:$0xf] %vm63_vm0, %v2984_v19 }
 0x328   :  { %v2939_v45 = vpop.permute.xlu2 %2938 }
 0x329   :  { %v2988_v13 = vmul.f32 %v3413_v8, %v2939_v45  ;;  %v2929_v5 = vpop.permute.xlu1 %2928 }
 0x32a   :  { %v2986_v40 = vmul.f32 %v3414_v24, %v2929_v5 }
 0x32b   :  { %3020 = vst.msk [vmem:[#allocation5 + $0x6c] sm:$0xf] %vm63_vm0, %v2988_v13 }
 0x32c   :  { %3018 = vst.msk [vmem:[#allocation5 + $0x64] sm:$0xf] %vm63_vm0, %v2986_v40  ;;  %v2934_v6 = vpop.permute.xlu0 %2933 }
 0x32d   :  { %v2987_v34 = vmul.f32 %v3415_v31, %v2934_v6 }
 0x32f   :  { %3019 = vst.msk [vmem:[#allocation5 + $0x68] sm:$0xf] %vm63_vm0, %v2987_v34 }
 0x330   :  { %v2954_v46 = vpop.permute.xlu2 %2953 }
 0x331   :  { %v2991_v32 = vmul.f32 %v3416_v14, %v2954_v46  ;;  %v2944_v29 = vpop.permute.xlu1 %2943 }
 0x332   :  { %v2989_v47 = vmul.f32 %v3417_v41, %v2944_v29 }
 0x333   :  { %3023 = vst.msk [vmem:[#allocation5 + $0x78] sm:$0xf] %vm63_vm0, %v2991_v32 }
 0x334   :  { %3021 = vst.msk [vmem:[#allocation5 + $0x70] sm:$0xf] %vm63_vm0, %v2989_v47 }
 0x335   :  { %v2949_v33 = vpop.permute.xlu0 %2948 }
 0x336   :  { %v2990_v3 = vmul.f32 %v3418_v35, %v2949_v33 }
 0x338   :  { %3022 = vst.msk [vmem:[#allocation5 + $0x74] sm:$0xf] %vm63_vm0, %v2990_v3 }
 0x33b   :  { %v2959_v56 = vpop.permute.xlu1 %2958 }
 0x33c   :  { %v2992_v57 = vmul.f32 %v3419_v26, %v2959_v56 }
 0x33e   :  { %3024 = vst.msk [vmem:[#allocation5 + $0x7c] sm:$0xf] %vm63_vm0, %v2992_v57 }
 0x33f   :  { %3037 = dma.vmem_to_hbm [thread:$0]  %s3030_s14, 2048, %s3032_s0, [#allocation4], %s3473_s17, %s3473_s17, %s3474_s18  }
 0x340   :  { %3470 = dma.done.wait [#allocation4], 2048  }
 0x341   :  { %3471 = vsyncadd [#allocation4], 4294965248 }
 0x342   :  { %3042 = vsyncpa [#allocation3], 1 }
 0x343   :  { %3043 = vsyncpa [#allocation4], 1 }

</bundles_post_ra>
